<compile_context>
chip_gen: v6e
topology: v6e:2x2x1
jax: 0.10.0
libtpu: 0.0.40
codegen_flags: <defaults>
</compile_context>

<pallas_src>
import functools
import math

import jax
import jax.numpy as jnp
from jax.experimental import pallas as pl
from jax.experimental.pallas import tpu as pltpu


def _round_up(x, m):
    return ((x + m - 1) // m) * m


def _choose_batch_block(b_pad, s_pad, d, v_pad, itemsize=2,
                        budget_bytes=20 * 1024 * 1024):
    """Largest sublane-aligned batch block that (a) fits a conservative VMEM
    estimate and (b) preferably leaves >=2 grid blocks (2 v7x TensorCores)."""

    def est(tb):
        per = 2 * tb * s_pad * 4                      # src block (double buffered)
        per += 2 * tb * s_pad * 4                     # attn output block
        per += 2 * tb * d * 4                         # output block
        per += 2 * tb * 1 * 4                         # target-token block
        per += 2 * (v_pad * d + 2 * d * d) * itemsize  # table + weights
        # in-kernel intermediates (one-hot + embedded), rough upper bound
        per += tb * s_pad * (v_pad * itemsize + d * 4) * 2
        return per

    candidates = [tb for tb in (256, 128, 64, 32, 16, 8) if b_pad % tb == 0]
    for prefer_multi in (True, False):
        for tb in candidates:
            if prefer_multi and b_pad // tb < 2:
                continue
            if est(tb) <= budget_bytes:
                return tb
    return 8


def _attention_kernel(src_ref, tgt_tok_ref, table_ref, wqk_ref, wv_ref,
                      out_ref, attn_ref, *, seq_len):
    cdt = table_ref.dtype
    tb, s_pad = src_ref.shape
    v_pad, d = table_ref.shape

    src = src_ref[...]                                     # (TB, S_pad) int32
    tgt_tok = tgt_tok_ref[...]                             # (TB, 1)     int32
    table = table_ref[...]                                 # (Vp, D)

    # ---- fused embedding gather: one_hot(src) @ table   (single MXU matmul)
    v_ids = jax.lax.broadcasted_iota(jnp.int32, (tb, s_pad, v_pad), 2)
    onehot = (v_ids == src[:, :, None]).astype(cdt)        # (TB, S_pad, Vp)
    emb = jax.lax.dot_general(
        onehot.reshape(tb * s_pad, v_pad), table,
        (((1,), (0,)), ((), ())),
        preferred_element_type=jnp.float32,
    ).reshape(tb, s_pad, d)                                # (TB, S_pad, D) f32

    # ---- target-token embedding (one row per batch element)
    tv_ids = jax.lax.broadcasted_iota(jnp.int32, (tb, v_pad), 1)
    tgt_oh = (tv_ids == tgt_tok).astype(cdt)               # (TB, Vp)
    tgt_emb = jax.lax.dot_general(
        tgt_oh, table, (((1,), (0,)), ((), ())),
        preferred_element_type=jnp.float32)                # (TB, D) f32

    # ---- u = emb[:, t] @ (Wq^T Wk / sqrt(D))   (Wqk pre-folded, pre-scaled)
    u = jax.lax.dot_general(
        tgt_emb.astype(cdt), wqk_ref[...], (((1,), (0,)), ((), ())),
        preferred_element_type=jnp.float32)                # (TB, D) f32

    # ---- scores[b, s] = u[b, :] . emb[b, s, :]   (VPU multiply + lane reduce)
    scores = jnp.sum(emb * u[:, None, :], axis=-1)         # (TB, S_pad) f32

    # mask padded key positions (seq_len is a compile-time constant)
    key_ids = jax.lax.broadcasted_iota(jnp.int32, (tb, s_pad), 1)
    scores = jnp.where(key_ids < seq_len, scores, -jnp.inf)

    # ---- exact, numerically-stable softmax over the key axis (f32)
    m = jnp.max(scores, axis=-1, keepdims=True)
    e = jnp.exp(scores - m)
    attn = e / jnp.sum(e, axis=-1, keepdims=True)          # rows sum to ~1 (f32)

    # ---- c[b, :] = sum_s attn[b, s] * emb[b, s, :]  (VPU mult + sublane reduce)
    c = jnp.sum(emb * attn[:, :, None], axis=1)            # (TB, D) f32

    # ---- output = c @ Wv^T
    out = jax.lax.dot_general(
        c.astype(cdt), wv_ref[...], (((1,), (1,)), ((), ())),
        preferred_element_type=jnp.float32)                # (TB, D) f32

    out_ref[...] = out.astype(out_ref.dtype)
    attn_ref[...] = attn.astype(attn_ref.dtype)


def attention_with_gradient_forward(src, target_word_idx, emb_weight,
                                    wq, wk, wv, *,
                                    compute_dtype=jnp.bfloat16):
    """Forward pass equivalent to AttentionWithGradient.forward.

    src:              int (B, S) token indices
    target_word_idx:  python int or int scalar (traced under jit; no recompile)
    emb_weight:       f32 (vocab, D)
    wq/wk/wv:         f32 (D, D) PyTorch-layout linear weights (out, in)

    Returns (output (B, 1, D) f32, attention_weights.squeeze()).
    """
    B, S = src.shape
    V, D = emb_weight.shape
    src_i32 = src.astype(jnp.int32)

    # ---- padding for sublane/lane density
    B_pad = _round_up(max(B, 16), 16)       # sublane-dense bf16 tiles, >=2 blocks
    S_pad = _round_up(S, 128)               # lane-dense (TB, S) attention output
    V_pad = _round_up(V, 8)                 # sublane-aligned table

    TB = _choose_batch_block(B_pad, S_pad, D, V_pad,
                             itemsize=jnp.dtype(compute_dtype).itemsize)

    # ---- target token per batch row (clamped -> no silent OOB behaviour)
    t = jnp.clip(jnp.asarray(target_word_idx, jnp.int32), 0, S - 1)
    tgt_tok = jax.lax.dynamic_slice_in_dim(src_i32, t, 1, axis=1)   # (B, 1)

    src_pad = jnp.pad(src_i32, ((0, B_pad - B), (0, S_pad - S)))
    tgt_pad = jnp.pad(tgt_tok, ((0, B_pad - B), (0, 0)))
    table = jnp.pad(emb_weight, ((0, V_pad - V), (0, 0))).astype(compute_dtype)

    # ---- fold Wq^T @ Wk and the 1/sqrt(D) scale into one weight (f32 precompute)
    scale_inv = 1.0 / math.sqrt(float(D))
    wqk = (wq.T @ wk * scale_inv).astype(compute_dtype)
    wv_c = wv.astype(compute_dtype)

    kernel = functools.partial(_attention_kernel, seq_len=S)

    out2d, attn2d = pl.pallas_call(
        kernel,
        out_shape=(
            jax.ShapeDtypeStruct((B_pad, D), jnp.float32),
            jax.ShapeDtypeStruct((B_pad, S_pad), jnp.float32),
        ),
        grid=(B_pad // TB,),
        in_specs=[
            pl.BlockSpec((TB, S_pad), lambda b: (b, 0)),    # src tokens
            pl.BlockSpec((TB, 1), lambda b: (b, 0)),        # target tokens
            pl.BlockSpec((V_pad, D), lambda b: (0, 0)),     # embedding table
            pl.BlockSpec((D, D), lambda b: (0, 0)),         # Wq^T Wk / sqrt(D)
            pl.BlockSpec((D, D), lambda b: (0, 0)),         # W_v
        ],
        out_specs=(
            pl.BlockSpec((TB, D), lambda b: (b, 0)),        # output
            pl.BlockSpec((TB, S_pad), lambda b: (b, 0)),    # attention weights
        ),
        compiler_params=pltpu.CompilerParams(
            dimension_semantics=("parallel",),
            vmem_limit_bytes=32 * 1024 * 1024,
        ),
    )(src_pad, tgt_pad, table, wqk, wv_c)

    output = out2d[:B, None, :]                             # (B, 1, D) like torch
    attn_weights = jnp.squeeze(attn2d[:B, :S][:, None, :])  # torch .squeeze()
    return output, attn_weights


# ----------------------------------------------------------------------------
# Pure-JAX reference (mirrors the PyTorch module) and a small self-test.
# ----------------------------------------------------------------------------
def _reference_forward(src, target_word_idx, emb_weight, wq, wk, wv):
    emb = emb_weight[src]                                   # (B, S, D)
    q = emb @ wq.T
    k = emb @ wk.T
    v = emb @ wv.T
    tq = q[:, target_word_idx:target_word_idx + 1]          # (B, 1, D)
    scale = jnp.sqrt(jnp.float32(emb.shape[-1]))
    scores = jnp.einsum('bqd,bkd->bqk', tq, k) / scale      # (B, 1, S)
    attn = jax.nn.softmax(scores, axis=-1)
    out = jnp.einsum('bqk,bkd->bqd', attn, v)               # (B, 1, D)
    return out, jnp.squeeze(attn)


def _init_params(key, vocab_size, embedding_dim):
    k_emb, k_q, k_k, k_v = jax.random.split(key, 4)
    emb_weight = jax.random.normal(
        k_emb, (vocab_size, embedding_dim), dtype=jnp.float32) * 0.1
    bound = 1.0 / math.sqrt(embedding_dim)

    def lin(k):
        return jax.random.uniform(
            k, (embedding_dim, embedding_dim),
            minval=-bound, maxval=bound, dtype=jnp.float32)

    return emb_weight, lin(k_q), lin(k_k), lin(k_v)


if __name__ == "__main__":
    vocab_size = 16
    embedding_dim = 4     # module default
    batch = 2
    seq = 8
    target_word_idx = 3

    key = jax.random.PRNGKey(0)
    k_params, k_src = jax.random.split(key)

    emb_weight, wq, wk, wv = _init_params(k_params, vocab_size, embedding_dim)
    src = jax.random.randint(k_src, (batch, seq), 0, vocab_size, dtype=jnp.int32)

    out, attn_weights = attention_with_gradient_forward(
        src, target_word_idx, emb_weight, wq, wk, wv)
    out = jax.block_until_ready(out)
    attn_weights = jax.block_until_ready(attn_weights)

    assert out.shape == (batch, 1, embedding_dim), out.shape
    assert attn_weights.shape == (batch, seq), attn_weights.shape
    # exact-divide softmax: rows sum to 1 to f32 precision
    assert bool(jnp.all(jnp.abs(jnp.sum(attn_weights, axis=-1) - 1.0) < 1e-3))

    # compare against the pure-JAX f32 reference (bf16 MXU path -> loose tol)
    ref_out, ref_attn = _reference_forward(
        src, target_word_idx, emb_weight, wq, wk, wv)
    assert bool(jnp.allclose(out, ref_out, atol=2e-2)), "output mismatch"
    assert bool(jnp.allclose(attn_weights, ref_attn, atol=2e-2)), "attn mismatch"

    print("KERNEL_OK")
</pallas_src>

<mosaic_0001>
module attributes {stable_mosaic.version = 11 : i64} {
  func.func @_attention_kernel(%arg0: i32, %arg1: memref<8x128xi32, #tpu.memory_space<vmem>>, %arg2: memref<8x1xi32, #tpu.memory_space<vmem>>, %arg3: memref<16x4xbf16, #tpu.memory_space<vmem>>, %arg4: memref<4x4xbf16, #tpu.memory_space<vmem>>, %arg5: memref<4x4xbf16, #tpu.memory_space<vmem>>, %arg6: memref<8x4xf32, #tpu.memory_space<vmem>>, %arg7: memref<8x128xf32, #tpu.memory_space<vmem>>) attributes {dimension_semantics = [#tpu.dimension_semantics<parallel>], iteration_bounds = array<i64: 2>, scalar_prefetch = 0 : i64, scratch_operands = 0 : i64, tpu.core_type = #tpu.core_type<tc>, window_params = [{transform_indices = @transform_0, window_bounds = array<i64: 8, 128>}, {transform_indices = @transform_1, window_bounds = array<i64: 8, 1>}, {pipeline_mode = #tpu.pipeline_mode<synchronous>, transform_indices = @transform_2, window_bounds = array<i64: 16, 4>}, {pipeline_mode = #tpu.pipeline_mode<synchronous>, transform_indices = @transform_3, window_bounds = array<i64: 4, 4>}, {pipeline_mode = #tpu.pipeline_mode<synchronous>, transform_indices = @transform_4, window_bounds = array<i64: 4, 4>}, {transform_indices = @transform_5, window_bounds = array<i64: 8, 4>}, {transform_indices = @transform_6, window_bounds = array<i64: 8, 128>}]} {
    %c0 = arith.constant 0 : index
    %c0_0 = arith.constant 0 : index
    %0 = vector.load %arg1[%c0, %c0_0] : memref<8x128xi32, #tpu.memory_space<vmem>>, vector<8x128xi32>
    %c0_1 = arith.constant 0 : index
    %c0_2 = arith.constant 0 : index
    %1 = vector.load %arg2[%c0_1, %c0_2] : memref<8x1xi32, #tpu.memory_space<vmem>>, vector<8x1xi32>
    %c0_3 = arith.constant 0 : index
    %c0_4 = arith.constant 0 : index
    %2 = vector.load %arg3[%c0_3, %c0_4] : memref<16x4xbf16, #tpu.memory_space<vmem>>, vector<16x4xbf16>
    %3 = tpu.iota {dimensions = array<i32: 2>} : vector<8x128x16xi32>
    %4 = vector.shape_cast %0 : vector<8x128xi32> to vector<8x128x1xi32>
    %5 = vector.broadcast %4 : vector<8x128x1xi32> to vector<8x128x16xi32>
    %6 = arith.cmpi eq, %3, %5 : vector<8x128x16xi32>
    %7 = arith.extui %6 : vector<8x128x16xi1> to vector<8x128x16xi32>
    %8 = arith.sitofp %7 : vector<8x128x16xi32> to vector<8x128x16xf32>
    %9 = arith.truncf %8 : vector<8x128x16xf32> to vector<8x128x16xbf16>
    %10 = vector.shape_cast %9 : vector<8x128x16xbf16> to vector<1024x16xbf16>
    %cst = arith.constant dense<0.000000e+00> : vector<1024x4xf32>
    %11 = tpu.matmul %10, %2, %cst {dimension_numbers = #tpu.dot_dimension_numbers<[1], [0], [0], [1], [0, 0, 1, 1], [], []>} : vector<1024x16xbf16>, vector<16x4xbf16>, vector<1024x4xf32> -> vector<1024x4xf32>
    %12 = vector.shape_cast %11 : vector<1024x4xf32> to vector<8x128x4xf32>
    %13 = tpu.iota {dimensions = array<i32: 1>} : vector<8x16xi32>
    %14 = vector.broadcast %1 : vector<8x1xi32> to vector<8x16xi32>
    %15 = arith.cmpi eq, %13, %14 : vector<8x16xi32>
    %16 = arith.extui %15 : vector<8x16xi1> to vector<8x16xi32>
    %17 = arith.sitofp %16 : vector<8x16xi32> to vector<8x16xf32>
    %18 = arith.truncf %17 : vector<8x16xf32> to vector<8x16xbf16>
    %cst_5 = arith.constant dense<0.000000e+00> : vector<8x4xf32>
    %19 = tpu.matmul %18, %2, %cst_5 {dimension_numbers = #tpu.dot_dimension_numbers<[1], [0], [0], [1], [0, 0, 1, 1], [], []>} : vector<8x16xbf16>, vector<16x4xbf16>, vector<8x4xf32> -> vector<8x4xf32>
    %20 = arith.truncf %19 : vector<8x4xf32> to vector<8x4xbf16>
    %c0_6 = arith.constant 0 : index
    %c0_7 = arith.constant 0 : index
    %21 = vector.load %arg4[%c0_6, %c0_7] : memref<4x4xbf16, #tpu.memory_space<vmem>>, vector<4x4xbf16>
    %cst_8 = arith.constant dense<0.000000e+00> : vector<8x4xf32>
    %22 = tpu.matmul %20, %21, %cst_8 {dimension_numbers = #tpu.dot_dimension_numbers<[1], [0], [0], [1], [0, 0, 1, 1], [], []>} : vector<8x4xbf16>, vector<4x4xbf16>, vector<8x4xf32> -> vector<8x4xf32>
    %23 = vector.shape_cast %22 : vector<8x4xf32> to vector<8x1x4xf32>
    %24 = vector.broadcast %23 : vector<8x1x4xf32> to vector<8x128x4xf32>
    %25 = arith.mulf %12, %24 : vector<8x128x4xf32>
    %cst_9 = arith.constant dense<0.000000e+00> : vector<8x128xf32>
    %26 = vector.multi_reduction <add>, %25, %cst_9 [2] : vector<8x128x4xf32> to vector<8x128xf32>
    %27 = tpu.iota {dimensions = array<i32: 1>} : vector<8x128xi32>
    %c8_i32 = arith.constant 8 : i32
    %28 = vector.broadcast %c8_i32 : i32 to vector<8x128xi32>
    %29 = arith.cmpi slt, %27, %28 : vector<8x128xi32>
    %cst_10 = arith.constant 0xFF800000 : f32
    %30 = vector.broadcast %cst_10 : f32 to vector<8x128xf32>
    %31 = arith.select %29, %26, %30 : vector<8x128xi1>, vector<8x128xf32>
    %cst_11 = arith.constant dense<0xFF800000> : vector<8xf32>
    %32 = vector.multi_reduction <maximumf>, %31, %cst_11 [1] : vector<8x128xf32> to vector<8xf32>
    %33 = vector.shape_cast %32 : vector<8xf32> to vector<8x1xf32>
    %34 = vector.broadcast %33 : vector<8x1xf32> to vector<8x128xf32>
    %35 = arith.subf %31, %34 : vector<8x128xf32>
    %36 = math.exp %35 : vector<8x128xf32>
    %cst_12 = arith.constant dense<0.000000e+00> : vector<8xf32>
    %37 = vector.multi_reduction <add>, %36, %cst_12 [1] : vector<8x128xf32> to vector<8xf32>
    %38 = vector.shape_cast %37 : vector<8xf32> to vector<8x1xf32>
    %39 = vector.broadcast %38 : vector<8x1xf32> to vector<8x128xf32>
    %40 = arith.divf %36, %39 : vector<8x128xf32>
    %41 = vector.shape_cast %40 : vector<8x128xf32> to vector<8x128x1xf32>
    %42 = vector.broadcast %41 : vector<8x128x1xf32> to vector<8x128x4xf32>
    %43 = arith.mulf %12, %42 : vector<8x128x4xf32>
    %cst_13 = arith.constant dense<0.000000e+00> : vector<8x4xf32>
    %44 = vector.multi_reduction <add>, %43, %cst_13 [1] : vector<8x128x4xf32> to vector<8x4xf32>
    %45 = arith.truncf %44 : vector<8x4xf32> to vector<8x4xbf16>
    %c0_14 = arith.constant 0 : index
    %c0_15 = arith.constant 0 : index
    %46 = vector.load %arg5[%c0_14, %c0_15] : memref<4x4xbf16, #tpu.memory_space<vmem>>, vector<4x4xbf16>
    %cst_16 = arith.constant dense<0.000000e+00> : vector<8x4xf32>
    %47 = tpu.matmul %45, %46, %cst_16 {dimension_numbers = #tpu.dot_dimension_numbers<[1], [1], [0], [0], [0, 0, 1, 0], [], []>} : vector<8x4xbf16>, vector<4x4xbf16>, vector<8x4xf32> -> vector<8x4xf32>
    %c0_17 = arith.constant 0 : index
    %c0_18 = arith.constant 0 : index
    %48 = vector.load %arg6[%c0_17, %c0_18] : memref<8x4xf32, #tpu.memory_space<vmem>>, vector<8x4xf32>
    tpu.vector_store %arg6[%c0_17, %c0_18], %47 {strides = array<i32>} : memref<8x4xf32, #tpu.memory_space<vmem>>, vector<8x4xf32>,
    %c0_19 = arith.constant 0 : index
    %c0_20 = arith.constant 0 : index
    %49 = vector.load %arg7[%c0_19, %c0_20] : memref<8x128xf32, #tpu.memory_space<vmem>>, vector<8x128xf32>
    tpu.vector_store %arg7[%c0_19, %c0_20], %40 {strides = array<i32>} : memref<8x128xf32, #tpu.memory_space<vmem>>, vector<8x128xf32>,
    return
  }
  func.func @transform_0(%arg0: i32) -> (i32, i32) {
    %c0_i32 = arith.constant 0 : i32
    %c0_i32_0 = arith.constant 0 : i32
    return %arg0, %c0_i32 : i32, i32
  }
  func.func @transform_1(%arg0: i32) -> (i32, i32) {
    %c0_i32 = arith.constant 0 : i32
    %c0_i32_0 = arith.constant 0 : i32
    return %arg0, %c0_i32 : i32, i32
  }
  func.func @transform_2(%arg0: i32) -> (i32, i32) {
    %c0_i32 = arith.constant 0 : i32
    %c0_i32_0 = arith.constant 0 : i32
    %c0_i32_1 = arith.constant 0 : i32
    return %c0_i32, %c0_i32_0 : i32, i32
  }
  func.func @transform_3(%arg0: i32) -> (i32, i32) {
    %c0_i32 = arith.constant 0 : i32
    %c0_i32_0 = arith.constant 0 : i32
    %c0_i32_1 = arith.constant 0 : i32
    return %c0_i32, %c0_i32_0 : i32, i32
  }
  func.func @transform_4(%arg0: i32) -> (i32, i32) {
    %c0_i32 = arith.constant 0 : i32
    %c0_i32_0 = arith.constant 0 : i32
    %c0_i32_1 = arith.constant 0 : i32
    return %c0_i32, %c0_i32_0 : i32, i32
  }
  func.func @transform_5(%arg0: i32) -> (i32, i32) {
    %c0_i32 = arith.constant 0 : i32
    %c0_i32_0 = arith.constant 0 : i32
    return %arg0, %c0_i32 : i32, i32
  }
  func.func @transform_6(%arg0: i32) -> (i32, i32) {
    %c0_i32 = arith.constant 0 : i32
    %c0_i32_0 = arith.constant 0 : i32
    return %arg0, %c0_i32 : i32, i32
  }
}

</mosaic_0001>

<bundles_post_ra>
// kernel: tpu_custom_call.1
= control target key start
LH: loop header
LB: loop body
LE: loop exit
PB: predicated region body
PF: predicated region fallthrough
CT: control target
= control target key end

     0   :  { %12 = vsyncpa [#allocation3], 0  ;;  %s7637_s0 = inlined_call_operand.vmem [shape: s32[16,128], index: 0, kind: input, shape index: {}]   ;;  %s7638_s1 = inlined_call_operand.vmem [shape: s32[16,1], index: 1, kind: input, shape index: {}]   ;;  %s7639_s2 = inlined_call_operand.vmem [shape: bf16[16,4], index: 2, kind: input, shape index: {}]   ;;  %s7640_s3 = inlined_call_operand.vmem [shape: bf16[4,4], index: 3, kind: input, shape index: {}]   ;;  %s7641_s4 = inlined_call_operand.vmem [shape: bf16[4,4], index: 4, kind: input, shape index: {}]   ;;  %s7642_s5 = inlined_call_operand.vmem [shape: f32[16,4], index: 5, kind: output, shape index: {0}]   ;;  %s7643_s6 = inlined_call_operand.hbm [shape: f32[16,128], index: 6, kind: output, shape index: {1}]  }
   0x1   :  { %14 = vsyncpa [#allocation3 + $0x1], 0  ;;  %s5266_s21 = smov 0   ;;  %s5268_s22 = smov 0  }
   0x2   :  { %s5270_s23 = smov 0   ;;  %s5272_s24 = smov 0  }
   0x3 LB: > { %s5287_s25 = sadd.s32 4294967295, %s5224_s24   ;;  %s4685_s26 = sadd.s32 4294967294, %s5224_s24   ;;  %s5224_s24 = sphi %s5272_s24, %s8282_s24   ;;  %s5220_s23 = sphi %s5270_s23, %s8281_s23   ;;  %s5216_s22 = sphi %s5268_s22, %s8280_s22   ;;  %s5212_s21 = sphi %s5266_s21, %s8279_s21  }
   0x4   : > { %s5291_s27 = sadd.s32 1, %s5224_s24   ;;  %s168_s28 = sadd.s32 1, %s5220_s23 }
   0x5   : > { %s165_s29 = ssub.s32 %s5224_s24, %s5291_s27  ;;  %p178_p0 = scmp.ne.s32.totalorder %s5220_s23, %s5216_s22 }
   0x6   : > { %p166_p1 = scmp.eq.s32.totalorder %s165_s29, 0  ;;  %p179_p2 = scmp.eq.s32.totalorder %s5287_s25, 1 }
   0x7   : > { %p184_p3 = scmp.ne.s32.totalorder %s5216_s22, %s5212_s21  ;;  %p185_p4 = scmp.eq.s32.totalorder %s4685_s26, 1 }
   0x8   : > { %s5302_s30 = scalar_select %p166_p1, %s5220_s23, %s168_s28  }
   0x9   : > { %p5304_p5 = por %p179_p2, %p178_p0  ;;  %p5308_p6 = por %p185_p4, %p184_p3 }
   0xa   : > { %p4688_p7 = scmp.ge.s32.totalorder %s5224_s24, 1  ;;  %p226_p8 = scmp.lt.s32.totalorder %s5224_s24, 3 }
   0xc   : > { %p227_p9 = pnand %p4688_p7, %p226_p8 }
   0xe   : > { %230 = sbr.rel (%p227_p9) target bundleno = 1971 (0x7b3), region = 40 }
  0x13   : > { %p263_p10 = scmp.lt.s32.totalorder %s5287_s25, 1  ;;  %v280_v0 = vlaneseq  ;;  %v5318_v1 = vld [vmem:[%s7639_s2] sm:$0xff]   ;;  %v5226_v2 = vmov 0   ;;  %v7651_v5 = vmov 0.0   ;;  %vm1272_vm4 = vcmask 130048   ;;  %s260_s26 = sand.u32 1, %s5216_s22  }
  0x14   : > { %5158 = vset.pattern.permute.xlu0 %v5226_v2  ;;  %5113 = vmatprep.subr.bf16.mxu1 %v5318_v1  ;;  %s7058_s28 = sshll.u32 %s260_s26, 3  ;;  %s4574_s17 = scalar_lea.sflag [#allocation3], %s260_s26 }
  0x15   : > { %s264_s11 = scalar_select %p263_p10, %s5287_s25, 1  ;;  %v5322_v3 = vshrl.u32 %v280_v0, 7  ;;  %4965 = vmatprep.subr.bf16.mxu0 %v5318_v1  ;;  %5114 = vmatpush3.bf16.msra.mxu1 %v5318_v1  ;;  %v5376_v17 = vand.u32 127, %v280_v0 }
  0x16   : > { %4966 = vmatpush3.bf16.msra.mxu0 %v5318_v1  ;;  %5095 = vmatprep.subr.bf16.mxu1 %v7651_v5  ;;  %s262_s29 = scalar_lea.vmem [#allocation2], %s7058_s28  ;;  %s5230_s19 = smov [#allocation2]  }
  0x17   : > { %7793 = vst [vmem:[#allocation5_spill] sm:$0xff] %v5322_v3  ;;  %s5328_s12 = sshll.u32 %s264_s11, 3  ;;  %v7647_v4 = vsub.s32 4, %v5322_v3  ;;  %v7646_v8 = vsub.s32 5, %v5322_v3  ;;  %v7645_v10 = vsub.s32 6, %v5322_v3  ;;  %v7644_v12 = vsub.s32 7, %v5322_v3 }
  0x18   : > { %s266_s15 = scalar_lea.vmem %s7637_s0, %s5328_s12  ;;  %v5364_v14 = vsub.s32 0, %v5322_v3  ;;  %s270_s18 = scalar_lea.vmem %s7638_s1, %s5328_s12  ;;  %7795 = vst [vmem:[#allocation7_spill] sm:$0xff] %v5376_v17  ;;  %v7650_v48 = vsub.s32 1, %v5322_v3 }
  0x19   : > { %v5336_v6 = vld [vmem:[%s266_s15] sm:$0xff]  ;;  %s4891_s11 = sshll.u32 %s5287_s25, 7  ;;  %s4590_s16 = sshll.u32 %s262_s29, 4  ;;  %s4591_s16 = int_to_ptr.vmem [resolvable:$true] %s4590_s16 }
  0x1a   : > { %v5341_v7 = vrot.slane %v5336_v6, %v7647_v4  ;;  %v620_v9 = vrot.slane %v5336_v6, %v7646_v8  ;;  %v687_v11 = vrot.slane %v5336_v6, %v7645_v10  ;;  %v754_v13 = vrot.slane %v5336_v6, %v7644_v12  ;;  %7794 = vst [vmem:[#allocation6_spill] sm:$0xff] %v5364_v14  ;;  %v277_v16 = vld [vmem:[%s270_s18] sm:$0xff]  ;;  %s4588_s15 = scalar_lea.hbm %s7643_s6, %s4891_s11  ;;  %s5164_s18 = scalar_lea.vmem %s4591_s16, 128 }
  0x1b   : > { %v5372_v15 = vrot.slane %v5336_v6, %v5364_v14  ;;  %v5432_v54 = vrot.slane %v5336_v6, %v7650_v48  ;;  %p5165_p11 = scmp.ne.s32.totalorder %s4591_s16, %s5164_s18  ;;  %s5168_s20 = sshll.u32 %s5230_s19, 4  ;;  %s5169_s20 = int_to_ptr.vmem [resolvable:$false] %s5168_s20 }
  0x1c   : > { %595 = vbcast.lane.b32.xlu1 %v5341_v7, 336  ;;  %587 = vbcast.lane.b32.xlu0 %v5341_v7, 320  ;;  %s5170_s9 = scalar_lea.vmem %s5169_s20, 256  ;;  %p5171_p0 = scmp.lt.s32.totalorder %s4591_s16, %s5169_s20 }
  0x1d   : > { %p5166_p12 = pnand %p5165_p11, %p5304_p5  ;;  %p5172_p1 = scmp.lt.s32.totalorder %s5170_s9, %s5164_s18 }
  0x1f   : > { %p5167_p13 = pneg %p5166_p12  ;;  %p5173_p2 = por %p5172_p1, %p5171_p0 }
  0x20   : > { %599 = vbcast.lane.b32.xlu1 %v5341_v7, 344  ;;  %591 = vbcast.lane.b32.xlu0 %v5341_v7, 328 }
  0x21   : > { %p5174_p3 = pnand %p5173_p2, %p5167_p13 }
  0x24   : > { %607 = vbcast.lane.b32.xlu1 %v5341_v7, 360  ;;  %603 = vbcast.lane.b32.xlu0 %v5341_v7, 352 }
  0x28   : > { %615 = vbcast.lane.b32.xlu1 %v5341_v7, 376  ;;  %611 = vbcast.lane.b32.xlu0 %v5341_v7, 368 }
  0x2c   : > { %626 = vbcast.lane.b32.xlu1 %v620_v9, 264  ;;  %622 = vbcast.lane.b32.xlu0 %v620_v9, 256 }
  0x30   : > { %634 = vbcast.lane.b32.xlu1 %v620_v9, 280  ;;  %630 = vbcast.lane.b32.xlu0 %v620_v9, 272 }
  0x34   : > { %642 = vbcast.lane.b32.xlu1 %v620_v9, 296  ;;  %638 = vbcast.lane.b32.xlu0 %v620_v9, 288 }
  0x38   : > { %650 = vbcast.lane.b32.xlu1 %v620_v9, 312  ;;  %646 = vbcast.lane.b32.xlu0 %v620_v9, 304 }
  0x3c   : > { %658 = vbcast.lane.b32.xlu1 %v620_v9, 328  ;;  %654 = vbcast.lane.b32.xlu0 %v620_v9, 320 }
  0x40   : > { %666 = vbcast.lane.b32.xlu1 %v620_v9, 344  ;;  %662 = vbcast.lane.b32.xlu0 %v620_v9, 336 }
  0x44   : > { %674 = vbcast.lane.b32.xlu1 %v620_v9, 360  ;;  %670 = vbcast.lane.b32.xlu0 %v620_v9, 352 }
  0x48   : > { %682 = vbcast.lane.b32.xlu1 %v620_v9, 376  ;;  %678 = vbcast.lane.b32.xlu0 %v620_v9, 368 }
  0x4c   : > { %693 = vbcast.lane.b32.xlu1 %v687_v11, 264  ;;  %689 = vbcast.lane.b32.xlu0 %v687_v11, 256 }
  0x50   : > { %701 = vbcast.lane.b32.xlu1 %v687_v11, 280  ;;  %697 = vbcast.lane.b32.xlu0 %v687_v11, 272 }
  0x54   : > { %709 = vbcast.lane.b32.xlu1 %v687_v11, 296  ;;  %705 = vbcast.lane.b32.xlu0 %v687_v11, 288 }
  0x58   : > { %717 = vbcast.lane.b32.xlu1 %v687_v11, 312  ;;  %713 = vbcast.lane.b32.xlu0 %v687_v11, 304 }
  0x5c   : > { %725 = vbcast.lane.b32.xlu1 %v687_v11, 328  ;;  %721 = vbcast.lane.b32.xlu0 %v687_v11, 320 }
  0x60   : > { %733 = vbcast.lane.b32.xlu1 %v687_v11, 344  ;;  %729 = vbcast.lane.b32.xlu0 %v687_v11, 336 }
  0x64   : > { %741 = vbcast.lane.b32.xlu1 %v687_v11, 360  ;;  %737 = vbcast.lane.b32.xlu0 %v687_v11, 352 }
  0x68   : > { %749 = vbcast.lane.b32.xlu1 %v687_v11, 376  ;;  %745 = vbcast.lane.b32.xlu0 %v687_v11, 368 }
  0x6c   : > { %760 = vbcast.lane.b32.xlu1 %v754_v13, 264  ;;  %756 = vbcast.lane.b32.xlu0 %v754_v13, 256 }
  0x70   : > { %768 = vbcast.lane.b32.xlu1 %v754_v13, 280  ;;  %764 = vbcast.lane.b32.xlu0 %v754_v13, 272 }
  0x74   : > { %776 = vbcast.lane.b32.xlu1 %v754_v13, 296  ;;  %772 = vbcast.lane.b32.xlu0 %v754_v13, 288 }
  0x78   : > { %784 = vbcast.lane.b32.xlu1 %v754_v13, 312  ;;  %780 = vbcast.lane.b32.xlu0 %v754_v13, 304 }
  0x7c   : > { %792 = vbcast.lane.b32.xlu1 %v754_v13, 328  ;;  %788 = vbcast.lane.b32.xlu0 %v754_v13, 320 }
  0x80   : > { %800 = vbcast.lane.b32.xlu1 %v754_v13, 344  ;;  %796 = vbcast.lane.b32.xlu0 %v754_v13, 336 }
  0x84   : > { %808 = vbcast.lane.b32.xlu1 %v754_v13, 360  ;;  %804 = vbcast.lane.b32.xlu0 %v754_v13, 352 }
  0x88   : > { %816 = vbcast.lane.b32.xlu1 %v754_v13, 376  ;;  %812 = vbcast.lane.b32.xlu0 %v754_v13, 368 }
  0x8c   : > { %2011 = vperm.xlu0 %5158, %v277_v16   ;;  %287 = vbcast.lane.b32.xlu1 %v5372_v15, 256 }
  0x8e   : > { %v596_v18 = vpop.permute.xlu1 %595  ;;  %v588_v19 = vpop.permute.xlu0 %587 }
  0x8f   : > { %vm892_vm0 = vcmp.eq.s32.totalorder %v5376_v17, %v596_v18  ;;  %vm890_vm1 = vcmp.eq.s32.totalorder %v5376_v17, %v588_v19 }
  0x90   : > { %291 = vbcast.lane.b32.xlu1 %v5372_v15, 264  ;;  %295 = vbcast.lane.b32.xlu0 %v5372_v15, 272  ;;  %v4767_v20 = vsel %vm892_vm0, 1.0, %v7651_v5  ;;  %v4765_v24 = vsel %vm890_vm1, 1.0, %v7651_v5 }
  0x92   : > { %v600_v21 = vpop.permute.xlu1 %599  ;;  %v592_v22 = vpop.permute.xlu0 %591 }
  0x93   : > { %vm893_vm2 = vcmp.eq.s32.totalorder %v5376_v17, %v600_v21  ;;  %vm891_vm3 = vcmp.eq.s32.totalorder %v5376_v17, %v592_v22 }
  0x94   : > { %v4768_v23 = vsel %vm893_vm2, 1.0, %v7651_v5  ;;  %v4766_v25 = vsel %vm891_vm3, 1.0, %v7651_v5  ;;  %299 = vbcast.lane.b32.xlu1 %v5372_v15, 280  ;;  %303 = vbcast.lane.b32.xlu0 %v5372_v15, 288 }
  0x95   : > { %v1239_v26 = vpack.c.bf16 %v4768_v23, %v4767_v20  ;;  %v1238_v27 = vpack.c.bf16 %v4766_v25, %v4765_v24 }
  0x96   : > { %v608_v28 = vpop.permute.xlu1 %607  ;;  %v604_v29 = vpop.permute.xlu0 %603 }
  0x97   : > { %vm895_vm5 = vcmp.eq.s32.totalorder %v5376_v17, %v608_v28  ;;  %vm894_vm6 = vcmp.eq.s32.totalorder %v5376_v17, %v604_v29  ;;  %5039 = vmatprep.mubr.msk.bf16.mxu1 %vm1272_vm4, %v1238_v27 }
  0x98   : > { %v4770_v30 = vsel %vm895_vm5, 1.0, %v7651_v5  ;;  %v4769_v31 = vsel %vm894_vm6, 1.0, %v7651_v5  ;;  %5040 = vmatmul.mubr.msk.bf16.vlgmr.msra.gmra.mxu1 %vm1272_vm4, %v1239_v26  ;;  %307 = vbcast.lane.b32.xlu1 %v5372_v15, 296 }
  0x99   : > { %v1240_v32 = vpack.c.bf16 %v4770_v30, %v4769_v31  ;;  %5096 = vmatpush3.bf16.msra.mxu1 %v5318_v1  ;;  %311 = vbcast.lane.b32.xlu0 %v5372_v15, 304 }
  0x9a   : > { %v616_v33 = vpop.permute.xlu1 %615  ;;  %v612_v34 = vpop.permute.xlu0 %611  ;;  %5101 = vmatprep.subr.bf16.mxu1 %v7651_v5 }
  0x9b   : > { %vm897_vm7 = vcmp.eq.s32.totalorder %v5376_v17, %v616_v33  ;;  %vm896_vm8 = vcmp.eq.s32.totalorder %v5376_v17, %v612_v34  ;;  %5043 = vmatprep.mubr.msk.bf16.mxu1 %vm1272_vm4, %v1240_v32 }
  0x9c   : > { %v4772_v35 = vsel %vm897_vm7, 1.0, %v7651_v5  ;;  %v4771_v36 = vsel %vm896_vm8, 1.0, %v7651_v5  ;;  %315 = vbcast.lane.b32.xlu1 %v5372_v15, 312 }
  0x9d   : > { %v1241_v37 = vpack.c.bf16 %v4772_v35, %v4771_v36  ;;  %319 = vbcast.lane.b32.xlu0 %v5372_v15, 320  ;;  %v7649_v36 = vsub.s32 2, %v5322_v3 }
  0x9e   : > { %v627_v38 = vpop.permute.xlu1 %626  ;;  %v623_v39 = vpop.permute.xlu0 %622 }
  0x9f   : > { %vm899_vm9 = vcmp.eq.s32.totalorder %v5376_v17, %v627_v38  ;;  %vm898_vm10 = vcmp.eq.s32.totalorder %v5376_v17, %v623_v39 }
  0xa0   : > { %v4774_v40 = vsel %vm899_vm9, 1.0, %v7651_v5  ;;  %v4773_v41 = vsel %vm898_vm10, 1.0, %v7651_v5  ;;  %5044 = vmatmul.mubr.msk.bf16.gmra.mxu1 %vm1272_vm4, %v1241_v37  ;;  %323 = vbcast.lane.b32.xlu1 %v5372_v15, 328 }
  0xa1   : > { %v1242_v42 = vpack.c.bf16 %v4774_v40, %v4773_v41  ;;  %327 = vbcast.lane.b32.xlu0 %v5372_v15, 336 }
  0xa2   : > { %v635_v43 = vpop.permute.xlu1 %634  ;;  %v631_v44 = vpop.permute.xlu0 %630 }
  0xa3   : > { %vm901_vm11 = vcmp.eq.s32.totalorder %v5376_v17, %v635_v43  ;;  %vm900_vm12 = vcmp.eq.s32.totalorder %v5376_v17, %v631_v44  ;;  %5047 = vmatprep.mubr.msk.bf16.mxu1 %vm1272_vm4, %v1242_v42  ;;  %v5494_v42 = vrot.slane %v5336_v6, %v7649_v36 }
  0xa4   : > { %v4776_v45 = vsel %vm901_vm11, 1.0, %v7651_v5  ;;  %v4775_v46 = vsel %vm900_vm12, 1.0, %v7651_v5  ;;  %331 = vbcast.lane.b32.xlu1 %v5372_v15, 344 }
  0xa5   : > { %v1243_v47 = vpack.c.bf16 %v4776_v45, %v4775_v46  ;;  %335 = vbcast.lane.b32.xlu0 %v5372_v15, 352 }
  0xa6   : > { %v643_v49 = vpop.permute.xlu1 %642  ;;  %v639_v50 = vpop.permute.xlu0 %638 }
  0xa7   : > { %vm903_vm13 = vcmp.eq.s32.totalorder %v5376_v17, %v643_v49  ;;  %vm902_vm14 = vcmp.eq.s32.totalorder %v5376_v17, %v639_v50 }
  0xa8   : > { %v4778_v51 = vsel %vm903_vm13, 1.0, %v7651_v5  ;;  %v4777_v52 = vsel %vm902_vm14, 1.0, %v7651_v5  ;;  %5048 = vmatmul.mubr.msk.bf16.gmra.mxu1 %vm1272_vm4, %v1243_v47  ;;  %339 = vbcast.lane.b32.xlu1 %v5372_v15, 360 }
  0xa9   : > { %v1244_v53 = vpack.c.bf16 %v4778_v51, %v4777_v52  ;;  %343 = vbcast.lane.b32.xlu0 %v5372_v15, 368 }
  0xaa   : > { %v651_v55 = vpop.permute.xlu1 %650  ;;  %v647_v56 = vpop.permute.xlu0 %646 }
  0xab   : > { %vm905_vm15 = vcmp.eq.s32.totalorder %v5376_v17, %v651_v55  ;;  %vm904_vm0 = vcmp.eq.s32.totalorder %v5376_v17, %v647_v56  ;;  %5051 = vmatprep.mubr.msk.bf16.mxu1 %vm1272_vm4, %v1244_v53 }
  0xac   : > { %v4780_v57 = vsel %vm905_vm15, 1.0, %v7651_v5  ;;  %v4779_v58 = vsel %vm904_vm0, 1.0, %v7651_v5  ;;  %347 = vbcast.lane.b32.xlu1 %v5372_v15, 376 }
  0xad   : > { %v1245_v59 = vpack.c.bf16 %v4780_v57, %v4779_v58  ;;  %354 = vbcast.lane.b32.xlu0 %v5432_v54, 256 }
  0xae   : > { %v659_v60 = vpop.permute.xlu1 %658  ;;  %v655_v61 = vpop.permute.xlu0 %654 }
  0xaf   : > { %vm907_vm1 = vcmp.eq.s32.totalorder %v5376_v17, %v659_v60  ;;  %vm906_vm2 = vcmp.eq.s32.totalorder %v5376_v17, %v655_v61 }
  0xb0   : > { %v4782_v62 = vsel %vm907_vm1, 1.0, %v7651_v5  ;;  %v4781_v63 = vsel %vm906_vm2, 1.0, %v7651_v5  ;;  %5052 = vmatmul.mubr.msk.bf16.gmra.mxu1 %vm1272_vm4, %v1245_v59  ;;  %358 = vbcast.lane.b32.xlu1 %v5432_v54, 264 }
  0xb1   : > { %v1246_v0 = vpack.c.bf16 %v4782_v62, %v4781_v63  ;;  %362 = vbcast.lane.b32.xlu0 %v5432_v54, 272 }
  0xb2   : > { %v667_v1 = vpop.permute.xlu1 %666  ;;  %v663_v2 = vpop.permute.xlu0 %662 }
  0xb3   : > { %vm909_vm3 = vcmp.eq.s32.totalorder %v5376_v17, %v667_v1  ;;  %vm908_vm5 = vcmp.eq.s32.totalorder %v5376_v17, %v663_v2  ;;  %5055 = vmatprep.mubr.msk.bf16.mxu1 %vm1272_vm4, %v1246_v0 }
  0xb4   : > { %v4784_v9 = vsel %vm909_vm3, 1.0, %v7651_v5  ;;  %v4783_v11 = vsel %vm908_vm5, 1.0, %v7651_v5  ;;  %366 = vbcast.lane.b32.xlu1 %v5432_v54, 280 }
  0xb5   : > { %v1247_v13 = vpack.c.bf16 %v4784_v9, %v4783_v11  ;;  %370 = vbcast.lane.b32.xlu0 %v5432_v54, 288 }
  0xb6   : > { %v675_v15 = vpop.permute.xlu1 %674  ;;  %v671_v16 = vpop.permute.xlu0 %670 }
  0xb7   : > { %vm911_vm6 = vcmp.eq.s32.totalorder %v5376_v17, %v675_v15  ;;  %vm910_vm7 = vcmp.eq.s32.totalorder %v5376_v17, %v671_v16 }
  0xb8   : > { %v4786_v18 = vsel %vm911_vm6, 1.0, %v7651_v5  ;;  %v4785_v19 = vsel %vm910_vm7, 1.0, %v7651_v5  ;;  %5056 = vmatmul.mubr.msk.bf16.gmra.mxu1 %vm1272_vm4, %v1247_v13  ;;  %374 = vbcast.lane.b32.xlu1 %v5432_v54, 296 }
  0xb9   : > { %v1248_v20 = vpack.c.bf16 %v4786_v18, %v4785_v19  ;;  %378 = vbcast.lane.b32.xlu0 %v5432_v54, 304 }
  0xba   : > { %v683_v21 = vpop.permute.xlu1 %682  ;;  %v679_v22 = vpop.permute.xlu0 %678 }
  0xbb   : > { %vm913_vm8 = vcmp.eq.s32.totalorder %v5376_v17, %v683_v21  ;;  %vm912_vm9 = vcmp.eq.s32.totalorder %v5376_v17, %v679_v22  ;;  %5059 = vmatprep.mubr.msk.bf16.mxu1 %vm1272_vm4, %v1248_v20 }
  0xbc   : > { %v4788_v23 = vsel %vm913_vm8, 1.0, %v7651_v5  ;;  %v4787_v24 = vsel %vm912_vm9, 1.0, %v7651_v5  ;;  %382 = vbcast.lane.b32.xlu1 %v5432_v54, 312 }
  0xbd   : > { %v1249_v25 = vpack.c.bf16 %v4788_v23, %v4787_v24  ;;  %386 = vbcast.lane.b32.xlu0 %v5432_v54, 320 }
  0xbe   : > { %v694_v26 = vpop.permute.xlu1 %693  ;;  %v690_v27 = vpop.permute.xlu0 %689 }
  0xbf   : > { %vm915_vm10 = vcmp.eq.s32.totalorder %v5376_v17, %v694_v26  ;;  %vm914_vm11 = vcmp.eq.s32.totalorder %v5376_v17, %v690_v27 }
  0xc0   : > { %v4790_v28 = vsel %vm915_vm10, 1.0, %v7651_v5  ;;  %v4789_v29 = vsel %vm914_vm11, 1.0, %v7651_v5  ;;  %5060 = vmatmul.mubr.msk.bf16.gmra.mxu1 %vm1272_vm4, %v1249_v25  ;;  %390 = vbcast.lane.b32.xlu1 %v5432_v54, 328  ;;  %v7648_v25 = vsub.s32 3, %v5322_v3 }
  0xc1   : > { %v1250_v30 = vpack.c.bf16 %v4790_v28, %v4789_v29  ;;  %394 = vbcast.lane.b32.xlu0 %v5432_v54, 336 }
  0xc2   : > { %v702_v31 = vpop.permute.xlu1 %701  ;;  %v698_v32 = vpop.permute.xlu0 %697 }
  0xc3   : > { %vm917_vm12 = vcmp.eq.s32.totalorder %v5376_v17, %v702_v31  ;;  %vm916_vm13 = vcmp.eq.s32.totalorder %v5376_v17, %v698_v32  ;;  %5063 = vmatprep.mubr.msk.bf16.mxu1 %vm1272_vm4, %v1250_v30  ;;  %v5556_v31 = vrot.slane %v5336_v6, %v7648_v25 }
  0xc4   : > { %v4792_v33 = vsel %vm917_vm12, 1.0, %v7651_v5  ;;  %v4791_v34 = vsel %vm916_vm13, 1.0, %v7651_v5  ;;  %398 = vbcast.lane.b32.xlu1 %v5432_v54, 344 }
  0xc5   : > { %v1251_v35 = vpack.c.bf16 %v4792_v33, %v4791_v34  ;;  %402 = vbcast.lane.b32.xlu0 %v5432_v54, 352 }
  0xc6   : > { %v710_v37 = vpop.permute.xlu1 %709  ;;  %v706_v38 = vpop.permute.xlu0 %705 }
  0xc7   : > { %vm919_vm14 = vcmp.eq.s32.totalorder %v5376_v17, %v710_v37  ;;  %vm918_vm15 = vcmp.eq.s32.totalorder %v5376_v17, %v706_v38 }
  0xc8   : > { %v4794_v39 = vsel %vm919_vm14, 1.0, %v7651_v5  ;;  %v4793_v40 = vsel %vm918_vm15, 1.0, %v7651_v5  ;;  %5064 = vmatmul.mubr.msk.bf16.gmra.mxu1 %vm1272_vm4, %v1251_v35  ;;  %406 = vbcast.lane.b32.xlu1 %v5432_v54, 360 }
  0xc9   : > { %v1252_v41 = vpack.c.bf16 %v4794_v39, %v4793_v40  ;;  %410 = vbcast.lane.b32.xlu0 %v5432_v54, 368 }
  0xca   : > { %v718_v43 = vpop.permute.xlu1 %717  ;;  %v714_v44 = vpop.permute.xlu0 %713 }
  0xcb   : > { %vm921_vm0 = vcmp.eq.s32.totalorder %v5376_v17, %v718_v43  ;;  %vm920_vm1 = vcmp.eq.s32.totalorder %v5376_v17, %v714_v44  ;;  %5067 = vmatprep.mubr.msk.bf16.mxu1 %vm1272_vm4, %v1252_v41 }
  0xcc   : > { %v4796_v45 = vsel %vm921_vm0, 1.0, %v7651_v5  ;;  %v4795_v46 = vsel %vm920_vm1, 1.0, %v7651_v5  ;;  %414 = vbcast.lane.b32.xlu1 %v5432_v54, 376 }
  0xcd   : > { %v1253_v47 = vpack.c.bf16 %v4796_v45, %v4795_v46  ;;  %421 = vbcast.lane.b32.xlu0 %v5494_v42, 256 }
  0xce   : > { %v726_v49 = vpop.permute.xlu1 %725  ;;  %v722_v50 = vpop.permute.xlu0 %721 }
  0xcf   : > { %vm923_vm2 = vcmp.eq.s32.totalorder %v5376_v17, %v726_v49  ;;  %vm922_vm3 = vcmp.eq.s32.totalorder %v5376_v17, %v722_v50 }
  0xd0   : > { %v4798_v51 = vsel %vm923_vm2, 1.0, %v7651_v5  ;;  %v4797_v52 = vsel %vm922_vm3, 1.0, %v7651_v5  ;;  %5068 = vmatmul.mubr.msk.bf16.gmra.mxu1 %vm1272_vm4, %v1253_v47  ;;  %425 = vbcast.lane.b32.xlu1 %v5494_v42, 264 }
  0xd1   : > { %v1254_v53 = vpack.c.bf16 %v4798_v51, %v4797_v52  ;;  %429 = vbcast.lane.b32.xlu0 %v5494_v42, 272 }
  0xd2   : > { %v734_v54 = vpop.permute.xlu1 %733  ;;  %v730_v55 = vpop.permute.xlu0 %729 }
  0xd3   : > { %vm925_vm5 = vcmp.eq.s32.totalorder %v5376_v17, %v734_v54  ;;  %vm924_vm6 = vcmp.eq.s32.totalorder %v5376_v17, %v730_v55  ;;  %5071 = vmatprep.mubr.msk.bf16.mxu1 %vm1272_vm4, %v1254_v53 }
  0xd4   : > { %v4800_v56 = vsel %vm925_vm5, 1.0, %v7651_v5  ;;  %v4799_v57 = vsel %vm924_vm6, 1.0, %v7651_v5  ;;  %433 = vbcast.lane.b32.xlu1 %v5494_v42, 280 }
  0xd5   : > { %v1255_v58 = vpack.c.bf16 %v4800_v56, %v4799_v57  ;;  %437 = vbcast.lane.b32.xlu0 %v5494_v42, 288 }
  0xd6   : > { %v742_v59 = vpop.permute.xlu1 %741  ;;  %v738_v60 = vpop.permute.xlu0 %737 }
  0xd7   : > { %vm927_vm7 = vcmp.eq.s32.totalorder %v5376_v17, %v742_v59  ;;  %vm926_vm8 = vcmp.eq.s32.totalorder %v5376_v17, %v738_v60 }
  0xd8   : > { %v4802_v61 = vsel %vm927_vm7, 1.0, %v7651_v5  ;;  %v4801_v62 = vsel %vm926_vm8, 1.0, %v7651_v5  ;;  %5072 = vmatmul.mubr.msk.bf16.gmra.mxu1 %vm1272_vm4, %v1255_v58  ;;  %441 = vbcast.lane.b32.xlu1 %v5494_v42, 296 }
  0xd9   : > { %v1256_v63 = vpack.c.bf16 %v4802_v61, %v4801_v62  ;;  %445 = vbcast.lane.b32.xlu0 %v5494_v42, 304 }
  0xda   : > { %v750_v0 = vpop.permute.xlu1 %749  ;;  %v746_v1 = vpop.permute.xlu0 %745 }
  0xdb   : > { %vm929_vm9 = vcmp.eq.s32.totalorder %v5376_v17, %v750_v0  ;;  %vm928_vm10 = vcmp.eq.s32.totalorder %v5376_v17, %v746_v1  ;;  %5075 = vmatprep.mubr.msk.bf16.mxu1 %vm1272_vm4, %v1256_v63 }
  0xdc   : > { %v4804_v2 = vsel %vm929_vm9, 1.0, %v7651_v5  ;;  %v4803_v9 = vsel %vm928_vm10, 1.0, %v7651_v5  ;;  %449 = vbcast.lane.b32.xlu1 %v5494_v42, 312 }
  0xdd   : > { %v1257_v11 = vpack.c.bf16 %v4804_v2, %v4803_v9  ;;  %453 = vbcast.lane.b32.xlu0 %v5494_v42, 320 }
  0xde   : > { %v761_v13 = vpop.permute.xlu1 %760  ;;  %v757_v15 = vpop.permute.xlu0 %756 }
  0xdf   : > { %vm931_vm11 = vcmp.eq.s32.totalorder %v5376_v17, %v761_v13  ;;  %vm930_vm12 = vcmp.eq.s32.totalorder %v5376_v17, %v757_v15 }
  0xe0   : > { %v4806_v16 = vsel %vm931_vm11, 1.0, %v7651_v5  ;;  %v4805_v18 = vsel %vm930_vm12, 1.0, %v7651_v5  ;;  %5076 = vmatmul.mubr.msk.bf16.gmra.mxu1 %vm1272_vm4, %v1257_v11  ;;  %457 = vbcast.lane.b32.xlu1 %v5494_v42, 328 }
  0xe1   : > { %v1258_v19 = vpack.c.bf16 %v4806_v16, %v4805_v18  ;;  %461 = vbcast.lane.b32.xlu0 %v5494_v42, 336 }
  0xe2   : > { %v769_v20 = vpop.permute.xlu1 %768  ;;  %v765_v21 = vpop.permute.xlu0 %764 }
  0xe3   : > { %vm933_vm13 = vcmp.eq.s32.totalorder %v5376_v17, %v769_v20  ;;  %vm932_vm14 = vcmp.eq.s32.totalorder %v5376_v17, %v765_v21  ;;  %5079 = vmatprep.mubr.msk.bf16.mxu1 %vm1272_vm4, %v1258_v19 }
  0xe4   : > { %v4808_v22 = vsel %vm933_vm13, 1.0, %v7651_v5  ;;  %v4807_v23 = vsel %vm932_vm14, 1.0, %v7651_v5  ;;  %465 = vbcast.lane.b32.xlu1 %v5494_v42, 344  ;;  %vm5228_vm13 = vmmov 0  }
  0xe5   : > { %v1259_v24 = vpack.c.bf16 %v4808_v22, %v4807_v23  ;;  %469 = vbcast.lane.b32.xlu0 %v5494_v42, 352 }
  0xe6   : > { %v777_v26 = vpop.permute.xlu1 %776  ;;  %v773_v27 = vpop.permute.xlu0 %772 }
  0xe7   : > { %vm935_vm15 = vcmp.eq.s32.totalorder %v5376_v17, %v777_v26  ;;  %vm934_vm0 = vcmp.eq.s32.totalorder %v5376_v17, %v773_v27 }
  0xe8   : > { %v4810_v28 = vsel %vm935_vm15, 1.0, %v7651_v5  ;;  %v4809_v29 = vsel %vm934_vm0, 1.0, %v7651_v5  ;;  %5080 = vmatmul.mubr.msk.bf16.gmra.mxu1 %vm1272_vm4, %v1259_v24  ;;  %473 = vbcast.lane.b32.xlu1 %v5494_v42, 360 }
  0xe9   : > { %v1260_v30 = vpack.c.bf16 %v4810_v28, %v4809_v29  ;;  %477 = vbcast.lane.b32.xlu0 %v5494_v42, 368 }
  0xea   : > { %v785_v32 = vpop.permute.xlu1 %784  ;;  %v781_v33 = vpop.permute.xlu0 %780 }
  0xeb   : > { %vm937_vm1 = vcmp.eq.s32.totalorder %v5376_v17, %v785_v32  ;;  %vm936_vm2 = vcmp.eq.s32.totalorder %v5376_v17, %v781_v33  ;;  %5083 = vmatprep.mubr.msk.bf16.mxu1 %vm1272_vm4, %v1260_v30 }
  0xec   : > { %v4812_v34 = vsel %vm937_vm1, 1.0, %v7651_v5  ;;  %v4811_v35 = vsel %vm936_vm2, 1.0, %v7651_v5  ;;  %481 = vbcast.lane.b32.xlu1 %v5494_v42, 376 }
  0xed   : > { %v1261_v37 = vpack.c.bf16 %v4812_v34, %v4811_v35  ;;  %488 = vbcast.lane.b32.xlu0 %v5556_v31, 256 }
  0xee   : > { %v793_v38 = vpop.permute.xlu1 %792  ;;  %v789_v6 = vpop.permute.xlu0 %788 }
  0xef   : > { %vm939_vm3 = vcmp.eq.s32.totalorder %v5376_v17, %v793_v38  ;;  %vm938_vm5 = vcmp.eq.s32.totalorder %v5376_v17, %v789_v6 }
  0xf0   : > { %v4814_v39 = vsel %vm939_vm3, 1.0, %v7651_v5  ;;  %v4813_v40 = vsel %vm938_vm5, 1.0, %v7651_v5  ;;  %5084 = vmatmul.mubr.msk.bf16.gmra.mxu1 %vm1272_vm4, %v1261_v37  ;;  %492 = vbcast.lane.b32.xlu1 %v5556_v31, 264 }
  0xf1   : > { %v1262_v41 = vpack.c.bf16 %v4814_v39, %v4813_v40  ;;  %496 = vbcast.lane.b32.xlu0 %v5556_v31, 272 }
  0xf2   : > { %v801_v42 = vpop.permute.xlu1 %800  ;;  %v797_v43 = vpop.permute.xlu0 %796 }
  0xf3   : > { %vm941_vm6 = vcmp.eq.s32.totalorder %v5376_v17, %v801_v42  ;;  %vm940_vm7 = vcmp.eq.s32.totalorder %v5376_v17, %v797_v43  ;;  %5087 = vmatprep.mubr.msk.bf16.mxu1 %vm1272_vm4, %v1262_v41 }
  0xf4   : > { %v4816_v44 = vsel %vm941_vm6, 1.0, %v7651_v5  ;;  %v4815_v45 = vsel %vm940_vm7, 1.0, %v7651_v5  ;;  %500 = vbcast.lane.b32.xlu1 %v5556_v31, 280 }
  0xf5   : > { %v1263_v46 = vpack.c.bf16 %v4816_v44, %v4815_v45  ;;  %504 = vbcast.lane.b32.xlu0 %v5556_v31, 288 }
  0xf6   : > { %v809_v47 = vpop.permute.xlu1 %808  ;;  %v805_v49 = vpop.permute.xlu0 %804 }
  0xf7   : > { %vm943_vm8 = vcmp.eq.s32.totalorder %v5376_v17, %v809_v47  ;;  %vm942_vm9 = vcmp.eq.s32.totalorder %v5376_v17, %v805_v49 }
  0xf8   : > { %v4818_v50 = vsel %vm943_vm8, 1.0, %v7651_v5  ;;  %v4817_v51 = vsel %vm942_vm9, 1.0, %v7651_v5  ;;  %5088 = vmatmul.mubr.msk.bf16.gmra.mxu1 %vm1272_vm4, %v1263_v46  ;;  %508 = vbcast.lane.b32.xlu1 %v5556_v31, 296 }
  0xf9   : > { %v1264_v52 = vpack.c.bf16 %v4818_v50, %v4817_v51  ;;  %512 = vbcast.lane.b32.xlu0 %v5556_v31, 304 }
  0xfa   : > { %v817_v53 = vpop.permute.xlu1 %816  ;;  %v813_v54 = vpop.permute.xlu0 %812 }
  0xfb   : > { %vm945_vm10 = vcmp.eq.s32.totalorder %v5376_v17, %v817_v53  ;;  %vm944_vm11 = vcmp.eq.s32.totalorder %v5376_v17, %v813_v54  ;;  %5091 = vmatprep.mubr.msk.bf16.mxu1 %vm1272_vm4, %v1264_v52 }
  0xfc   : > { %v4820_v55 = vsel %vm945_vm10, 1.0, %v7651_v5  ;;  %v4819_v56 = vsel %vm944_vm11, 1.0, %v7651_v5  ;;  %516 = vbcast.lane.b32.xlu1 %v5556_v31, 312 }
  0xfd   : > { %v1265_v57 = vpack.c.bf16 %v4820_v55, %v4819_v56  ;;  %520 = vbcast.lane.b32.xlu0 %v5556_v31, 320 }
  0xfe   : > { %v288_v58 = vpop.permute.xlu1 %287 }
  0xff   : > { %vm818_vm12 = vcmp.eq.s32.totalorder %v5376_v17, %v288_v58 }
 0x100   : > { %5092 = vmatmul.mubr.msk.bf16.gmra.mxu1 %vm1272_vm4, %v1265_v57  ;;  %524 = vbcast.lane.b32.xlu1 %v5556_v31, 328  ;;  %v4693_v60 = vsel %vm818_vm12, 1.0, %v7651_v5 }
 0x101   : > { %5097 = vmatprep.mubr.msk.bf16.mxu1 %vm5228_vm13, %v7651_v5  ;;  %528 = vbcast.lane.b32.xlu0 %v5556_v31, 336 }
 0x102   : > { %v292_v59 = vpop.permute.xlu1 %291 }
 0x103   : > { %vm819_vm14 = vcmp.eq.s32.totalorder %v5376_v17, %v292_v59 }
 0x104   : > { %532 = vbcast.lane.b32.xlu1 %v5556_v31, 344  ;;  %v4694_v61 = vsel %vm819_vm14, 1.0, %v7651_v5 }
 0x105   : > { %536 = vbcast.lane.b32.xlu0 %v5556_v31, 352  ;;  %v1202_v62 = vpack.c.bf16 %v4694_v61, %v4693_v60 }
 0x106   : > { %v300_v63 = vpop.permute.xlu1 %299 }
 0x107   : > { %v2012_v0 = vpop.permute.xlu0 %2011  ;;  %4967 = vmatprep.mubr.msk.bf16.mxu0 %vm1272_vm4, %v1202_v62  ;;  %vm821_vm0 = vcmp.eq.s32.totalorder %v5376_v17, %v300_v63 }
 0x108   : > { %vm2013_vm15 = vcmp.eq.s32.totalorder %v5376_v17, %v2012_v0  ;;  %540 = vbcast.lane.b32.xlu1 %v5556_v31, 360  ;;  %v4696_v13 = vsel %vm821_vm0, 1.0, %v7651_v5 }
 0x109   : > { %v4886_v1 = vsel %vm2013_vm15, 1.0, %v7651_v5  ;;  %544 = vbcast.lane.b32.xlu0 %v5556_v31, 368 }
 0x10a   : > { %v2016_v2 = vpack.c.bf16 %v4886_v1, %v4886_v1  ;;  %v308_v9 = vpop.permute.xlu1 %307 }
 0x10b   : > { %v296_v11 = vpop.permute.xlu0 %295  ;;  %vm823_vm2 = vcmp.eq.s32.totalorder %v5376_v17, %v308_v9 }
 0x10c   : > { %5098 = vmatmul.mubr.msk.bf16.vlgmr.msra.gmra.mxu1 %vm1272_vm4, %v2016_v2  ;;  %vm820_vm1 = vcmp.eq.s32.totalorder %v5376_v17, %v296_v11  ;;  %548 = vbcast.lane.b32.xlu1 %v5556_v31, 376  ;;  %v4698_v20 = vsel %vm823_vm2, 1.0, %v7651_v5 }
 0x10d   : > { %v4695_v15 = vsel %vm820_vm1, 1.0, %v7651_v5  ;;  %555 = vbcast.lane.b32.xlu0 %v5341_v7, 256  ;;  %5103 = vmatprep.mubr.msk.bf16.mxu1 %vm5228_vm13, %v7651_v5 }
 0x10e   : > { %v1203_v16 = vpack.c.bf16 %v4696_v13, %v4695_v15  ;;  %v316_v18 = vpop.permute.xlu1 %315 }
 0x10f   : > { %v304_v19 = vpop.permute.xlu0 %303  ;;  %vm825_vm5 = vcmp.eq.s32.totalorder %v5376_v17, %v316_v18 }
 0x110   : > { %vm822_vm3 = vcmp.eq.s32.totalorder %v5376_v17, %v304_v19  ;;  %4968 = vmatmul.mubr.msk.bf16.vlgmr.msra.gmra.mxu0 %vm1272_vm4, %v1203_v16  ;;  %559 = vbcast.lane.b32.xlu1 %v5341_v7, 264  ;;  %v4700_v26 = vsel %vm825_vm5, 1.0, %v7651_v5 }
 0x111   : > { %v4697_v21 = vsel %vm822_vm3, 1.0, %v7651_v5  ;;  %563 = vbcast.lane.b32.xlu0 %v5341_v7, 272 }
 0x112   : > { %v1204_v22 = vpack.c.bf16 %v4698_v20, %v4697_v21  ;;  %v324_v23 = vpop.permute.xlu1 %323 }
 0x113   : > { %v312_v24 = vpop.permute.xlu0 %311  ;;  %vm827_vm7 = vcmp.eq.s32.totalorder %v5376_v17, %v324_v23 }
 0x114   : > { %vm824_vm6 = vcmp.eq.s32.totalorder %v5376_v17, %v312_v24  ;;  %4971 = vmatprep.mubr.msk.bf16.mxu0 %vm1272_vm4, %v1204_v22  ;;  %567 = vbcast.lane.b32.xlu1 %v5341_v7, 280  ;;  %v4702_v31 = vsel %vm827_vm7, 1.0, %v7651_v5 }
 0x115   : > { %v4699_v27 = vsel %vm824_vm6, 1.0, %v7651_v5  ;;  %571 = vbcast.lane.b32.xlu0 %v5341_v7, 288 }
 0x116   : > { %v1205_v28 = vpack.c.bf16 %v4700_v26, %v4699_v27  ;;  %v332_v29 = vpop.permute.xlu1 %331 }
 0x117   : > { %v320_v30 = vpop.permute.xlu0 %319  ;;  %vm829_vm9 = vcmp.eq.s32.totalorder %v5376_v17, %v332_v29 }
 0x118   : > { %vm826_vm8 = vcmp.eq.s32.totalorder %v5376_v17, %v320_v30  ;;  %4972 = vmatmul.mubr.msk.bf16.gmra.mxu0 %vm1272_vm4, %v1205_v28  ;;  %575 = vbcast.lane.b32.xlu1 %v5341_v7, 296  ;;  %v4704_v37 = vsel %vm829_vm9, 1.0, %v7651_v5 }
 0x119   : > { %v4701_v32 = vsel %vm826_vm8, 1.0, %v7651_v5  ;;  %579 = vbcast.lane.b32.xlu0 %v5341_v7, 304 }
 0x11a   : > { %v1206_v33 = vpack.c.bf16 %v4702_v31, %v4701_v32  ;;  %v340_v34 = vpop.permute.xlu1 %339 }
 0x11b   : > { %v328_v35 = vpop.permute.xlu0 %327  ;;  %vm831_vm11 = vcmp.eq.s32.totalorder %v5376_v17, %v340_v34 }
 0x11c   : > { %vm828_vm10 = vcmp.eq.s32.totalorder %v5376_v17, %v328_v35  ;;  %4975 = vmatprep.mubr.msk.bf16.mxu0 %vm1272_vm4, %v1206_v33  ;;  %583 = vbcast.lane.b32.xlu1 %v5341_v7, 312  ;;  %v4706_v41 = vsel %vm831_vm11, 1.0, %v7651_v5 }
 0x11d   : > { %v4703_v38 = vsel %vm828_vm10, 1.0, %v7651_v5 }
 0x11e   : > { %v1207_v6 = vpack.c.bf16 %v4704_v37, %v4703_v38  ;;  %v348_v39 = vpop.permute.xlu1 %347  ;;  %v2061_v38 = vld [vmem:[%s7640_s3] sm:$0x3] }
 0x11f   : > { %v336_v40 = vpop.permute.xlu0 %335  ;;  %vm833_vm14 = vcmp.eq.s32.totalorder %v5376_v17, %v348_v39 }
 0x120   : > { %vm830_vm12 = vcmp.eq.s32.totalorder %v5376_v17, %v336_v40  ;;  %4976 = vmatmul.mubr.msk.bf16.gmra.mxu0 %vm1272_vm4, %v1207_v6  ;;  %v4708_v7 = vsel %vm833_vm14, 1.0, %v7651_v5 }
 0x121   : > { %v4705_v42 = vsel %vm830_vm12, 1.0, %v7651_v5 }
 0x122   : > { %v1208_v43 = vpack.c.bf16 %v4706_v41, %v4705_v42  ;;  %v359_v44 = vpop.permute.xlu1 %358 }
 0x123   : > { %v344_v45 = vpop.permute.xlu0 %343  ;;  %vm835_vm0 = vcmp.eq.s32.totalorder %v5376_v17, %v359_v44 }
 0x124   : > { %vm832_vm15 = vcmp.eq.s32.totalorder %v5376_v17, %v344_v45  ;;  %4979 = vmatprep.mubr.msk.bf16.mxu0 %vm1272_vm4, %v1208_v43  ;;  %v4710_v51 = vsel %vm835_vm0, 1.0, %v7651_v5 }
 0x125   : > { %v4707_v46 = vsel %vm832_vm15, 1.0, %v7651_v5 }
 0x126   : > { %v1209_v47 = vpack.c.bf16 %v4708_v7, %v4707_v46  ;;  %v367_v49 = vpop.permute.xlu1 %366 }
 0x127   : > { %v355_v50 = vpop.permute.xlu0 %354  ;;  %vm837_vm2 = vcmp.eq.s32.totalorder %v5376_v17, %v367_v49 }
 0x128   : > { %vm834_vm1 = vcmp.eq.s32.totalorder %v5376_v17, %v355_v50  ;;  %4980 = vmatmul.mubr.msk.bf16.gmra.mxu0 %vm1272_vm4, %v1209_v47  ;;  %v4712_v56 = vsel %vm837_vm2, 1.0, %v7651_v5 }
 0x129   : > { %v4709_v52 = vsel %vm834_vm1, 1.0, %v7651_v5 }
 0x12a   : > { %v1210_v53 = vpack.c.bf16 %v4710_v51, %v4709_v52  ;;  %v375_v54 = vpop.permute.xlu1 %374 }
 0x12b   : > { %v363_v55 = vpop.permute.xlu0 %362  ;;  %vm839_vm5 = vcmp.eq.s32.totalorder %v5376_v17, %v375_v54 }
 0x12c   : > { %vm836_vm3 = vcmp.eq.s32.totalorder %v5376_v17, %v363_v55  ;;  %4983 = vmatprep.mubr.msk.bf16.mxu0 %vm1272_vm4, %v1210_v53  ;;  %v4714_v61 = vsel %vm839_vm5, 1.0, %v7651_v5 }
 0x12d   : > { %v4711_v57 = vsel %vm836_vm3, 1.0, %v7651_v5  ;;  %vm2066_vm3 = vcmask 1041408  }
 0x12e   : > { %v1211_v58 = vpack.c.bf16 %v4712_v56, %v4711_v57  ;;  %v383_v59 = vpop.permute.xlu1 %382  ;;  %v2068_v40 = vsel %vm2066_vm3, %v2061_v38, 0 }
 0x12f   : > { %v371_v60 = vpop.permute.xlu0 %370  ;;  %vm841_vm7 = vcmp.eq.s32.totalorder %v5376_v17, %v383_v59  ;;  %5102 = vmatpush3.bf16.msra.mxu1 %v2068_v40 }
 0x130   : > { %vm838_vm6 = vcmp.eq.s32.totalorder %v5376_v17, %v371_v60  ;;  %4984 = vmatmul.mubr.msk.bf16.gmra.mxu0 %vm1272_vm4, %v1211_v58  ;;  %v4716_v2 = vsel %vm841_vm7, 1.0, %v7651_v5  ;;  %5107 = vmatprep.subr.bf16.mxu1 %v7651_v5 }
 0x131   : > { %v4713_v62 = vsel %vm838_vm6, 1.0, %v7651_v5 }
 0x132   : > { %v1212_v63 = vpack.c.bf16 %v4714_v61, %v4713_v62  ;;  %v391_v0 = vpop.permute.xlu1 %390 }
 0x133   : > { %v379_v1 = vpop.permute.xlu0 %378  ;;  %vm843_vm9 = vcmp.eq.s32.totalorder %v5376_v17, %v391_v0 }
 0x134   : > { %vm840_vm8 = vcmp.eq.s32.totalorder %v5376_v17, %v379_v1  ;;  %4987 = vmatprep.mubr.msk.bf16.mxu0 %vm1272_vm4, %v1212_v63  ;;  %v4718_v16 = vsel %vm843_vm9, 1.0, %v7651_v5 }
 0x135   : > { %v4715_v9 = vsel %vm840_vm8, 1.0, %v7651_v5 }
 0x136   : > { %v1213_v11 = vpack.c.bf16 %v4716_v2, %v4715_v9  ;;  %v399_v13 = vpop.permute.xlu1 %398 }
 0x137   : > { %v387_v15 = vpop.permute.xlu0 %386  ;;  %vm845_vm11 = vcmp.eq.s32.totalorder %v5376_v17, %v399_v13 }
 0x138   : > { %vm842_vm10 = vcmp.eq.s32.totalorder %v5376_v17, %v387_v15  ;;  %4988 = vmatmul.mubr.msk.bf16.gmra.mxu0 %vm1272_vm4, %v1213_v11  ;;  %v4720_v22 = vsel %vm845_vm11, 1.0, %v7651_v5 }
 0x139   : > { %v4717_v18 = vsel %vm842_vm10, 1.0, %v7651_v5 }
 0x13a   : > { %v1214_v19 = vpack.c.bf16 %v4718_v16, %v4717_v18  ;;  %v407_v20 = vpop.permute.xlu1 %406 }
 0x13b   : > { %v395_v21 = vpop.permute.xlu0 %394  ;;  %vm847_vm14 = vcmp.eq.s32.totalorder %v5376_v17, %v407_v20 }
 0x13c   : > { %vm844_vm12 = vcmp.eq.s32.totalorder %v5376_v17, %v395_v21  ;;  %4991 = vmatprep.mubr.msk.bf16.mxu0 %vm1272_vm4, %v1214_v19  ;;  %v4722_v28 = vsel %vm847_vm14, 1.0, %v7651_v5 }
 0x13d   : > { %v4719_v23 = vsel %vm844_vm12, 1.0, %v7651_v5 }
 0x13e   : > { %v1215_v24 = vpack.c.bf16 %v4720_v22, %v4719_v23  ;;  %v415_v26 = vpop.permute.xlu1 %414 }
 0x13f   : > { %v403_v27 = vpop.permute.xlu0 %402  ;;  %vm849_vm0 = vcmp.eq.s32.totalorder %v5376_v17, %v415_v26 }
 0x140   : > { %vm846_vm15 = vcmp.eq.s32.totalorder %v5376_v17, %v403_v27  ;;  %4992 = vmatmul.mubr.msk.bf16.gmra.mxu0 %vm1272_vm4, %v1215_v24  ;;  %v4724_v33 = vsel %vm849_vm0, 1.0, %v7651_v5 }
 0x141   : > { %v4721_v29 = vsel %vm846_vm15, 1.0, %v7651_v5 }
 0x142   : > { %v1216_v30 = vpack.c.bf16 %v4722_v28, %v4721_v29  ;;  %v426_v31 = vpop.permute.xlu1 %425 }
 0x143   : > { %v411_v32 = vpop.permute.xlu0 %410  ;;  %vm851_vm2 = vcmp.eq.s32.totalorder %v5376_v17, %v426_v31 }
 0x144   : > { %vm848_vm1 = vcmp.eq.s32.totalorder %v5376_v17, %v411_v32  ;;  %4995 = vmatprep.mubr.msk.bf16.mxu0 %vm1272_vm4, %v1216_v30  ;;  %v4726_v39 = vsel %vm851_vm2, 1.0, %v7651_v5 }
 0x145   : > { %v4723_v34 = vsel %vm848_vm1, 1.0, %v7651_v5 }
 0x146   : > { %v1217_v35 = vpack.c.bf16 %v4724_v33, %v4723_v34  ;;  %v434_v37 = vpop.permute.xlu1 %433 }
 0x147   : > { %v422_v6 = vpop.permute.xlu0 %421  ;;  %vm853_vm6 = vcmp.eq.s32.totalorder %v5376_v17, %v434_v37 }
 0x148   : > { %vm850_vm5 = vcmp.eq.s32.totalorder %v5376_v17, %v422_v6  ;;  %4996 = vmatmul.mubr.msk.bf16.gmra.mxu0 %vm1272_vm4, %v1217_v35  ;;  %v4728_v45 = vsel %vm853_vm6, 1.0, %v7651_v5 }
 0x149   : > { %v4725_v41 = vsel %vm850_vm5, 1.0, %v7651_v5 }
 0x14a   : > { %v1218_v42 = vpack.c.bf16 %v4726_v39, %v4725_v41  ;;  %v442_v43 = vpop.permute.xlu1 %441 }
 0x14b   : > { %v430_v44 = vpop.permute.xlu0 %429  ;;  %vm855_vm8 = vcmp.eq.s32.totalorder %v5376_v17, %v442_v43 }
 0x14c   : > { %vm852_vm7 = vcmp.eq.s32.totalorder %v5376_v17, %v430_v44  ;;  %4999 = vmatprep.mubr.msk.bf16.mxu0 %vm1272_vm4, %v1218_v42  ;;  %v4730_v50 = vsel %vm855_vm8, 1.0, %v7651_v5 }
 0x14d   : > { %v4727_v7 = vsel %vm852_vm7, 1.0, %v7651_v5 }
 0x14e   : > { %v1219_v46 = vpack.c.bf16 %v4728_v45, %v4727_v7  ;;  %v450_v47 = vpop.permute.xlu1 %449 }
 0x14f   : > { %v438_v49 = vpop.permute.xlu0 %437  ;;  %vm857_vm10 = vcmp.eq.s32.totalorder %v5376_v17, %v450_v47 }
 0x150   : > { %vm854_vm9 = vcmp.eq.s32.totalorder %v5376_v17, %v438_v49  ;;  %5000 = vmatmul.mubr.msk.bf16.gmra.mxu0 %vm1272_vm4, %v1219_v46  ;;  %v4732_v55 = vsel %vm857_vm10, 1.0, %v7651_v5 }
 0x151   : > { %v4729_v51 = vsel %vm854_vm9, 1.0, %v7651_v5 }
 0x152   : > { %v1220_v52 = vpack.c.bf16 %v4730_v50, %v4729_v51  ;;  %v458_v53 = vpop.permute.xlu1 %457 }
 0x153   : > { %v446_v54 = vpop.permute.xlu0 %445  ;;  %vm859_vm12 = vcmp.eq.s32.totalorder %v5376_v17, %v458_v53 }
 0x154   : > { %vm856_vm11 = vcmp.eq.s32.totalorder %v5376_v17, %v446_v54  ;;  %5003 = vmatprep.mubr.msk.bf16.mxu0 %vm1272_vm4, %v1220_v52  ;;  %v4734_v60 = vsel %vm859_vm12, 1.0, %v7651_v5 }
 0x155   : > { %v4731_v56 = vsel %vm856_vm11, 1.0, %v7651_v5 }
 0x156   : > { %v1221_v57 = vpack.c.bf16 %v4732_v55, %v4731_v56  ;;  %v466_v58 = vpop.permute.xlu1 %465 }
 0x157   : > { %v454_v59 = vpop.permute.xlu0 %453  ;;  %vm861_vm15 = vcmp.eq.s32.totalorder %v5376_v17, %v466_v58 }
 0x158   : > { %v5721_v61 = vpop.f32.mrf.mxu1  ;;  %vm858_vm14 = vcmp.eq.s32.totalorder %v5376_v17, %v454_v59  ;;  %5004 = vmatmul.mubr.msk.bf16.gmra.mxu0 %vm1272_vm4, %v1221_v57  ;;  %v4736_v9 = vsel %vm861_vm15, 1.0, %v7651_v5 }
 0x159   : > { %7796 = vst [vmem:[#allocation8_spill] sm:$0xff] %v5721_v61  ;;  %v4733_v62 = vsel %vm858_vm14, 1.0, %v7651_v5 }
 0x15a   : > { %v5727_v63 = vpop.f32.mrf.mxu1  ;;  %v1222_v0 = vpack.c.bf16 %v4734_v60, %v4733_v62  ;;  %v474_v1 = vpop.permute.xlu1 %473 }
 0x15b   : > { %7797 = vst [vmem:[#allocation9_spill] sm:$0xff] %v5727_v63  ;;  %v462_v2 = vpop.permute.xlu0 %461  ;;  %vm863_vm1 = vcmp.eq.s32.totalorder %v5376_v17, %v474_v1 }
 0x15c   : > { %v5730_v11 = vpop.f32.mrf.mxu1  ;;  %vm860_vm0 = vcmp.eq.s32.totalorder %v5376_v17, %v462_v2  ;;  %5007 = vmatprep.mubr.msk.bf16.mxu0 %vm1272_vm4, %v1222_v0  ;;  %v4738_v20 = vsel %vm863_vm1, 1.0, %v7651_v5 }
 0x15d   : > { %7798 = vst [vmem:[#allocation10_spill] sm:$0xff] %v5730_v11  ;;  %v4735_v13 = vsel %vm860_vm0, 1.0, %v7651_v5 }
 0x15e   : > { %v5736_v15 = vpop.f32.mrf.mxu1  ;;  %v1223_v16 = vpack.c.bf16 %v4736_v9, %v4735_v13  ;;  %v482_v18 = vpop.permute.xlu1 %481 }
 0x15f   : > { %7799 = vst [vmem:[#allocation11_spill] sm:$0xff] %v5736_v15  ;;  %v470_v19 = vpop.permute.xlu0 %469  ;;  %vm865_vm3 = vcmp.eq.s32.totalorder %v5376_v17, %v482_v18 }
 0x160   : > { %v5739_v21 = vpop.f32.mrf.mxu1  ;;  %vm862_vm2 = vcmp.eq.s32.totalorder %v5376_v17, %v470_v19  ;;  %5008 = vmatmul.mubr.msk.bf16.gmra.mxu0 %vm1272_vm4, %v1223_v16  ;;  %v4740_v28 = vsel %vm865_vm3, 1.0, %v7651_v5 }
 0x161   : > { %7800 = vst [vmem:[#allocation12_spill] sm:$0xff] %v5739_v21  ;;  %v4737_v22 = vsel %vm862_vm2, 1.0, %v7651_v5 }
 0x162   : > { %v5745_v23 = vpop.f32.mrf.mxu1  ;;  %v1224_v24 = vpack.c.bf16 %v4738_v20, %v4737_v22  ;;  %v493_v26 = vpop.permute.xlu1 %492 }
 0x163   : > { %7801 = vst [vmem:[#allocation13_spill] sm:$0xff] %v5745_v23  ;;  %v478_v27 = vpop.permute.xlu0 %477  ;;  %vm867_vm6 = vcmp.eq.s32.totalorder %v5376_v17, %v493_v26 }
 0x164   : > { %v5748_v29 = vpop.f32.mrf.mxu1  ;;  %vm864_vm5 = vcmp.eq.s32.totalorder %v5376_v17, %v478_v27  ;;  %5011 = vmatprep.mubr.msk.bf16.mxu0 %vm1272_vm4, %v1224_v24  ;;  %v4742_v35 = vsel %vm867_vm6, 1.0, %v7651_v5 }
 0x165   : > { %7802 = vst [vmem:[#allocation14_spill] sm:$0xff] %v5748_v29  ;;  %v4739_v30 = vsel %vm864_vm5, 1.0, %v7651_v5 }
 0x166   : > { %v5754_v31 = vpop.f32.mrf.mxu1  ;;  %v1225_v32 = vpack.c.bf16 %v4740_v28, %v4739_v30  ;;  %v501_v33 = vpop.permute.xlu1 %500 }
 0x167   : > { %7803 = vst [vmem:[#allocation15_spill] sm:$0xff] %v5754_v31  ;;  %v489_v34 = vpop.permute.xlu0 %488  ;;  %vm869_vm8 = vcmp.eq.s32.totalorder %v5376_v17, %v501_v33 }
 0x168   : > { %v5757_v37 = vpop.f32.mrf.mxu1  ;;  %vm866_vm7 = vcmp.eq.s32.totalorder %v5376_v17, %v489_v34  ;;  %5012 = vmatmul.mubr.msk.bf16.gmra.mxu0 %vm1272_vm4, %v1225_v32  ;;  %v4744_v42 = vsel %vm869_vm8, 1.0, %v7651_v5 }
 0x169   : > { %7804 = vst [vmem:[#allocation16_spill] sm:$0xff] %v5757_v37  ;;  %v4741_v38 = vsel %vm866_vm7, 1.0, %v7651_v5 }
 0x16a   : > { %v5763_v6 = vpop.f32.mrf.mxu1  ;;  %v1226_v39 = vpack.c.bf16 %v4742_v35, %v4741_v38  ;;  %v509_v40 = vpop.permute.xlu1 %508 }
 0x16b   : > { %7805 = vst [vmem:[#allocation17_spill] sm:$0xff] %v5763_v6  ;;  %v497_v41 = vpop.permute.xlu0 %496  ;;  %vm871_vm10 = vcmp.eq.s32.totalorder %v5376_v17, %v509_v40 }
 0x16c   : > { %v5766_v43 = vpop.f32.mrf.mxu1  ;;  %vm868_vm9 = vcmp.eq.s32.totalorder %v5376_v17, %v497_v41  ;;  %5015 = vmatprep.mubr.msk.bf16.mxu0 %vm1272_vm4, %v1226_v39  ;;  %v4746_v49 = vsel %vm871_vm10, 1.0, %v7651_v5 }
 0x16d   : > { %7806 = vst [vmem:[#allocation18_spill] sm:$0xff] %v5766_v43  ;;  %v4743_v44 = vsel %vm868_vm9, 1.0, %v7651_v5 }
 0x16e   : > { %v5772_v45 = vpop.f32.mrf.mxu1  ;;  %v1227_v7 = vpack.c.bf16 %v4744_v42, %v4743_v44  ;;  %v517_v46 = vpop.permute.xlu1 %516 }
 0x16f   : > { %7807 = vst [vmem:[#allocation19_spill] sm:$0xff] %v5772_v45  ;;  %v505_v47 = vpop.permute.xlu0 %504  ;;  %vm873_vm12 = vcmp.eq.s32.totalorder %v5376_v17, %v517_v46 }
 0x170   : > { %v5775_v50 = vpop.f32.mrf.mxu1  ;;  %vm870_vm11 = vcmp.eq.s32.totalorder %v5376_v17, %v505_v47  ;;  %5016 = vmatmul.mubr.msk.bf16.gmra.mxu0 %vm1272_vm4, %v1227_v7  ;;  %v4748_v56 = vsel %vm873_vm12, 1.0, %v7651_v5 }
 0x171   : > { %7808 = vst [vmem:[#allocation20_spill] sm:$0xff] %v5775_v50  ;;  %v4745_v51 = vsel %vm870_vm11, 1.0, %v7651_v5 }
 0x172   : > { %v5781_v52 = vpop.f32.mrf.mxu1  ;;  %v1228_v53 = vpack.c.bf16 %v4746_v49, %v4745_v51  ;;  %v525_v54 = vpop.permute.xlu1 %524 }
 0x173   : > { %7809 = vst [vmem:[#allocation21_spill] sm:$0xff] %v5781_v52  ;;  %v513_v55 = vpop.permute.xlu0 %512  ;;  %vm875_vm15 = vcmp.eq.s32.totalorder %v5376_v17, %v525_v54 }
 0x174   : > { %v5784_v57 = vpop.f32.mrf.mxu1  ;;  %vm872_vm14 = vcmp.eq.s32.totalorder %v5376_v17, %v513_v55  ;;  %5019 = vmatprep.mubr.msk.bf16.mxu0 %vm1272_vm4, %v1228_v53  ;;  %v4750_v1 = vsel %vm875_vm15, 1.0, %v7651_v5 }
 0x175   : > { %7810 = vst [vmem:[#allocation22_spill] sm:$0xff] %v5784_v57  ;;  %v4747_v58 = vsel %vm872_vm14, 1.0, %v7651_v5 }
 0x176   : > { %v5790_v59 = vpop.f32.mrf.mxu1  ;;  %v1229_v60 = vpack.c.bf16 %v4748_v56, %v4747_v58  ;;  %v533_v62 = vpop.permute.xlu1 %532 }
 0x177   : > { %7811 = vst [vmem:[#allocation23_spill] sm:$0xff] %v5790_v59  ;;  %v521_v0 = vpop.permute.xlu0 %520  ;;  %vm877_vm1 = vcmp.eq.s32.totalorder %v5376_v17, %v533_v62 }
 0x178   : > { %v5793_v2 = vpop.f32.mrf.mxu1  ;;  %vm874_vm0 = vcmp.eq.s32.totalorder %v5376_v17, %v521_v0  ;;  %5020 = vmatmul.mubr.msk.bf16.gmra.mxu0 %vm1272_vm4, %v1229_v60  ;;  %v4752_v20 = vsel %vm877_vm1, 1.0, %v7651_v5  ;;  %vm2857_vm1 = vcmask 195712  }
 0x179   : > { %7812 = vst [vmem:[#allocation24_spill] sm:$0xff] %v5793_v2  ;;  %v4749_v9 = vsel %vm874_vm0, 1.0, %v7651_v5 }
 0x17a   : > { %v5799_v13 = vpop.f32.mrf.mxu1  ;;  %v1230_v16 = vpack.c.bf16 %v4750_v1, %v4749_v9  ;;  %v541_v18 = vpop.permute.xlu1 %540 }
 0x17b   : > { %7813 = vst [vmem:[#allocation25_spill] sm:$0xff] %v5799_v13  ;;  %v529_v19 = vpop.permute.xlu0 %528  ;;  %vm879_vm3 = vcmp.eq.s32.totalorder %v5376_v17, %v541_v18 }
 0x17c   : > { %v5802_v22 = vpop.f32.mrf.mxu1  ;;  %vm876_vm2 = vcmp.eq.s32.totalorder %v5376_v17, %v529_v19  ;;  %5023 = vmatprep.mubr.msk.bf16.mxu0 %vm1272_vm4, %v1230_v16  ;;  %v4754_v32 = vsel %vm879_vm3, 1.0, %v7651_v5  ;;  %vm2871_vm3 = vcmask 326912  }
 0x17d   : > { %7814 = vst [vmem:[#allocation26_spill] sm:$0xff] %v5802_v22  ;;  %v4751_v24 = vsel %vm876_vm2, 1.0, %v7651_v5  ;;  %vm2864_vm2 = vcmask 261312  }
 0x17e   : > { %v5808_v26 = vpop.f32.mrf.mxu1  ;;  %v1231_v27 = vpack.c.bf16 %v4752_v20, %v4751_v24  ;;  %v549_v28 = vpop.permute.xlu1 %548 }
 0x17f   : > { %7815 = vst [vmem:[#allocation27_spill] sm:$0xff] %v5808_v26  ;;  %v537_v30 = vpop.permute.xlu0 %536  ;;  %vm881_vm6 = vcmp.eq.s32.totalorder %v5376_v17, %v549_v28 }
 0x180   : > { %v5811_v33 = vpop.f32.mrf.mxu1  ;;  %vm878_vm5 = vcmp.eq.s32.totalorder %v5376_v17, %v537_v30  ;;  %5024 = vmatmul.mubr.msk.bf16.gmra.mxu0 %vm1272_vm4, %v1231_v27  ;;  %v4756_v41 = vsel %vm881_vm6, 1.0, %v7651_v5  ;;  %vm7772_vm6 = vcmask 458112  }
 0x181   : > { %7816 = vst [vmem:[#allocation28_spill] sm:$0xff] %v5811_v33  ;;  %v4753_v34 = vsel %vm878_vm5, 1.0, %v7651_v5  ;;  %vm2878_vm5 = vcmask 392512  }
 0x182   : > { %v5817_v35 = vpop.f32.mrf.mxu1  ;;  %v1232_v38 = vpack.c.bf16 %v4754_v32, %v4753_v34  ;;  %v560_v39 = vpop.permute.xlu1 %559 }
 0x183   : > { %7817 = vst [vmem:[#allocation29_spill] sm:$0xff] %v5817_v35  ;;  %v545_v40 = vpop.permute.xlu0 %544  ;;  %vm883_vm8 = vcmp.eq.s32.totalorder %v5376_v17, %v560_v39 }
 0x184   : > { %v5820_v42 = vpop.f32.mrf.mxu1  ;;  %vm880_vm7 = vcmp.eq.s32.totalorder %v5376_v17, %v545_v40  ;;  %5027 = vmatprep.mubr.msk.bf16.mxu0 %vm1272_vm4, %v1232_v38  ;;  %v4758_v51 = vsel %vm883_vm8, 1.0, %v7651_v5  ;;  %vm2899_vm8 = vcmask 589312  }
 0x185   : > { %7818 = vst [vmem:[#allocation30_spill] sm:$0xff] %v5820_v42  ;;  %v4755_v44 = vsel %vm880_vm7, 1.0, %v7651_v5  ;;  %vm2892_vm7 = vcmask 523712  }
 0x186   : > { %v5826_v7 = vpop.f32.mrf.mxu1  ;;  %v1233_v46 = vpack.c.bf16 %v4756_v41, %v4755_v44  ;;  %v568_v47 = vpop.permute.xlu1 %567 }
 0x187   : > { %7819 = vst [vmem:[#allocation31_spill] sm:$0xff] %v5826_v7  ;;  %v556_v49 = vpop.permute.xlu0 %555  ;;  %vm885_vm10 = vcmp.eq.s32.totalorder %v5376_v17, %v568_v47 }
 0x188   : > { %v5829_v53 = vpop.f32.mrf.mxu1  ;;  %vm882_vm9 = vcmp.eq.s32.totalorder %v5376_v17, %v556_v49  ;;  %5028 = vmatmul.mubr.msk.bf16.gmra.mxu0 %vm1272_vm4, %v1233_v46  ;;  %v4760_v62 = vsel %vm885_vm10, 1.0, %v7651_v5  ;;  %vm2913_vm10 = vcmask 720512  }
 0x189   : > { %7820 = vst [vmem:[#allocation32_spill] sm:$0xff] %v5829_v53  ;;  %v4757_v54 = vsel %vm882_vm9, 1.0, %v7651_v5  ;;  %vm2906_vm9 = vcmask 654912  }
 0x18a   : > { %v5835_v55 = vpop.f32.mrf.mxu1  ;;  %v1234_v56 = vpack.c.bf16 %v4758_v51, %v4757_v54  ;;  %v576_v58 = vpop.permute.xlu1 %575 }
 0x18b   : > { %7821 = vst [vmem:[#allocation33_spill] sm:$0xff] %v5835_v55  ;;  %v564_v60 = vpop.permute.xlu0 %563  ;;  %vm887_vm12 = vcmp.eq.s32.totalorder %v5376_v17, %v576_v58 }
 0x18c   : > { %v5838_v0 = vpop.f32.mrf.mxu1  ;;  %vm884_vm11 = vcmp.eq.s32.totalorder %v5376_v17, %v564_v60  ;;  %5031 = vmatprep.mubr.msk.bf16.mxu0 %vm1272_vm4, %v1234_v56  ;;  %v4762_v20 = vsel %vm887_vm12, 1.0, %v7651_v5  ;;  %vm2927_vm12 = vcmask 851712  }
 0x18d   : > { %7822 = vst [vmem:[#allocation34_spill] sm:$0xff] %v5838_v0  ;;  %v4759_v1 = vsel %vm884_vm11, 1.0, %v7651_v5  ;;  %vm2920_vm11 = vcmask 786112  }
 0x18e   : > { %v5844_v9 = vpop.f32.mrf.mxu1  ;;  %v1235_v16 = vpack.c.bf16 %v4760_v62, %v4759_v1  ;;  %v584_v18 = vpop.permute.xlu1 %583 }
 0x18f   : > { %7823 = vst [vmem:[#allocation35_spill] sm:$0xff] %v5844_v9  ;;  %v572_v19 = vpop.permute.xlu0 %571  ;;  %vm889_vm15 = vcmp.eq.s32.totalorder %v5376_v17, %v584_v18 }
 0x190   : > { %v5847_v24 = vpop.f32.mrf.mxu1  ;;  %vm886_vm14 = vcmp.eq.s32.totalorder %v5376_v17, %v572_v19  ;;  %5032 = vmatmul.mubr.msk.bf16.gmra.mxu0 %vm1272_vm4, %v1235_v16  ;;  %v4764_v34 = vsel %vm889_vm15, 1.0, %v7651_v5  ;;  %vm7790_vm15 = vcmask 982912  }
 0x191   : > { %7824 = vst [vmem:[#allocation36_spill] sm:$0xff] %v5847_v24  ;;  %v4761_v27 = vsel %vm886_vm14, 1.0, %v7651_v5  ;;  %vm2934_vm14 = vcmask 917312  }
 0x192   : > { %v5853_v28 = vpop.f32.mrf.mxu1  ;;  %v1236_v30 = vpack.c.bf16 %v4762_v20, %v4761_v27 }
 0x193   : > { %7825 = vst [vmem:[#allocation37_spill] sm:$0xff] %v5853_v28  ;;  %v580_v32 = vpop.permute.xlu0 %579 }
 0x194   : > { %v5856_v38 = vpop.f32.mrf.mxu1  ;;  %vm888_vm0 = vcmp.eq.s32.totalorder %v5376_v17, %v580_v32  ;;  %5035 = vmatprep.mubr.msk.bf16.mxu0 %vm1272_vm4, %v1236_v30 }
 0x195   : > { %7826 = vst [vmem:[#allocation38_spill] sm:$0xff] %v5856_v38  ;;  %v4763_v39 = vsel %vm888_vm0, 1.0, %v7651_v5  ;;  %vm2948_vm0 = vcmask 1048512  }
 0x196   : > { %v5861_v40 = vpop.f32.mrf.mxu1  ;;  %v1237_v41 = vpack.c.bf16 %v4764_v34, %v4763_v39 }
 0x197   : > { %7827 = vst [vmem:[#allocation39_spill] sm:$0xff] %v5861_v40 }
 0x198   : > { %v5863_v44 = vpop.f32.mrf.mxu1  ;;  %5036 = vmatmul.mubr.msk.bf16.gmra.mxu0 %vm1272_vm4, %v1237_v41  ;;  %vm7789_vm4 = vcmask 31744  }
 0x199   : > { %7828 = vst [vmem:[#allocation40_spill] sm:$0xff] %v5863_v44 }
 0x19a   : > { %v5866_v46 = vpop.f32.mrf.mxu1 }
 0x19b   : > { %7829 = vst [vmem:[#allocation41_spill] sm:$0xff] %v5866_v46 }
 0x19c   : > { %v5868_v47 = vpop.f32.mrf.mxu1 }
 0x19d   : > { %7830 = vst [vmem:[#allocation42_spill] sm:$0xff] %v5868_v47 }
 0x19e   : > { %v5870_v49 = vpop.f32.mrf.mxu1 }
 0x19f   : > { %7831 = vst [vmem:[#allocation43_spill] sm:$0xff] %v5870_v49 }
 0x1a0   : > { %v5872_v51 = vpop.f32.mrf.mxu1 }
 0x1a1   : > { %7832 = vst [vmem:[#allocation44_spill] sm:$0xff] %v5872_v51 }
 0x1a2   : > { %v5874_v54 = vpop.f32.mrf.mxu1 }
 0x1a3   : > { %7833 = vst [vmem:[#allocation45_spill] sm:$0xff] %v5874_v54 }
 0x1a4   : > { %v5876_v56 = vpop.f32.mrf.mxu1 }
 0x1a5   : > { %7834 = vst [vmem:[#allocation46_spill] sm:$0xff] %v5876_v56 }
 0x1a6   : > { %v5878_v58 = vpop.f32.mrf.mxu1 }
 0x1a7   : > { %7835 = vst [vmem:[#allocation47_spill] sm:$0xff] %v5878_v58 }
 0x1a8   : > { %v5880_v60 = vpop.f32.mrf.mxu1 }
 0x1a9   : > { %7836 = vst [vmem:[#allocation48_spill] sm:$0xff] %v5880_v60 }
 0x1aa   : > { %v5882_v62 = vpop.f32.mrf.mxu1 }
 0x1ab   : > { %7837 = vst [vmem:[#allocation49_spill] sm:$0xff] %v5882_v62 }
 0x1ac   : > { %v5884_v1 = vpop.f32.mrf.mxu1 }
 0x1ad   : > { %7838 = vst [vmem:[#allocation50_spill] sm:$0xff] %v5884_v1 }
 0x1ae   : > { %v5886_v16 = vpop.f32.mrf.mxu1 }
 0x1af   : > { %7839 = vst [vmem:[#allocation51_spill] sm:$0xff] %v5886_v16 }
 0x1b0   : > { %v5888_v18 = vpop.f32.mrf.mxu1 }
 0x1b1   : > { %7840 = vst [vmem:[#allocation52_spill] sm:$0xff] %v5888_v18 }
 0x1b2   : > { %v5890_v19 = vpop.f32.mrf.mxu1 }
 0x1b3   : > { %7841 = vst [vmem:[#allocation53_spill] sm:$0xff] %v5890_v19 }
 0x1b4   : > { %v5892_v20 = vpop.f32.mrf.mxu1 }
 0x1b5   : > { %7842 = vst [vmem:[#allocation54_spill] sm:$0xff] %v5892_v20 }
 0x1b6   : > { %v5894_v27 = vpop.f32.mrf.mxu1 }
 0x1b7   : > { %7843 = vst [vmem:[#allocation55_spill] sm:$0xff] %v5894_v27 }
 0x1b8   : > { %v5896_v30 = vpop.f32.mrf.mxu1 }
 0x1b9   : > { %7844 = vst [vmem:[#allocation56_spill] sm:$0xff] %v5896_v30 }
 0x1ba   : > { %v5898_v32 = vpop.f32.mrf.mxu1 }
 0x1bb   : > { %7845 = vst [vmem:[#allocation57_spill] sm:$0xff] %v5898_v32 }
 0x1bc   : > { %v5900_v34 = vpop.f32.mrf.mxu1 }
 0x1bd   : > { %7846 = vst [vmem:[#allocation58_spill] sm:$0xff] %v5900_v34  ;;  %v7853_v34 = vmov 0.0  }
 0x1be   : > { %v5902_v39 = vpop.f32.mrf.mxu1 }
 0x1bf   : > { %7847 = vst [vmem:[#allocation59_spill] sm:$0xff] %v5902_v39 }
 0x1c0   : > { %v5904_v41 = vpop.f32.mrf.mxu1 }
 0x1c1   : > { %7848 = vst [vmem:[#allocation60_spill] sm:$0xff] %v5904_v41 }
 0x1c2   : > { %v5906_v12 = vpop.f32.mrf.mxu1 }
 0x1c3   : > { %7849 = vst [vmem:[#allocation61_spill] sm:$0xff] %v5906_v12 }
 0x1c4   : > { %v5908_v10 = vpop.f32.mrf.mxu1 }
 0x1c5   : > { %7850 = vst [vmem:[#allocation62_spill] sm:$0xff] %v5908_v10 }
 0x1c6   : > { %v5910_v8 = vpop.f32.mrf.mxu1 }
 0x1c7   : > { %7851 = vst [vmem:[#allocation63_spill] sm:$0xff] %v5910_v8 }
 0x1cc   : > { %v2054_v4 = vpop.f32.mrf.mxu1 }
 0x1cd   : > { %v2060_v25 = vpack.c.bf16 %v2054_v4, %v2054_v4 }
 0x1ce   : > { %v5099_v36 = vpop.f32.mrf.mxu1 }
 0x1cf   : > { %5104 = vmatmul.mubr.msk.bf16.vlgmr.msra.gmra.mxu1 %vm7789_vm4, %v2060_v25 }
 0x1d0   : > { %v2057_v48 = vpop.f32.mrf.mxu1  ;;  %v5913_v5 = vpop.f32.mrf.mxu0  ;;  %5109 = vmatprep.mubr.msk.bf16.mxu1 %vm5228_vm13, %v7853_v34  ;;  %vm2850_vm13 = vcmask 130112  }
 0x1d1   : > { %7852 = vst [vmem:[#allocation64_spill] sm:$0xff] %v5913_v5 }
 0x1d2   : > { %v5100_v56 = vpop.f32.mrf.mxu1  ;;  %v5917_v41 = vpop.f32.mrf.mxu0 }
 0x1d3   : > { %7854 = vst [vmem:[#allocation65_spill] sm:$0xff] %v5917_v41 }
 0x1d4   : > { %v5919_v12 = vpop.f32.mrf.mxu0 }
 0x1d5   : > { %7855 = vst [vmem:[#allocation66_spill] sm:$0xff] %v5919_v12 }
 0x1d6   : > { %v5921_v10 = vpop.f32.mrf.mxu0 }
 0x1d7   : > { %7856 = vst [vmem:[#allocation67_spill] sm:$0xff] %v5921_v10 }
 0x1d8   : > { %v5923_v8 = vpop.f32.mrf.mxu0 }
 0x1d9   : > { %7857 = vst [vmem:[#allocation68_spill] sm:$0xff] %v5923_v8 }
 0x1da   : > { %v5925_v30 = vpop.f32.mrf.mxu0 }
 0x1db   : > { %7858 = vst [vmem:[#allocation69_spill] sm:$0xff] %v5925_v30 }
 0x1dc   : > { %v5927_v4 = vpop.f32.mrf.mxu0 }
 0x1dd   : > { %7859 = vst [vmem:[#allocation70_spill] sm:$0xff] %v5927_v4 }
 0x1de   : > { %v5929_v36 = vpop.f32.mrf.mxu0 }
 0x1df   : > { %7860 = vst [vmem:[#allocation71_spill] sm:$0xff] %v5929_v36 }
 0x1e0   : > { %v5931_v48 = vpop.f32.mrf.mxu0 }
 0x1e1   : > { %7861 = vst [vmem:[#allocation72_spill] sm:$0xff] %v5931_v48 }
 0x1e2   : > { %v5933_v25 = vpop.f32.mrf.mxu0 }
 0x1e3   : > { %7862 = vst [vmem:[#allocation73_spill] sm:$0xff] %v5933_v25 }
 0x1e4   : > { %v5935_v34 = vpop.f32.mrf.mxu0 }
 0x1e5   : > { %7863 = vst [vmem:[#allocation74_spill] sm:$0xff] %v5935_v34 }
 0x1e6   : > { %v5937_v56 = vpop.f32.mrf.mxu0 }
 0x1e7   : > { %7864 = vst [vmem:[#allocation75_spill] sm:$0xff] %v5937_v56 }
 0x1e8   : > { %v5939_v62 = vpop.f32.mrf.mxu0 }
 0x1e9   : > { %7865 = vst [vmem:[#allocation76_spill] sm:$0xff] %v5939_v62 }
 0x1ea   : > { %v5941_v39 = vpop.f32.mrf.mxu0 }
 0x1eb   : > { %7866 = vst [vmem:[#allocation77_spill] sm:$0xff] %v5941_v39 }
 0x1ec   : > { %v5943_v51 = vpop.f32.mrf.mxu0 }
 0x1ed   : > { %7867 = vst [vmem:[#allocation78_spill] sm:$0xff] %v5943_v51 }
 0x1ee   : > { %v5945_v32 = vpop.f32.mrf.mxu0 }
 0x1ef   : > { %7868 = vst [vmem:[#allocation79_spill] sm:$0xff] %v5945_v32 }
 0x1f0   : > { %v5947_v33 = vpop.f32.mrf.mxu0 }
 0x1f1   : > { %7869 = vst [vmem:[#allocation80_spill] sm:$0xff] %v5947_v33 }
 0x1f2   : > { %v5949_v20 = vpop.f32.mrf.mxu0 }
 0x1f3   : > { %7870 = vst [vmem:[#allocation81_spill] sm:$0xff] %v5949_v20 }
 0x1f4   : > { %v5951_v7 = vpop.f32.mrf.mxu0 }
 0x1f5   : > { %7871 = vst [vmem:[#allocation82_spill] sm:$0xff] %v5951_v7 }
 0x1f6   : > { %v5953_v18 = vpop.f32.mrf.mxu0 }
 0x1f7   : > { %7872 = vst [vmem:[#allocation83_spill] sm:$0xff] %v5953_v18 }
 0x1f8   : > { %v5955_v27 = vpop.f32.mrf.mxu0 }
 0x1f9   : > { %7873 = vst [vmem:[#allocation84_spill] sm:$0xff] %v5955_v27 }
 0x1fa   : > { %v5957_v47 = vpop.f32.mrf.mxu0 }
 0x1fb   : > { %7874 = vst [vmem:[#allocation85_spill] sm:$0xff] %v5957_v47 }
 0x1fc   : > { %v5959_v19 = vpop.f32.mrf.mxu0 }
 0x1fd   : > { %7875 = vst [vmem:[#allocation86_spill] sm:$0xff] %v5959_v19 }
 0x1fe   : > { %v5961_v44 = vpop.f32.mrf.mxu0 }
 0x1ff   : > { %7876 = vst [vmem:[#allocation87_spill] sm:$0xff] %v5961_v44 }
 0x200   : > { %v5963_v1 = vpop.f32.mrf.mxu0 }
 0x201   : > { %7877 = vst [vmem:[#allocation88_spill] sm:$0xff] %v5963_v1 }
 0x202   : > { %v5965_v49 = vpop.f32.mrf.mxu0 }
 0x203   : > { %7878 = vst [vmem:[#allocation89_spill] sm:$0xff] %v5965_v49 }
 0x204   : > { %v5967_v60 = vpop.f32.mrf.mxu0 }
 0x205   : > { %7879 = vst [vmem:[#allocation90_spill] sm:$0xff] %v5967_v60 }
 0x206   : > { %v5969_v46 = vpop.f32.mrf.mxu0 }
 0x207   : > { %7880 = vst [vmem:[#allocation91_spill] sm:$0xff] %v5969_v46 }
 0x208   : > { %v5971_v16 = vpop.f32.mrf.mxu0 }
 0x209   : > { %7881 = vst [vmem:[#allocation92_spill] sm:$0xff] %v5971_v16 }
 0x20a   : > { %v5973_v38 = vpop.f32.mrf.mxu0 }
 0x20b   : > { %7882 = vst [vmem:[#allocation93_spill] sm:$0xff] %v5973_v38 }
 0x20c   : > { %v5975_v42 = vpop.f32.mrf.mxu0 }
 0x20d   : > { %7883 = vst [vmem:[#allocation94_spill] sm:$0xff] %v5975_v42 }
 0x20e   : > { %v5977_v24 = vpop.f32.mrf.mxu0 }
 0x20f   : > { %7884 = vst [vmem:[#allocation95_spill] sm:$0xff] %v5977_v24 }
 0x210   : > { %v5979_v58 = vpop.f32.mrf.mxu0 }
 0x211   : > { %7885 = vst [vmem:[#allocation96_spill] sm:$0xff] %v5979_v58 }
 0x212   : > { %v5981_v40 = vpop.f32.mrf.mxu0 }
 0x213   : > { %7886 = vst [vmem:[#allocation97_spill] sm:$0xff] %v5981_v40 }
 0x214   : > { %v5983_v28 = vpop.f32.mrf.mxu0 }
 0x215   : > { %7887 = vst [vmem:[#allocation98_spill] sm:$0xff] %v5983_v28 }
 0x216   : > { %v5985_v54 = vpop.f32.mrf.mxu0 }
 0x217   : > { %7888 = vst [vmem:[#allocation99_spill] sm:$0xff] %v5985_v54 }
 0x218   : > { %v5987_v0 = vpop.f32.mrf.mxu0 }
 0x219   : > { %7889 = vst [vmem:[#allocation100_spill] sm:$0xff] %v5987_v0 }
 0x21a   : > { %v5989_v35 = vpop.f32.mrf.mxu0 }
 0x21b   : > { %7890 = vst [vmem:[#allocation101_spill] sm:$0xff] %v5989_v35 }
 0x21c   : > { %v5991_v43 = vpop.f32.mrf.mxu0 }
 0x21d   : > { %7891 = vst [vmem:[#allocation102_spill] sm:$0xff] %v5991_v43 }
 0x21e   : > { %v5993_v22 = vpop.f32.mrf.mxu0 }
 0x21f   : > { %7892 = vst [vmem:[#allocation103_spill] sm:$0xff] %v5993_v22 }
 0x220   : > { %v5995_v9 = vpop.f32.mrf.mxu0 }
 0x221   : > { %7893 = vst [vmem:[#allocation104_spill] sm:$0xff] %v5995_v9 }
 0x222   : > { %v5997_v37 = vpop.f32.mrf.mxu0 }
 0x223   : > { %7894 = vst [vmem:[#allocation105_spill] sm:$0xff] %v5997_v37 }
 0x224   : > { %v5999_v2 = vpop.f32.mrf.mxu0 }
 0x225   : > { %7895 = vst [vmem:[#allocation106_spill] sm:$0xff] %v5999_v2 }
 0x226   : > { %v6001_v45 = vpop.f32.mrf.mxu0 }
 0x227   : > { %7896 = vst [vmem:[#allocation107_spill] sm:$0xff] %v6001_v45 }
 0x228   : > { %v6003_v26 = vpop.f32.mrf.mxu0 }
 0x229   : > { %7897 = vst [vmem:[#allocation108_spill] sm:$0xff] %v6003_v26  ;;  %v5229_v26 = vmov 1966171168  }
 0x22a   : > { %v6005_v31 = vpop.f32.mrf.mxu0 }
 0x22b   : > { %7898 = vst [vmem:[#allocation109_spill] sm:$0xff] %v6005_v31  ;;  %v2113_v31 = vunpack.c.l.s4 %v5229_v26 }
 0x22c   : > { %v6007_v13 = vpop.f32.mrf.mxu0 }
 0x22d   : > { %7899 = vst [vmem:[#allocation110_spill] sm:$0xff] %v6007_v13  ;;  %v2114_v13 = vunpack.c.0.s8 %v2113_v31 }
 0x22e   : > { %v6009_v23 = vpop.f32.mrf.mxu0 }
 0x22f   : > { %7900 = vst [vmem:[#allocation111_spill] sm:$0xff] %v6009_v23  ;;  %v2117_v2 = vsub.s32 %v2114_v13, %v5322_v3 }
 0x230   : > { %v6011_v57 = vpop.f32.mrf.mxu0 }
 0x231   : > { %7901 = vst [vmem:[#allocation112_spill] sm:$0xff] %v6011_v57 }
 0x232   : > { %v6013_v11 = vpop.f32.mrf.mxu0 }
 0x233   : > { %7902 = vst [vmem:[#allocation113_spill] sm:$0xff] %v6013_v11 }
 0x234   : > { %v6015_v50 = vpop.f32.mrf.mxu0 }
 0x235   : > { %7903 = vst [vmem:[#allocation114_spill] sm:$0xff] %v6015_v50 }
 0x236   : > { %v6017_v17 = vpop.f32.mrf.mxu0 }
 0x237   : > { %7904 = vst [vmem:[#allocation115_spill] sm:$0xff] %v6017_v17 }
 0x238   : > { %v6019_v61 = vpop.f32.mrf.mxu0 }
 0x239   : > { %7905 = vst [vmem:[#allocation116_spill] sm:$0xff] %v6019_v61 }
 0x23a   : > { %v6021_v59 = vpop.f32.mrf.mxu0 }
 0x23b   : > { %7906 = vst [vmem:[#allocation117_spill] sm:$0xff] %v6021_v59 }
 0x23c   : > { %v6023_v15 = vpop.f32.mrf.mxu0 }
 0x23d   : > { %7907 = vst [vmem:[#allocation118_spill] sm:$0xff] %v6023_v15 }
 0x23e   : > { %v6025_v52 = vpop.f32.mrf.mxu0 }
 0x23f   : > { %7908 = vst [vmem:[#allocation119_spill] sm:$0xff] %v6025_v52 }
 0x240   : > { %v6027_v23 = vpop.f32.mrf.mxu0 }
 0x241   : > { %7909 = vst [vmem:[#allocation120_spill] sm:$0xff] %v6027_v23 }
 0x242   : > { %v6030_v11 = vpop.f32.mrf.mxu0 }
 0x243   : > { %7910 = vst [vmem:[#allocation121_spill] sm:$0xff] %v6030_v11 }
 0x244   : > { %v6032_v55 = vpop.f32.mrf.mxu0 }
 0x245   : > { %7911 = vst [vmem:[#allocation122_spill] sm:$0xff] %v6032_v55 }
 0x246   : > { %v6034_v26 = vpop.f32.mrf.mxu0 }
 0x247   : > { %7912 = vst [vmem:[#allocation123_spill] sm:$0xff] %v6034_v26 }
 0x248   : > { %v6045_v55 = vpop.f32.mrf.mxu0 }
 0x249   : > { %7913 = vst [vmem:[#allocation124_spill] sm:$0xff] %v6045_v55 }
 0x28f   : > { %v2104_v63 = vpop.f32.mrf.mxu1 }
 0x290   : > { %v2111_v53 = vcombine.high %v2104_v63, %v2104_v63  ;;  %v2118_v9 = vrot.slane %v2104_v63, %v2117_v2 }
 0x291   : > { %v5105_v61 = vpop.f32.mrf.mxu1 }
 0x292   : > { %v2125_v59 = vrot.slane %v2111_v53, %v2117_v2  ;;  %v2134_v6 = vrot.slane %v2118_v9, %v2117_v2 }
 0x293   : > { %v2107_v15 = vpop.f32.mrf.mxu1 }
 0x294   : > { %v2127_v45 = vcombine.high %v2125_v59, %v2125_v59  ;;  %v6037_v31 = vrot.slane %v2134_v6, %v5364_v14 }
 0x295   : > { %v5106_v52 = vpop.f32.mrf.mxu1 }
 0x296   : > { %v6039_v23 = vrot.slane %v2127_v45, %v2117_v2  ;;  %v2200_v13 = vmul.f32 %v6037_v31, %v5917_v41  ;;  %v2201_v63 = vmul.f32 %v6037_v31, %v5921_v10  ;;  %v2202_v53 = vmul.f32 %v5913_v5, %v6037_v31  ;;  %v6053_v52 = vpop.f32.mrf.mxu0 }
 0x297   : > { %v2204_v45 = vmul.f32 %v6037_v31, %v5925_v30  ;;  %7914 = vst [vmem:[#allocation125_spill] sm:$0xff] %v6053_v52  ;;  %v2203_v55 = vmul.f32 %v5919_v12, %v6037_v31 }
 0x298   : > { %v2328_v61 = vsel %vm7789_vm4, %v2200_v13, 0.0  ;;  %v2331_v15 = vsel %vm7789_vm4, %v2201_v63, 0.0  ;;  %v2334_v41 = vsel %vm7789_vm4, %v2202_v53, 0.0  ;;  %v2205_v13 = vmul.f32 %v6037_v31, %v5929_v36  ;;  %v6061_v63 = vpop.f32.mrf.mxu0 }
 0x299   : > { %2329 = vadd.xlane.f32.xlu0 %v2328_v61  ;;  %2332 = vadd.xlane.f32.xlu1 %v2331_v15  ;;  %v2340_v10 = vsel %vm7789_vm4, %v2204_v45, 0.0  ;;  %7915 = vst [vmem:[#allocation126_spill] sm:$0xff] %v6061_v63  ;;  %v2156_v61 = vcombine.high %v2134_v6, %v2134_v6  ;;  %v2337_v15 = vsel %vm7789_vm4, %v2203_v55, 0.0  ;;  %v2206_v53 = vmul.f32 %v5923_v8, %v6037_v31 }
 0x29a   : > { %v2343_v30 = vsel %vm7789_vm4, %v2205_v13, 0.0  ;;  %v2208_v45 = vmul.f32 %v6037_v31, %v5933_v25  ;;  %v6069_v12 = vpop.f32.mrf.mxu0  ;;  %v2126_v36 = vcombine.high %v2118_v9, %v2118_v9  ;;  %v2209_v13 = vmul.f32 %v6037_v31, %v5937_v56 }
 0x29b   : > { %7916 = vst [vmem:[#allocation127_spill] sm:$0xff] %v6069_v12  ;;  %v2346_v6 = vsel %vm7789_vm4, %v2206_v53, 0.0  ;;  %v2210_v53 = vmul.f32 %v5931_v48, %v6037_v31  ;;  %v2213_v56 = vmul.f32 %v6037_v31, %v5945_v32  ;;  %v7928_v32 = vld [vmem:[#allocation104_spill] sm:$0xff] }
 0x29c   : > { %v2352_v55 = vsel %vm7789_vm4, %v2208_v45, 0.0 }
 0x29d   : > { %2335 = vadd.xlane.f32.xlu1 %v2334_v41  ;;  %2341 = vadd.xlane.f32.xlu0 %v2340_v10  ;;  %v6072_v10 = vrot.slane %v2156_v61, %v5364_v14  ;;  %v2207_v41 = vmul.f32 %v5927_v4, %v6037_v31  ;;  %v2355_v61 = vsel %vm7789_vm4, %v2209_v13, 0.0  ;;  %v2211_v13 = vmul.f32 %v5935_v34, %v6037_v31 }
 0x29f   : > { %v2349_v9 = vsel %vm7789_vm4, %v2207_v41, 0.0  ;;  %v2232_v45 = vmul.f32 %v6072_v10, %v5981_v40  ;;  %v2234_v48 = vmul.f32 %v5979_v58, %v6072_v10 }
 0x2a1   : > { %2338 = vadd.xlane.f32.xlu1 %v2337_v15  ;;  %2344 = vadd.xlane.f32.xlu0 %v2343_v30  ;;  %v6080_v15 = vpop.f32.mrf.mxu0  ;;  %v6082_v30 = vrot.slane %v2126_v36, %v2117_v2  ;;  %v2424_v41 = vsel %vm7789_vm4, %v2232_v45, 0.0 }
 0x2a2   : > { %7917 = vst [vmem:[#allocation128_spill] sm:$0xff] %v6080_v15 }
 0x2a3   : > { %v6090_v25 = vpop.f32.mrf.mxu0  ;;  %v6096_v36 = vrot.slane %v6082_v30, %v5364_v14 }
 0x2a4   : > { %7918 = vst [vmem:[#allocation129_spill] sm:$0xff] %v6090_v25 }
 0x2a5   : > { %2347 = vadd.xlane.f32.xlu1 %v2346_v6  ;;  %2353 = vadd.xlane.f32.xlu0 %v2352_v55  ;;  %v6092_v6 = vrot.slane %v2125_v59, %v2117_v2  ;;  %v2358_v55 = vsel %vm7789_vm4, %v2210_v53, 0.0  ;;  %v2361_v2 = vsel %vm7789_vm4, %v2211_v13, 0.0  ;;  %v2212_v53 = vmul.f32 %v6037_v31, %v5941_v39 }
 0x2a6   : > { %v2220_v45 = vmul.f32 %v6096_v36, %v5957_v47  ;;  %v2367_v13 = vsel %vm7789_vm4, %v2213_v56, 0.0 }
 0x2a7   : > { %v6108_v59 = vrot.slane %v6092_v6, %v5364_v14 }
 0x2a8   : > { %v2388_v34 = vsel %vm7789_vm4, %v2220_v45, 0.0 }
 0x2a9   : > { %2350 = vadd.xlane.f32.xlu1 %v2349_v9  ;;  %2356 = vadd.xlane.f32.xlu0 %v2355_v61  ;;  %v6104_v9 = vpop.f32.mrf.mxu0  ;;  %v2430_v61 = vsel %vm7789_vm4, %v2234_v48, 0.0 }
 0x2aa   : > { %7919 = vst [vmem:[#allocation130_spill] sm:$0xff] %v6104_v9 }
 0x2ad   : > { %2359 = vadd.xlane.f32.xlu0 %v2358_v55  ;;  %2425 = vadd.xlane.f32.xlu1 %v2424_v41  ;;  %v6116_v55 = vpop.f32.mrf.mxu0  ;;  %v2364_v41 = vsel %vm7789_vm4, %v2212_v53, 0.0 }
 0x2ae   : > { %7920 = vst [vmem:[#allocation131_spill] sm:$0xff] %v6116_v55  ;;  %v2265_v48 = vmul.f32 %v6108_v59, %v6116_v55 }
 0x2b0   : > { %v2523_v39 = vsel %vm7789_vm4, %v2265_v48, 0.0 }
 0x2b1   : > { %2362 = vadd.xlane.f32.xlu0 %v2361_v2  ;;  %2431 = vadd.xlane.f32.xlu1 %v2430_v61  ;;  %v2214_v2 = vmul.f32 %v5939_v62, %v6037_v31  ;;  %v2221_v61 = vmul.f32 %v6096_v36, %v5961_v44  ;;  %v7959_v44 = vld [vmem:[#allocation119_spill] sm:$0xff] }
 0x2b3   : > { %v2370_v53 = vsel %vm7789_vm4, %v2214_v2, 0.0  ;;  %v2391_v45 = vsel %vm7789_vm4, %v2221_v61, 0.0  ;;  %v6142_v2 = vpop.f32.mrf.mxu0 }
 0x2b4   : > { %7921 = vst [vmem:[#allocation132_spill] sm:$0xff] %v6142_v2 }
 0x2b5   : > { %2365 = vadd.xlane.f32.xlu0 %v2364_v41  ;;  %2389 = vadd.xlane.f32.xlu1 %v2388_v34  ;;  %v2215_v41 = vmul.f32 %v5943_v51, %v6037_v31  ;;  %v2237_v34 = vmul.f32 %v6072_v10, %v5993_v22 }
 0x2b7   : > { %v2373_v56 = vsel %vm7789_vm4, %v2215_v41, 0.0  ;;  %v2439_v48 = vsel %vm7789_vm4, %v2237_v34, 0.0  ;;  %v6150_v41 = vpop.f32.mrf.mxu0 }
 0x2b8   : > { %7922 = vst [vmem:[#allocation133_spill] sm:$0xff] %v6150_v41  ;;  %v2268_v34 = vmul.f32 %v6108_v59, %v6150_v41 }
 0x2b9   : > { %2368 = vadd.xlane.f32.xlu0 %v2367_v13  ;;  %2524 = vadd.xlane.f32.xlu1 %v2523_v39  ;;  %v2216_v13 = vmul.f32 %v6096_v36, %v5949_v20  ;;  %v2267_v39 = vmul.f32 %v6104_v9, %v6108_v59 }
 0x2ba   : > { %v2532_v51 = vsel %vm7789_vm4, %v2268_v34, 0.0 }
 0x2bb   : > { %v2376_v31 = vsel %vm7789_vm4, %v2216_v13, 0.0  ;;  %v2529_v61 = vsel %vm7789_vm4, %v2267_v39, 0.0  ;;  %v2218_v13 = vmul.f32 %v5947_v33, %v6096_v36 }
 0x2bd   : > { %2371 = vadd.xlane.f32.xlu0 %v2370_v53  ;;  %2392 = vadd.xlane.f32.xlu1 %v2391_v45  ;;  %v2217_v53 = vmul.f32 %v6096_v36, %v5953_v18  ;;  %v2238_v45 = vmul.f32 %v5987_v0, %v6072_v10  ;;  %v2382_v39 = vsel %vm7789_vm4, %v2218_v13, 0.0 }
 0x2c1   : > { %2374 = vadd.xlane.f32.xlu0 %v2373_v56  ;;  %2440 = vadd.xlane.f32.xlu1 %v2439_v48  ;;  %v2379_v56 = vsel %vm7789_vm4, %v2217_v53, 0.0  ;;  %v2442_v48 = vsel %vm7789_vm4, %v2238_v45, 0.0 }
 0x2c5   : > { %2377 = vadd.xlane.f32.xlu0 %v2376_v31  ;;  %2530 = vadd.xlane.f32.xlu1 %v2529_v61  ;;  %v2233_v31 = vmul.f32 %v6072_v10, %v5985_v54  ;;  %v2224_v61 = vmul.f32 %v6096_v36, %v5965_v49 }
 0x2c7   : > { %v2427_v53 = vsel %vm7789_vm4, %v2233_v31, 0.0  ;;  %v2400_v45 = vsel %vm7789_vm4, %v2224_v61, 0.0 }
 0x2c9   : > { %2380 = vadd.xlane.f32.xlu0 %v2379_v56  ;;  %2443 = vadd.xlane.f32.xlu1 %v2442_v48  ;;  %v2219_v56 = vmul.f32 %v5951_v7, %v6096_v36  ;;  %v2225_v48 = vmul.f32 %v6096_v36, %v5969_v46 }
 0x2cb   : > { %v2385_v34 = vsel %vm7789_vm4, %v2219_v56, 0.0  ;;  %v2403_v13 = vsel %vm7789_vm4, %v2225_v48, 0.0 }
 0x2cd   : > { %2383 = vadd.xlane.f32.xlu0 %v2382_v39  ;;  %2533 = vadd.xlane.f32.xlu1 %v2532_v51  ;;  %v2235_v39 = vmul.f32 %v5983_v28, %v6072_v10  ;;  %v2226_v51 = vmul.f32 %v5963_v1, %v6096_v36  ;;  %v7933_v1 = vld [vmem:[#allocation21_spill] sm:$0xff] }
 0x2cf   : > { %v2433_v31 = vsel %vm7789_vm4, %v2235_v39, 0.0  ;;  %v2406_v61 = vsel %vm7789_vm4, %v2226_v51, 0.0 }
 0x2d1   : > { %2428 = vadd.xlane.f32.xlu0 %v2427_v53  ;;  %2401 = vadd.xlane.f32.xlu1 %v2400_v45  ;;  %v2264_v53 = vmul.f32 %v6108_v59, %v6090_v25  ;;  %v2227_v45 = vmul.f32 %v5967_v60, %v6096_v36  ;;  %v7931_v60 = vld [vmem:[#allocation116_spill] sm:$0xff] }
 0x2d3   : > { %v2520_v56 = vsel %vm7789_vm4, %v2264_v53, 0.0  ;;  %v2409_v48 = vsel %vm7789_vm4, %v2227_v45, 0.0 }
 0x2d5   : > { %2386 = vadd.xlane.f32.xlu0 %v2385_v34  ;;  %2404 = vadd.xlane.f32.xlu1 %v2403_v13  ;;  %v2236_v34 = vmul.f32 %v6072_v10, %v5989_v35  ;;  %v2228_v13 = vmul.f32 %v6096_v36, %v5973_v38 }
 0x2d7   : > { %v2436_v39 = vsel %vm7789_vm4, %v2236_v34, 0.0  ;;  %v2412_v51 = vsel %vm7789_vm4, %v2228_v13, 0.0 }
 0x2d9   : > { %2434 = vadd.xlane.f32.xlu0 %v2433_v31  ;;  %2407 = vadd.xlane.f32.xlu1 %v2406_v61  ;;  %v2266_v31 = vmul.f32 %v6080_v15, %v6108_v59  ;;  %v2229_v61 = vmul.f32 %v6096_v36, %v5977_v24  ;;  %v7929_v24 = vld [vmem:[#allocation32_spill] sm:$0xff] }
 0x2db   : > { %v2526_v53 = vsel %vm7789_vm4, %v2266_v31, 0.0  ;;  %v2415_v45 = vsel %vm7789_vm4, %v2229_v61, 0.0  ;;  %v6206_v31 = vpop.f32.mrf.mxu0  ;;  %v2158_v61 = vcombine.high %v6082_v30, %v6082_v30 }
 0x2dc   : > { %7923 = vst [vmem:[#allocation134_spill] sm:$0xff] %v6206_v31 }
 0x2dd   : > { %2521 = vadd.xlane.f32.xlu0 %v2520_v56  ;;  %2410 = vadd.xlane.f32.xlu1 %v2409_v48  ;;  %v2222_v56 = vmul.f32 %v5955_v27, %v6096_v36  ;;  %v2230_v48 = vmul.f32 %v5971_v16, %v6096_v36  ;;  %v6216_v62 = vpop.f32.mrf.mxu0  ;;  %v2242_v16 = vmul.f32 %v7928_v32, %v6072_v10 }
 0x2de   : > { %7924 = vst [vmem:[#allocation135_spill] sm:$0xff] %v6216_v62  ;;  %v2269_v30 = vmul.f32 %v6108_v59, %v6216_v62  ;;  %v7947_v62 = vld [vmem:[#allocation110_spill] sm:$0xff] }
 0x2df   : > { %v2394_v34 = vsel %vm7789_vm4, %v2222_v56, 0.0  ;;  %v2418_v13 = vsel %vm7789_vm4, %v2230_v48, 0.0  ;;  %v2239_v56 = vmul.f32 %v5991_v43, %v6072_v10  ;;  %v2278_v48 = vmul.f32 %v5739_v21, %v6108_v59  ;;  %v7926_v21 = vld [vmem:[#allocation17_spill] sm:$0xff] }
 0x2e1   : > { %2437 = vadd.xlane.f32.xlu0 %v2436_v39  ;;  %2413 = vadd.xlane.f32.xlu1 %v2412_v51  ;;  %v2223_v39 = vmul.f32 %v5959_v19, %v6096_v36  ;;  %v2231_v51 = vmul.f32 %v5975_v42, %v6096_v36  ;;  %v6219_v36 = vrot.slane %v2158_v61, %v5364_v14 }
 0x2e2   : > { %v2247_v19 = vmul.f32 %v7947_v62, %v6072_v10 }
 0x2e3   : > { %v2249_v61 = vmul.f32 %v6219_v36, %v6017_v17 }
 0x2e5   : > { %2527 = vadd.xlane.f32.xlu0 %v2526_v53  ;;  %2416 = vadd.xlane.f32.xlu1 %v2415_v45  ;;  %v2397_v53 = vsel %vm7789_vm4, %v2223_v39, 0.0  ;;  %v2421_v45 = vsel %vm7789_vm4, %v2231_v51, 0.0  ;;  %v2279_v39 = vmul.f32 %v5748_v29, %v6108_v59 }
 0x2e7   : > { %v2565_v51 = vsel %vm7789_vm4, %v2279_v39, 0.0  ;;  %v6243_v39 = vrot.slane %v6039_v23, %v5364_v14 }
 0x2e9   : > { %2395 = vadd.xlane.f32.xlu0 %v2394_v34  ;;  %2419 = vadd.xlane.f32.xlu1 %v2418_v13  ;;  %v2445_v34 = vsel %vm7789_vm4, %v2239_v56, 0.0  ;;  %v2562_v13 = vsel %vm7789_vm4, %v2278_v48, 0.0  ;;  %v2270_v56 = vmul.f32 %v6142_v2, %v6108_v59  ;;  %v2475_v48 = vsel %vm7789_vm4, %v2249_v61, 0.0 }
 0x2ea   : > { %v2251_v61 = vmul.f32 %v6015_v50, %v6219_v36  ;;  %v7958_v50 = vld [vmem:[#allocation26_spill] sm:$0xff] }
 0x2ed   : > { %2398 = vadd.xlane.f32.xlu0 %v2397_v53  ;;  %2422 = vadd.xlane.f32.xlu1 %v2421_v45  ;;  %v2535_v53 = vsel %vm7789_vm4, %v2269_v30, 0.0  ;;  %v2240_v45 = vmul.f32 %v6072_v10, %v5997_v37  ;;  %v2157_v30 = vcombine.high %v6092_v6, %v6092_v6  ;;  %v2271_v6 = vmul.f32 %v6206_v31, %v6108_v59  ;;  %v7937_v31 = vld [vmem:[#allocation23_spill] sm:$0xff] }
 0x2f1   : > { %2446 = vadd.xlane.f32.xlu0 %v2445_v34  ;;  %2563 = vadd.xlane.f32.xlu1 %v2562_v13  ;;  %v2448_v34 = vsel %vm7789_vm4, %v2240_v45, 0.0  ;;  %v2250_v13 = vmul.f32 %v6011_v57, %v6219_v36  ;;  %v7925_v45 = vld [vmem:[#allocation107_spill] sm:$0xff] }
 0x2f2   : > { %v2241_v29 = vmul.f32 %v6072_v10, %v7925_v45 }
 0x2f5   : > { %2566 = vadd.xlane.f32.xlu1 %v2565_v51  ;;  %2536 = vadd.xlane.f32.xlu0 %v2535_v53  ;;  %v2478_v51 = vsel %vm7789_vm4, %v2250_v13, 0.0  ;;  %v2538_v53 = vsel %vm7789_vm4, %v2270_v56, 0.0  ;;  %v2451_v13 = vsel %vm7789_vm4, %v2241_v29, 0.0  ;;  %v2280_v56 = vmul.f32 %v6243_v39, %v7926_v21  ;;  %v7961_v21 = vld [vmem:[#allocation18_spill] sm:$0xff] }
 0x2f6   : > { %v2454_v29 = vsel %vm7789_vm4, %v2242_v16, 0.0 }
 0x2f7   : > { %v2568_v42 = vsel %vm7789_vm4, %v2280_v56, 0.0 }
 0x2f9   : > { %2476 = vadd.xlane.f32.xlu1 %v2475_v48  ;;  %2449 = vadd.xlane.f32.xlu0 %v2448_v34  ;;  %v6252_v48 = vrot.slane %v2157_v30, %v5364_v14  ;;  %v2481_v34 = vsel %vm7789_vm4, %v2251_v61, 0.0 }
 0x2fd   : > { %2479 = vadd.xlane.f32.xlu1 %v2478_v51  ;;  %2539 = vadd.xlane.f32.xlu0 %v2538_v53  ;;  %v2541_v51 = vsel %vm7789_vm4, %v2271_v6, 0.0  ;;  %v7927_v53 = vld [vmem:[#allocation33_spill] sm:$0xff] }
 0x2fe   : > { %v2296_v30 = vmul.f32 %v6252_v48, %v7927_v53 }
 0x300   : > { %v2616_v61 = vsel %vm7789_vm4, %v2296_v30, 0.0 }
 0x301   : > { %2482 = vadd.xlane.f32.xlu1 %v2481_v34  ;;  %2452 = vadd.xlane.f32.xlu0 %v2451_v13  ;;  %v2298_v34 = vmul.f32 %v7929_v24, %v6252_v48  ;;  %v7930_v13 = vld [vmem:[#allocation9_spill] sm:$0xff] }
 0x302   : > { %v2272_v56 = vmul.f32 %v6108_v59, %v7930_v13 }
 0x303   : > { %v2622_v6 = vsel %vm7789_vm4, %v2298_v34, 0.0 }
 0x304   : > { %v2544_v38 = vsel %vm7789_vm4, %v2272_v56, 0.0 }
 0x305   : > { %2569 = vadd.xlane.f32.xlu1 %v2568_v42  ;;  %2542 = vadd.xlane.f32.xlu0 %v2541_v51  ;;  %v2254_v42 = vmul.f32 %v7931_v60, %v6219_v36  ;;  %v7932_v51 = vld [vmem:[#allocation106_spill] sm:$0xff] }
 0x306   : > { %v2243_v30 = vmul.f32 %v7932_v51, %v6072_v10  ;;  %v7935_v51 = vld [vmem:[#allocation118_spill] sm:$0xff] }
 0x307   : > { %v2490_v16 = vsel %vm7789_vm4, %v2254_v42, 0.0 }
 0x308   : > { %v2457_v32 = vsel %vm7789_vm4, %v2243_v30, 0.0 }
 0x309   : > { %2617 = vadd.xlane.f32.xlu1 %v2616_v61  ;;  %2455 = vadd.xlane.f32.xlu0 %v2454_v29  ;;  %v2284_v61 = vmul.f32 %v6243_v39, %v7933_v1  ;;  %v7934_v29 = vld [vmem:[#allocation11_spill] sm:$0xff] }
 0x30a   : > { %v2273_v34 = vmul.f32 %v6108_v59, %v7934_v29 }
 0x30b   : > { %v2580_v56 = vsel %vm7789_vm4, %v2284_v61, 0.0 }
 0x30c   : > { %v2547_v13 = vsel %vm7789_vm4, %v2273_v34, 0.0  ;;  %v7939_v34 = vld [vmem:[#allocation7_spill] sm:$0xff] }
 0x30d   : > { %2623 = vadd.xlane.f32.xlu1 %v2622_v6  ;;  %2545 = vadd.xlane.f32.xlu0 %v2544_v38  ;;  %v2255_v6 = vmul.f32 %v7935_v51, %v6219_v36  ;;  %v7936_v38 = vld [vmem:[#allocation109_spill] sm:$0xff]  ;;  %v2845_v29 = vadd.s32 4294967288, %v7939_v34  ;;  %v2880_v4 = vadd.s32 4294967248, %v7939_v34  ;;  %v2922_v8 = vadd.s32 4294967200, %v7939_v34 }
 0x30e   : > { %v2244_v42 = vmul.f32 %v6072_v10, %v7936_v38 }
 0x30f   : > { %v2493_v30 = vsel %vm7789_vm4, %v2255_v6, 0.0 }
 0x310   : > { %v2460_v45 = vsel %vm7789_vm4, %v2244_v42, 0.0  ;;  %v6305_v42 = vsub.s32 %v7939_v34, %v5322_v3 }
 0x311   : > { %2491 = vadd.xlane.f32.xlu1 %v2490_v16  ;;  %2458 = vadd.xlane.f32.xlu0 %v2457_v32  ;;  %v2285_v16 = vmul.f32 %v6243_v39, %v7937_v31  ;;  %v7938_v32 = vld [vmem:[#allocation8_spill] sm:$0xff] }
 0x312   : > { %v2274_v61 = vmul.f32 %v7938_v32, %v6108_v59  ;;  %v7941_v32 = vld [vmem:[#allocation20_spill] sm:$0xff] }
 0x313   : > { %v2583_v46 = vsel %vm7789_vm4, %v2285_v16, 0.0 }
 0x314   : > { %v2550_v38 = vsel %vm7789_vm4, %v2274_v61, 0.0 }
 0x315   : > { %2581 = vadd.xlane.f32.xlu1 %v2580_v56  ;;  %2548 = vadd.xlane.f32.xlu0 %v2547_v13  ;;  %v2256_v13 = vmul.f32 %v6219_v36, %v6030_v11  ;;  %v7940_v56 = vld [vmem:[#allocation111_spill] sm:$0xff]  ;;  %v2286_v11 = vmul.f32 %v7941_v32, %v6243_v39 }
 0x316   : > { %v2245_v6 = vmul.f32 %v6072_v10, %v7940_v56  ;;  %v7942_v56 = vld [vmem:[#allocation10_spill] sm:$0xff] }
 0x317   : > { %v2496_v16 = vsel %vm7789_vm4, %v2256_v13, 0.0  ;;  %v2586_v32 = vsel %vm7789_vm4, %v2286_v11, 0.0 }
 0x318   : > { %v2463_v61 = vsel %vm7789_vm4, %v2245_v6, 0.0  ;;  %v2859_v6 = vadd.s32 4294967272, %v7939_v34 }
 0x319   : > { %2494 = vadd.xlane.f32.xlu1 %v2493_v30  ;;  %2461 = vadd.xlane.f32.xlu0 %v2460_v45  ;;  %v6308_v45 = vsub.s32 %v2845_v29, %v5322_v3  ;;  %v2852_v30 = vadd.s32 4294967280, %v7939_v34  ;;  %v2866_v29 = vadd.s32 4294967264, %v7939_v34 }
 0x31a   : > { %v6334_v11 = vsub.s32 %v2859_v6, %v5322_v3 }
 0x31b   : > { %v6321_v13 = vsub.s32 %v2852_v30, %v5322_v3 }
 0x31d   : > { %2584 = vadd.xlane.f32.xlu1 %v2583_v46  ;;  %2551 = vadd.xlane.f32.xlu0 %v2550_v38  ;;  %v2275_v46 = vmul.f32 %v7942_v56, %v6108_v59 }
 0x31f   : > { %v2553_v56 = vsel %vm7789_vm4, %v2275_v46, 0.0  ;;  %v7944_v46 = vld [vmem:[#allocation22_spill] sm:$0xff] }
 0x321   : > { %2497 = vadd.xlane.f32.xlu1 %v2496_v16  ;;  %2464 = vadd.xlane.f32.xlu0 %v2463_v61  ;;  %v2257_v16 = vmul.f32 %v6219_v36, %v6034_v26  ;;  %v7943_v61 = vld [vmem:[#allocation108_spill] sm:$0xff]  ;;  %v2287_v26 = vmul.f32 %v7944_v46, %v6243_v39 }
 0x322   : > { %v2330_v38 = vpop.xlane.xlu0 %2329  ;;  %v2333_v51 = vpop.xlane.xlu1 %2332  ;;  %v2246_v49 = vmul.f32 %v7943_v61, %v6072_v10  ;;  %v6340_v61 = vsub.s32 %v2866_v29, %v5322_v3  ;;  %v2894_v29 = vadd.s32 4294967232, %v7939_v34 }
 0x323   : > { %v2844_v37 = vrot.slane %v2330_v38, %v6305_v42  ;;  %v2849_v2 = vrot.slane %v2333_v51, %v6308_v45  ;;  %v2873_v51 = vadd.s32 4294967256, %v7939_v34 }
 0x325   : > { %v2851_v60 = vsel %vm2850_vm13, %v2849_v2, %v2844_v37  ;;  %2587 = vadd.xlane.f32.xlu1 %v2586_v32  ;;  %2554 = vadd.xlane.f32.xlu0 %v2553_v56  ;;  %v2499_v37 = vsel %vm7789_vm4, %v2257_v16, 0.0  ;;  %v2466_v2 = vsel %vm7789_vm4, %v2246_v49, 0.0  ;;  %v7945_v32 = vld [vmem:[#allocation13_spill] sm:$0xff]  ;;  %v6348_v6 = vsub.s32 %v2873_v51, %v5322_v3 }
 0x326   : > { %v2342_v30 = vpop.xlane.xlu0 %2341  ;;  %v2336_v38 = vpop.xlane.xlu1 %2335  ;;  %v2276_v56 = vmul.f32 %v6108_v59, %v7945_v32  ;;  %v2589_v49 = vsel %vm7789_vm4, %v2287_v26, 0.0  ;;  %v6354_v32 = vsub.s32 %v2880_v4, %v5322_v3  ;;  %v2901_v4 = vadd.s32 4294967224, %v7939_v34 }
 0x327   : > { %v2856_v43 = vrot.slane %v2336_v38, %v6321_v13 }
 0x328   : > { %v2556_v51 = vsel %vm7789_vm4, %v2276_v56, 0.0 }
 0x329   : > { %v2858_v38 = vsel %vm2857_vm1, %v2856_v43, %v2851_v60  ;;  %2500 = vadd.xlane.f32.xlu1 %v2499_v37  ;;  %2467 = vadd.xlane.f32.xlu0 %v2466_v2  ;;  %v2887_v43 = vadd.s32 4294967240, %v7939_v34  ;;  %v2870_v60 = vrot.slane %v2342_v30, %v6340_v61  ;;  %v7946_v37 = vld [vmem:[#allocation120_spill] sm:$0xff]  ;;  %v6368_v30 = vsub.s32 %v2894_v29, %v5322_v3 }
 0x32a   : > { %v2345_v46 = vpop.xlane.xlu0 %2344  ;;  %v2339_v31 = vpop.xlane.xlu1 %2338  ;;  %v2258_v2 = vmul.f32 %v7946_v37, %v6219_v36 }
 0x32b   : > { %v2863_v16 = vrot.slane %v2339_v31, %v6334_v11  ;;  %v2877_v41 = vrot.slane %v2345_v46, %v6348_v6  ;;  %v6373_v46 = vsub.s32 %v2887_v43, %v5322_v3 }
 0x32d   : > { %v2865_v31 = vsel %vm2864_vm2, %v2863_v16, %v2858_v38  ;;  %2590 = vadd.xlane.f32.xlu1 %v2589_v49  ;;  %2557 = vadd.xlane.f32.xlu0 %v2556_v51  ;;  %v2908_v38 = vadd.s32 4294967216, %v7939_v34  ;;  %v2502_v16 = vsel %vm7789_vm4, %v2258_v2, 0.0  ;;  %v2469_v49 = vsel %vm7789_vm4, %v2247_v19, 0.0  ;;  %v7949_v51 = vld [vmem:[#allocation15_spill] sm:$0xff] }
 0x32e   : > { %v2872_v26 = vsel %vm2871_vm3, %v2870_v60, %v2865_v31  ;;  %v2354_v56 = vpop.xlane.xlu0 %2353  ;;  %v2348_v0 = vpop.xlane.xlu1 %2347  ;;  %v7948_v60 = vld [vmem:[#allocation25_spill] sm:$0xff]  ;;  %v2277_v31 = vmul.f32 %v6108_v59, %v7949_v51 }
 0x32f   : > { %v2879_v37 = vsel %vm2878_vm5, %v2877_v41, %v2872_v26  ;;  %v2884_v10 = vrot.slane %v2348_v0, %v6354_v32  ;;  %v2288_v29 = vmul.f32 %v6243_v39, %v7948_v60  ;;  %v6384_v0 = vsub.s32 %v2901_v4, %v5322_v3  ;;  %v7950_v26 = vld [vmem:[#allocation122_spill] sm:$0xff] }
 0x330   : > { %v6388_v2 = vsub.s32 %v2908_v38, %v5322_v3  ;;  %v2259_v59 = vmul.f32 %v7950_v26, %v6219_v36 }
 0x331   : > { %v2886_v62 = vsel %vm7772_vm6, %v2884_v10, %v2879_v37  ;;  %2503 = vadd.xlane.f32.xlu1 %v2502_v16  ;;  %2470 = vadd.xlane.f32.xlu0 %v2469_v49  ;;  %v2915_v37 = vadd.s32 4294967208, %v7939_v34  ;;  %v2898_v10 = vrot.slane %v2354_v56, %v6368_v30  ;;  %v2592_v4 = vsel %vm7789_vm4, %v2288_v29, 0.0  ;;  %v7951_v49 = vld [vmem:[#allocation113_spill] sm:$0xff] }
 0x332   : > { %v2357_v41 = vpop.xlane.xlu0 %2356  ;;  %v2351_v43 = vpop.xlane.xlu1 %2350  ;;  %v2559_v16 = vsel %vm7789_vm4, %v2277_v31, 0.0  ;;  %v2248_v51 = vmul.f32 %v6219_v36, %v7951_v49 }
 0x333   : > { %v2891_v19 = vrot.slane %v2351_v43, %v6373_v46  ;;  %v2905_v60 = vrot.slane %v2357_v41, %v6384_v0  ;;  %v6406_v31 = vsub.s32 %v2915_v37, %v5322_v3  ;;  %v2505_v41 = vsel %vm7789_vm4, %v2259_v59, 0.0 }
 0x334   : > { %v6420_v59 = vsub.s32 %v2922_v8, %v5322_v3 }
 0x335   : > { %v2893_v43 = vsel %vm2892_vm7, %v2891_v19, %v2886_v62  ;;  %2593 = vadd.xlane.f32.xlu1 %v2592_v4  ;;  %2560 = vadd.xlane.f32.xlu0 %v2559_v16  ;;  %v2472_v62 = vsel %vm7789_vm4, %v2248_v51, 0.0  ;;  %v7952_v19 = vld [vmem:[#allocation27_spill] sm:$0xff]  ;;  %v2929_v51 = vadd.s32 4294967192, %v7939_v34 }
 0x336   : > { %v2900_v38 = vsel %vm2899_vm8, %v2898_v10, %v2893_v43  ;;  %v2360_v26 = vpop.xlane.xlu0 %2359  ;;  %v6401_v9 = vpop.xlane.xlu1 %2425  ;;  %v2289_v10 = vmul.f32 %v6243_v39, %v7952_v19  ;;  %v7953_v4 = vld [vmem:[#allocation19_spill] sm:$0xff] }
 0x337   : > { %v2907_v56 = vsel %vm2906_vm9, %v2905_v60, %v2900_v38  ;;  %v2912_v29 = vrot.slane %v2360_v26, %v6388_v2  ;;  %v2281_v16 = vmul.f32 %v6243_v39, %v7953_v4 }
 0x338   : > { %v2595_v38 = vsel %vm7789_vm4, %v2289_v10, 0.0  ;;  %v6434_v10 = vsub.s32 %v2929_v51, %v5322_v3 }
 0x339   : > { %v2914_v43 = vsel %vm2913_vm10, %v2912_v29, %v2907_v56  ;;  %2506 = vadd.xlane.f32.xlu1 %v2505_v41  ;;  %2473 = vadd.xlane.f32.xlu0 %v2472_v62  ;;  %v2571_v19 = vsel %vm7789_vm4, %v2281_v16, 0.0  ;;  %v2260_v56 = vmul.f32 %v6219_v36, %v6053_v52  ;;  %v7954_v29 = vld [vmem:[#allocation117_spill] sm:$0xff]  ;;  %v2936_v16 = vadd.s32 4294967184, %v7939_v34 }
 0x33a   : > { %v2363_v60 = vpop.xlane.xlu0 %2362  ;;  %v6416_v26 = vpop.xlane.xlu1 %2431  ;;  %v2252_v41 = vmul.f32 %v6219_v36, %v7954_v29  ;;  %v7955_v29 = vld [vmem:[#allocation24_spill] sm:$0xff] }
 0x33b   : > { %v2919_v37 = vrot.slane %v2363_v60, %v6406_v31  ;;  %v2508_v52 = vsel %vm7789_vm4, %v2260_v56, 0.0  ;;  %v6448_v56 = vsub.s32 %v2936_v16, %v5322_v3 }
 0x33c   : > { %v2484_v22 = vsel %vm7789_vm4, %v2252_v41, 0.0  ;;  %v2943_v41 = vadd.s32 4294967176, %v7939_v34 }
 0x33d   : > { %v2921_v62 = vsel %vm2920_vm11, %v2919_v37, %v2914_v43  ;;  %2596 = vadd.xlane.f32.xlu1 %v2595_v38  ;;  %2572 = vadd.xlane.f32.xlu0 %v2571_v19  ;;  %v2290_v43 = vmul.f32 %v7955_v29, %v6243_v39  ;;  %v7956_v19 = vld [vmem:[#allocation16_spill] sm:$0xff] }
 0x33e   : > { %v2366_v60 = vpop.xlane.xlu0 %2365  ;;  %v6430_v8 = vpop.xlane.xlu1 %2389  ;;  %v2282_v37 = vmul.f32 %v7956_v19, %v6243_v39  ;;  %v2291_v19 = vmul.f32 %v7958_v50, %v6243_v39 }
 0x33f   : > { %v2926_v1 = vrot.slane %v2366_v60, %v6420_v59  ;;  %v2598_v29 = vsel %vm7789_vm4, %v2290_v43, 0.0  ;;  %v6462_v43 = vsub.s32 %v2943_v41, %v5322_v3 }
 0x340   : > { %v2574_v27 = vsel %vm7789_vm4, %v2282_v37, 0.0 }
 0x341   : > { %v2928_v38 = vsel %vm2927_vm12, %v2926_v1, %v2921_v62  ;;  %2509 = vadd.xlane.f32.xlu1 %v2508_v52  ;;  %2485 = vadd.xlane.f32.xlu0 %v2484_v22  ;;  %v2261_v1 = vmul.f32 %v6219_v36, %v6069_v12  ;;  %v7957_v52 = vld [vmem:[#allocation35_spill] sm:$0xff] }
 0x342   : > { %v2369_v60 = vpop.xlane.xlu0 %2368  ;;  %v6444_v51 = vpop.xlane.xlu1 %2524  ;;  %v2297_v22 = vmul.f32 %v6252_v48, %v7957_v52 }
 0x343   : > { %v2933_v15 = vrot.slane %v2369_v60, %v6434_v10  ;;  %v2511_v37 = vsel %vm7789_vm4, %v2261_v1, 0.0  ;;  %v2601_v1 = vsel %vm7789_vm4, %v2291_v19, 0.0 }
 0x344   : > { %v2619_v12 = vsel %vm7789_vm4, %v2297_v22, 0.0 }
 0x345   : > { %v2935_v62 = vsel %vm2934_vm14, %v2933_v15, %v2928_v38  ;;  %2599 = vadd.xlane.f32.xlu1 %v2598_v29  ;;  %2575 = vadd.xlane.f32.xlu0 %v2574_v27  ;;  %v2253_v15 = vmul.f32 %v6219_v36, %v7959_v44  ;;  %v2283_v44 = vmul.f32 %v7961_v21, %v6243_v39 }
 0x346   : > { %v2372_v60 = vpop.xlane.xlu0 %2371  ;;  %v6458_v16 = vpop.xlane.xlu1 %2392 }
 0x347   : > { %v2940_v35 = vrot.slane %v2372_v60, %v6448_v56  ;;  %v2487_v22 = vsel %vm7789_vm4, %v2253_v15, 0.0  ;;  %v7960_v60 = vld [vmem:[#allocation124_spill] sm:$0xff]  ;;  %v2577_v19 = vsel %vm7789_vm4, %v2283_v44, 0.0  ;;  %v7964_v44 = vld [vmem:[#allocation45_spill] sm:$0xff] }
 0x348   : > { %v2262_v50 = vmul.f32 %v7960_v60, %v6219_v36  ;;  %v7963_v60 = vld [vmem:[#allocation34_spill] sm:$0xff]  ;;  %v2308_v47 = vmul.f32 %v6252_v48, %v7964_v44  ;;  %v7966_v44 = vld [vmem:[#allocation39_spill] sm:$0xff] }
 0x349   : > { %v2942_v27 = vsel %vm7790_vm15, %v2940_v35, %v2935_v62  ;;  %2512 = vadd.xlane.f32.xlu1 %v2511_v37  ;;  %2620 = vadd.xlane.f32.xlu0 %v2619_v12  ;;  %v2299_v25 = vmul.f32 %v7963_v60, %v6252_v48  ;;  %v2301_v24 = vmul.f32 %v6252_v48, %v7966_v44 }
 0x34a   : > { %v2375_v29 = vpop.xlane.xlu0 %2374  ;;  %v6471_v38 = vpop.xlane.xlu1 %2440  ;;  %v2514_v37 = vsel %vm7789_vm4, %v2262_v50, 0.0 }
 0x34b   : > { %v2947_v41 = vrot.slane %v2375_v29, %v6462_v43  ;;  %v7962_v29 = vld [vmem:[#allocation29_spill] sm:$0xff]  ;;  %v2625_v50 = vsel %vm7789_vm4, %v2299_v25, 0.0  ;;  %v2652_v25 = vsel %vm7789_vm4, %v2308_v47, 0.0  ;;  %v3032_v47 = vrot.slane %v6401_v9, %v6305_v42 }
 0x34c   : > { %v2292_v15 = vmul.f32 %v6243_v39, %v7962_v29  ;;  %v7965_v29 = vld [vmem:[#allocation37_spill] sm:$0xff] }
 0x34d   : > { %v6481_v35 = vsel %vm2948_vm0, %v2947_v41, %v2942_v27  ;;  %2602 = vadd.xlane.f32.xlu1 %v2601_v1  ;;  %2488 = vadd.xlane.f32.xlu0 %v2487_v22  ;;  %v2300_v4 = vmul.f32 %v6252_v48, %v7965_v29  ;;  %v7967_v29 = vld [vmem:[#allocation47_spill] sm:$0xff] }
 0x34e   : > { %v2378_v12 = vpop.xlane.xlu0 %2377  ;;  %v6483_v62 = vpop.xlane.xlu1 %2530  ;;  %v2604_v22 = vsel %vm7789_vm4, %v2292_v15, 0.0 }
 0x34f   : > { %v2953_v41 = vrot.slane %v2378_v12, %v6305_v42  ;;  %v2628_v15 = vsel %vm7789_vm4, %v2300_v4, 0.0 }
 0x351   : > { %2515 = vadd.xlane.f32.xlu1 %v2514_v37  ;;  %2578 = vadd.xlane.f32.xlu0 %v2577_v19 }
 0x352   : > { %v2381_v21 = vpop.xlane.xlu0 %2380  ;;  %v6491_v27 = vpop.xlane.xlu1 %2443 }
 0x353   : > { %v2957_v1 = vrot.slane %v2381_v21, %v6308_v45  ;;  %v2159_v21 = vcombine.high %v6039_v23, %v6039_v23 }
 0x355   : > { %v2958_v37 = vsel %vm2850_vm13, %v2957_v1, %v2953_v41  ;;  %2605 = vadd.xlane.f32.xlu1 %v2604_v22  ;;  %2626 = vadd.xlane.f32.xlu0 %v2625_v50  ;;  %v2309_v41 = vmul.f32 %v6252_v48, %v7967_v29  ;;  %v6517_v23 = vrot.slane %v2159_v21, %v5364_v14 }
 0x356   : > { %v2384_v19 = vpop.xlane.xlu0 %2383  ;;  %v6502_v60 = vpop.xlane.xlu1 %2533  ;;  %v3041_v29 = vrot.slane %v6416_v26, %v6321_v13  ;;  %v7970_v26 = vld [vmem:[#allocation38_spill] sm:$0xff] }
 0x357   : > { %v2962_v12 = vrot.slane %v2384_v19, %v6321_v13  ;;  %v7968_v19 = vld [vmem:[#allocation36_spill] sm:$0xff]  ;;  %v2303_v57 = vmul.f32 %v7970_v26, %v6252_v48  ;;  %v7972_v26 = vld [vmem:[#allocation41_spill] sm:$0xff] }
 0x358   : > { %v2302_v44 = vmul.f32 %v7968_v19, %v6252_v48 }
 0x359   : > { %v2963_v1 = vsel %vm2857_vm1, %v2962_v12, %v2958_v37  ;;  %2653 = vadd.xlane.f32.xlu1 %v2652_v25  ;;  %2629 = vadd.xlane.f32.xlu0 %v2628_v15  ;;  %v2631_v37 = vsel %vm7789_vm4, %v2301_v24, 0.0  ;;  %v2655_v12 = vsel %vm7789_vm4, %v2309_v41, 0.0  ;;  %v7969_v25 = vld [vmem:[#allocation30_spill] sm:$0xff]  ;;  %v2972_v24 = vrot.slane %v6430_v8, %v6340_v61 }
 0x35a   : > { %v2429_v22 = vpop.xlane.xlu0 %2428  ;;  %v6514_v50 = vpop.xlane.xlu1 %2401  ;;  %v2295_v15 = vmul.f32 %v7969_v25, %v6243_v39  ;;  %v2634_v41 = vsel %vm7789_vm4, %v2302_v44, 0.0  ;;  %v2637_v44 = vsel %vm7789_vm4, %v2303_v57, 0.0 }
 0x35b   : > { %v3036_v4 = vrot.slane %v2429_v22, %v6308_v45 }
 0x35c   : > { %v2613_v25 = vsel %vm7789_vm4, %v2295_v15, 0.0 }
 0x35d   : > { %v3037_v21 = vsel %vm2850_vm13, %v3036_v4, %v3032_v47  ;;  %2632 = vadd.xlane.f32.xlu0 %v2631_v37  ;;  %2656 = vadd.xlane.f32.xlu1 %v2655_v12  ;;  %v7971_v47 = vld [vmem:[#allocation51_spill] sm:$0xff]  ;;  %v2977_v37 = vrot.slane %v6458_v16, %v6348_v6  ;;  %v7973_v16 = vld [vmem:[#allocation48_spill] sm:$0xff] }
 0x35e   : > { %v2387_v9 = vpop.xlane.xlu0 %2386  ;;  %v6531_v53 = vpop.xlane.xlu1 %2404  ;;  %v3042_v22 = vsel %vm2857_vm1, %v3041_v29, %v3037_v21  ;;  %v2313_v4 = vmul.f32 %v6517_v23, %v7971_v47  ;;  %v2304_v47 = vmul.f32 %v6252_v48, %v7972_v26 }
 0x35f   : > { %v2967_v19 = vrot.slane %v2387_v9, %v6334_v11 }
 0x360   : > { %v2667_v15 = vsel %vm7789_vm4, %v2313_v4, 0.0  ;;  %v2640_v57 = vsel %vm7789_vm4, %v2304_v47, 0.0 }
 0x361   : > { %v2968_v29 = vsel %vm2864_vm2, %v2967_v19, %v2963_v1  ;;  %2635 = vadd.xlane.f32.xlu0 %v2634_v41  ;;  %2614 = vadd.xlane.f32.xlu1 %v2613_v25  ;;  %v2314_v1 = vmul.f32 %v7973_v16, %v6517_v23 }
 0x362   : > { %v2973_v12 = vsel %vm2871_vm3, %v2972_v24, %v2968_v29  ;;  %v2435_v21 = vpop.xlane.xlu0 %2434  ;;  %v6547_v9 = vpop.xlane.xlu1 %2407  ;;  %v7974_v24 = vld [vmem:[#allocation43_spill] sm:$0xff]  ;;  %v7975_v29 = vld [vmem:[#allocation50_spill] sm:$0xff] }
 0x363   : > { %v6550_v8 = vsel %vm2878_vm5, %v2977_v37, %v2973_v12  ;;  %v2305_v41 = vmul.f32 %v6252_v48, %v7974_v24  ;;  %v3046_v37 = vrot.slane %v2435_v21, %v6334_v11  ;;  %v2670_v4 = vsel %vm7789_vm4, %v2314_v1, 0.0  ;;  %v7976_v24 = vld [vmem:[#allocation40_spill] sm:$0xff]  ;;  %v7977_v21 = vld [vmem:[#allocation53_spill] sm:$0xff] }
 0x364   : > { %v2315_v12 = vmul.f32 %v7975_v29, %v6517_v23  ;;  %v2306_v28 = vmul.f32 %v7976_v24, %v6252_v48  ;;  %v2316_v47 = vmul.f32 %v6517_v23, %v7977_v21  ;;  %v3056_v1 = vrot.slane %v6471_v38, %v6348_v6 }
 0x365   : > { %2638 = vadd.xlane.f32.xlu0 %v2637_v44  ;;  %2668 = vadd.xlane.f32.xlu1 %v2667_v15  ;;  %v2643_v16 = vsel %vm7789_vm4, %v2305_v41, 0.0  ;;  %v3047_v29 = vsel %vm2864_vm2, %v3046_v37, %v3042_v22  ;;  %v3194_v24 = vrot.slane %v6444_v51, %v6308_v45 }
 0x366   : > { %v2522_v19 = vpop.xlane.xlu0 %2521  ;;  %v6558_v25 = vpop.xlane.xlu1 %2410 }
 0x369   : > { %2641 = vadd.xlane.f32.xlu0 %v2640_v57  ;;  %2671 = vadd.xlane.f32.xlu1 %v2670_v4  ;;  %v3190_v57 = vrot.slane %v2522_v19, %v6305_v42  ;;  %v2673_v4 = vsel %vm7789_vm4, %v2315_v12, 0.0  ;;  %v7978_v19 = vld [vmem:[#allocation42_spill] sm:$0xff]  ;;  %v7979_v12 = vld [vmem:[#allocation55_spill] sm:$0xff] }
 0x36a   : > { %v2438_v26 = vpop.xlane.xlu0 %2437  ;;  %v6567_v44 = vpop.xlane.xlu1 %2413  ;;  %v2307_v37 = vmul.f32 %v7978_v19, %v6252_v48  ;;  %v2317_v7 = vmul.f32 %v6517_v23, %v7979_v12 }
 0x36b   : > { %v3051_v15 = vrot.slane %v2438_v26, %v6340_v61  ;;  %v3061_v26 = vrot.slane %v6491_v27, %v6354_v32  ;;  %v3195_v51 = vsel %vm2850_vm13, %v3194_v24, %v3190_v57  ;;  %v7980_v57 = vld [vmem:[#allocation52_spill] sm:$0xff] }
 0x36d   : > { %v3052_v41 = vsel %vm2871_vm3, %v3051_v15, %v3047_v29  ;;  %2644 = vadd.xlane.f32.xlu0 %v2643_v16  ;;  %2674 = vadd.xlane.f32.xlu1 %v2673_v4  ;;  %v3204_v16 = vrot.slane %v6483_v62, %v6334_v11  ;;  %v2646_v29 = vsel %vm7789_vm4, %v2306_v28, 0.0  ;;  %v2676_v15 = vsel %vm7789_vm4, %v2316_v47, 0.0 }
 0x36e   : > { %v3057_v21 = vsel %vm2878_vm5, %v3056_v1, %v3052_v41  ;;  %v2528_v52 = vpop.xlane.xlu0 %2527  ;;  %v2417_v38 = vpop.xlane.xlu1 %2416  ;;  %v2263_v62 = vmul.f32 %v6061_v63, %v6219_v36  ;;  %v2649_v47 = vsel %vm7789_vm4, %v2307_v37, 0.0  ;;  %v2318_v41 = vmul.f32 %v7980_v57, %v6517_v23 }
 0x36f   : > { %v3199_v22 = vrot.slane %v2528_v52, %v6321_v13  ;;  %v6592_v27 = vsel %vm7772_vm6, %v3061_v26, %v3057_v21  ;;  %v3209_v52 = vrot.slane %v6502_v60, %v6340_v61  ;;  %v2679_v60 = vsel %vm7789_vm4, %v2317_v7, 0.0 }
 0x370   : > { %v2517_v36 = vsel %vm7789_vm4, %v2263_v62, 0.0  ;;  %v2682_v37 = vsel %vm7789_vm4, %v2318_v41, 0.0  ;;  %v3002_v62 = vrot.slane %v6547_v9, %v6388_v2 }
 0x371   : > { %v3200_v1 = vsel %vm2857_vm1, %v3199_v22, %v3195_v51  ;;  %2647 = vadd.xlane.f32.xlu0 %v2646_v29  ;;  %2677 = vadd.xlane.f32.xlu1 %v2676_v15  ;;  %v7981_v29 = vld [vmem:[#allocation31_spill] sm:$0xff] }
 0x372   : > { %v3205_v4 = vsel %vm2864_vm2, %v3204_v16, %v3200_v1  ;;  %v2396_v21 = vpop.xlane.xlu0 %2395  ;;  %v2420_v26 = vpop.xlane.xlu1 %2419  ;;  %v2293_v15 = vmul.f32 %v6243_v39, %v7981_v29  ;;  %v7982_v1 = vld [vmem:[#allocation54_spill] sm:$0xff] }
 0x373   : > { %v6606_v24 = vsel %vm2871_vm3, %v3209_v52, %v3205_v4  ;;  %v2982_v28 = vrot.slane %v2396_v21, %v6354_v32  ;;  %v2992_v52 = vrot.slane %v6514_v50, %v6368_v30  ;;  %v2319_v4 = vmul.f32 %v7982_v1, %v6517_v23 }
 0x374   : > { %v2997_v21 = vrot.slane %v6531_v53, %v6384_v0  ;;  %v2607_v53 = vsel %vm7789_vm4, %v2293_v15, 0.0  ;;  %v3022_v15 = vrot.slane %v2420_v26, %v6448_v56 }
 0x375   : > { %2650 = vadd.xlane.f32.xlu0 %v2649_v47  ;;  %2680 = vadd.xlane.f32.xlu1 %v2679_v60  ;;  %v2983_v7 = vsel %vm7772_vm6, %v2982_v28, %v6550_v8  ;;  %v3007_v28 = vrot.slane %v6558_v25, %v6406_v31  ;;  %vm7781_vm6 = vcmask 1041409  }
 0x376   : > { %v2399_v22 = vpop.xlane.xlu0 %2398  ;;  %v2423_v16 = vpop.xlane.xlu1 %2422 }
 0x377   : > { %v2987_v51 = vrot.slane %v2399_v22, %v6373_v46  ;;  %v7983_v22 = vld [vmem:[#allocation28_spill] sm:$0xff] }
 0x379   : > { %v2988_v47 = vsel %vm2892_vm7, %v2987_v51, %v2983_v7  ;;  %2518 = vadd.xlane.f32.xlu0 %v2517_v36  ;;  %2683 = vadd.xlane.f32.xlu1 %v2682_v37  ;;  %v2294_v51 = vmul.f32 %v7983_v22, %v6243_v39  ;;  %v3012_v36 = vrot.slane %v6567_v44, %v6420_v59  ;;  %v7984_v7 = vld [vmem:[#allocation57_spill] sm:$0xff]  ;;  %v7991_v22 = vld [vmem:[#allocation58_spill] sm:$0xff] }
 0x37a   : > { %v2993_v50 = vsel %vm2899_vm8, %v2992_v52, %v2988_v47  ;;  %v6630_v60 = vpop.xlane.xlu0 %2446  ;;  %v6632_v8 = vpop.xlane.xlu1 %2563  ;;  %v2685_v52 = vsel %vm7789_vm4, %v2319_v4, 0.0  ;;  %v2320_v37 = vmul.f32 %v6517_v23, %v7984_v7  ;;  %v3017_v47 = vrot.slane %v2417_v38, %v6434_v10 }
 0x37b   : > { %v2998_v41 = vsel %vm2906_vm9, %v2997_v21, %v2993_v50  ;;  %v3027_v4 = vrot.slane %v2423_v16, %v6462_v43  ;;  %v7985_v50 = vld [vmem:[#allocation44_spill] sm:$0xff] }
 0x37c   : > { %v3003_v9 = vsel %vm2913_vm10, %v3002_v62, %v2998_v41  ;;  %v2310_v38 = vmul.f32 %v7985_v50, %v6252_v48  ;;  %v2610_v41 = vsel %vm7789_vm4, %v2294_v51, 0.0  ;;  %v2688_v26 = vsel %vm7789_vm4, %v2320_v37, 0.0 }
 0x37d   : > { %v3008_v25 = vsel %vm2920_vm11, %v3007_v28, %v3003_v9  ;;  %2608 = vadd.xlane.f32.xlu0 %v2607_v53  ;;  %2686 = vadd.xlane.f32.xlu1 %v2685_v52  ;;  %v7986_v53 = vld [vmem:[#allocation59_spill] sm:$0xff] }
 0x37e   : > { %v3013_v39 = vsel %vm2927_vm12, %v3012_v36, %v3008_v25  ;;  %v6650_v21 = vpop.xlane.xlu0 %2536  ;;  %v6652_v44 = vpop.xlane.xlu1 %2566  ;;  %v2321_v36 = vmul.f32 %v6517_v23, %v7986_v53  ;;  %v2658_v25 = vsel %vm7789_vm4, %v2310_v38, 0.0  ;;  %v7989_v38 = vld [vmem:[#allocation46_spill] sm:$0xff] }
 0x37f   : > { %v3018_v62 = vsel %vm2934_vm14, %v3017_v47, %v3013_v39  ;;  %v7988_v39 = vld [vmem:[#allocation56_spill] sm:$0xff] }
 0x380   : > { %v3023_v28 = vsel %vm7790_vm15, %v3022_v15, %v3018_v62  ;;  %v2691_v51 = vsel %vm7789_vm4, %v2321_v36, 0.0  ;;  %v7987_v15 = vld [vmem:[#allocation49_spill] sm:$0xff]  ;;  %v2322_v62 = vmul.f32 %v7988_v39, %v6517_v23  ;;  %v7990_v36 = vld [vmem:[#allocation63_spill] sm:$0xff] }
 0x381   : > { %v3028_v9 = vsel %vm2948_vm0, %v3027_v4, %v3023_v28  ;;  %2611 = vadd.xlane.f32.xlu0 %v2610_v41  ;;  %2689 = vadd.xlane.f32.xlu1 %v2688_v26  ;;  %v2312_v37 = vmul.f32 %v6517_v23, %v7987_v15  ;;  %v2311_v26 = vmul.f32 %v7989_v38, %v6252_v48 }
 0x382   : > { %v6666_v52 = vsel %vm7781_vm6, %v3028_v9, %v6481_v35  ;;  %v2450_v16 = vpop.xlane.xlu0 %2449  ;;  %v6668_v47 = vpop.xlane.xlu1 %2476  ;;  %v2694_v41 = vsel %vm7789_vm4, %v2322_v62, 0.0  ;;  %v2325_v9 = vmul.f32 %v6517_v23, %v7990_v36  ;;  %v7992_v62 = vld [vmem:[#allocation60_spill] sm:$0xff]  ;;  %v7993_v36 = vld [vmem:[#allocation61_spill] sm:$0xff]  ;;  %vm7788_vm6 = vcmask 1042434  }
 0x383   : > { %v2664_v35 = vsel %vm7789_vm4, %v2312_v37, 0.0  ;;  %v2323_v37 = vmul.f32 %v7991_v22, %v6517_v23  ;;  %v2326_v29 = vmul.f32 %v7992_v62, %v6517_v23  ;;  %v3071_v57 = vrot.slane %v2450_v16, %v6368_v30 }
 0x384   : > { %v3115_v14 = vrot.slane %v6668_v47, %v6308_v45 }
 0x385   : > { %2659 = vadd.xlane.f32.xlu0 %v2658_v25  ;;  %2692 = vadd.xlane.f32.xlu1 %v2691_v51  ;;  %v2661_v25 = vsel %vm7789_vm4, %v2311_v26, 0.0  ;;  %v2703_v51 = vsel %vm7789_vm4, %v2325_v9, 0.0  ;;  %v2324_v26 = vmul.f32 %v6517_v23, %v7993_v36 }
 0x386   : > { %v6676_v4 = vpop.xlane.xlu0 %2539  ;;  %v6678_v28 = vpop.xlane.xlu1 %2479 }
 0x387   : > { %v2700_v62 = vsel %vm7789_vm4, %v2324_v26, 0.0 }
 0x389   : > { %2665 = vadd.xlane.f32.xlu0 %v2664_v35  ;;  %2695 = vadd.xlane.f32.xlu1 %v2694_v41  ;;  %v2697_v35 = vsel %vm7789_vm4, %v2323_v37, 0.0  ;;  %v2706_v41 = vsel %vm7789_vm4, %v2326_v29, 0.0 }
 0x38a   : > { %v2453_v50 = vpop.xlane.xlu0 %2452  ;;  %v6686_v63 = vpop.xlane.xlu1 %2482 }
 0x38b   : > { %v3076_v55 = vrot.slane %v2453_v50, %v6384_v0 }
 0x38d   : > { %2662 = vadd.xlane.f32.xlu0 %v2661_v25  ;;  %2704 = vadd.xlane.f32.xlu1 %v2703_v51  ;;  %v7994_v25 = vld [vmem:[#allocation62_spill] sm:$0xff] }
 0x38e   : > { %v6694_v48 = vpop.xlane.xlu0 %2542  ;;  %v6696_v38 = vpop.xlane.xlu1 %2569  ;;  %v2327_v51 = vmul.f32 %v7994_v25, %v6517_v23 }
 0x390   : > { %v2709_v29 = vsel %vm7789_vm4, %v2327_v51, 0.0  ;;  %vm3509_vm4 = vcmask 1044484  }
 0x391   : > { %2698 = vadd.xlane.f32.xlu0 %v2697_v35  ;;  %2707 = vadd.xlane.f32.xlu1 %v2706_v41 }
 0x392   : > { %v2456_v9 = vpop.xlane.xlu0 %2455  ;;  %v6702_v22 = vpop.xlane.xlu1 %2617 }
 0x393   : > { %v3081_v17 = vrot.slane %v2456_v9, %v6388_v2 }
 0x395   : > { %2701 = vadd.xlane.f32.xlu0 %v2700_v62 }
 0x396   : > { %v6707_v39 = vpop.xlane.xlu0 %2545  ;;  %v6709_v19 = vpop.xlane.xlu1 %2623 }
 0x397   : > { %7995 = vst [vmem:[#allocation136_spill] sm:$0xff] %v6709_v19 }
 0x399   : > { %2710 = vadd.xlane.f32.xlu0 %v2709_v29  ;;  %v3066_v29 = vrot.slane %v6630_v60, %v6373_v46 }
 0x39a   : > { %v2459_v37 = vpop.xlane.xlu0 %2458  ;;  %v6712_v36 = vpop.xlane.xlu1 %2491 }
 0x39b   : > { %v3067_v49 = vsel %vm2892_vm7, %v3066_v29, %v6592_v27  ;;  %v3086_v33 = vrot.slane %v2459_v37, %v6406_v31 }
 0x39c   : > { %v3072_v58 = vsel %vm2899_vm8, %v3071_v57, %v3067_v49 }
 0x39d   : > { %v3077_v16 = vsel %vm2906_vm9, %v3076_v55, %v3072_v58 }
 0x39e   : > { %v6714_v35 = vpop.xlane.xlu0 %2548  ;;  %v6716_v41 = vpop.xlane.xlu1 %2581  ;;  %v3082_v50 = vsel %vm2913_vm10, %v3081_v17, %v3077_v16 }
 0x39f   : > { %v3087_v27 = vsel %vm2920_vm11, %v3086_v33, %v3082_v50 }
 0x3a2   : > { %v2462_v53 = vpop.xlane.xlu0 %2461  ;;  %v6718_v26 = vpop.xlane.xlu1 %2494 }
 0x3a3   : > { %v3091_v20 = vrot.slane %v2462_v53, %v6420_v59 }
 0x3a5   : > { %v3092_v37 = vsel %vm2927_vm12, %v3091_v20, %v3087_v27 }
 0x3a6   : > { %v6720_v7 = vpop.xlane.xlu0 %2551  ;;  %v6722_v23 = vpop.xlane.xlu1 %2584 }
 0x3aa   : > { %v2465_v62 = vpop.xlane.xlu0 %2464  ;;  %v6724_v25 = vpop.xlane.xlu1 %2497 }
 0x3ab   : > { %v3096_v18 = vrot.slane %v2465_v62, %v6434_v10 }
 0x3ad   : > { %v3097_v57 = vsel %vm2934_vm14, %v3096_v18, %v3092_v37 }
 0x3ae   : > { %v6726_v1 = vpop.xlane.xlu0 %2554  ;;  %v6728_v51 = vpop.xlane.xlu1 %2587 }
 0x3b2   : > { %v2468_v12 = vpop.xlane.xlu0 %2467  ;;  %v6733_v15 = vpop.xlane.xlu1 %2500 }
 0x3b3   : > { %v3101_v9 = vrot.slane %v2468_v12, %v6448_v56 }
 0x3b5   : > { %v3102_v58 = vsel %vm7790_vm15, %v3101_v9, %v3097_v57 }
 0x3b6   : > { %v6742_v54 = vpop.xlane.xlu0 %2557  ;;  %v6744_v60 = vpop.xlane.xlu1 %2590 }
 0x3ba   : > { %v2471_v29 = vpop.xlane.xlu0 %2470  ;;  %v6752_v49 = vpop.xlane.xlu1 %2503 }
 0x3bb   : > { %v3106_v53 = vrot.slane %v2471_v29, %v6462_v43 }
 0x3bd   : > { %v3107_v55 = vsel %vm2948_vm0, %v3106_v53, %v3102_v58 }
 0x3be   : > { %v6760_v17 = vsel %vm7788_vm6, %v3107_v55, %v6666_v52  ;;  %v6762_v12 = vpop.xlane.xlu0 %2560  ;;  %v6764_v33 = vpop.xlane.xlu1 %2593  ;;  %vm8004_vm6 = vcmask 458112  }
 0x3bf   : > { %7996 = vst [vmem:[#allocation137_spill] sm:$0xff] %v6764_v33 }
 0x3c2   : > { %v2474_v20 = vpop.xlane.xlu0 %2473  ;;  %v6766_v62 = vpop.xlane.xlu1 %2506 }
 0x3c3   : > { %v3111_v40 = vrot.slane %v2474_v20, %v6305_v42 }
 0x3c5   : > { %v3116_v34 = vsel %vm2850_vm13, %v3115_v14, %v3111_v40 }
 0x3c6   : > { %v6768_v16 = vpop.xlane.xlu0 %2572  ;;  %v6770_v18 = vpop.xlane.xlu1 %2596 }
 0x3c7   : > { %7997 = vst [vmem:[#allocation138_spill] sm:$0xff] %v6770_v18 }
 0x3ca   : > { %v2486_v50 = vpop.xlane.xlu0 %2485  ;;  %v6772_v27 = vpop.xlane.xlu1 %2509 }
 0x3cb   : > { %v3130_v20 = vrot.slane %v2486_v50, %v6340_v61 }
 0x3ce   : > { %v6774_v9 = vpop.xlane.xlu0 %2575  ;;  %v6776_v37 = vpop.xlane.xlu1 %2599 }
 0x3cf   : > { %7998 = vst [vmem:[#allocation139_spill] sm:$0xff] %v6776_v37  ;;  %v3120_v37 = vrot.slane %v6678_v28, %v6321_v13 }
 0x3d1   : > { %v3121_v19 = vsel %vm2857_vm1, %v3120_v37, %v3116_v34  ;;  %v3140_v34 = vrot.slane %v6712_v36, %v6354_v32 }
 0x3d2   : > { %v6778_v52 = vpop.xlane.xlu0 %2620  ;;  %v6780_v29 = vpop.xlane.xlu1 %2512 }
 0x3d6   : > { %v2489_v57 = vpop.xlane.xlu0 %2488  ;;  %v6782_v53 = vpop.xlane.xlu1 %2602 }
 0x3d7   : > { %7999 = vst [vmem:[#allocation140_spill] sm:$0xff] %v6782_v53 }
 0x3da   : > { %v6784_v58 = vpop.xlane.xlu0 %2578  ;;  %v6786_v55 = vpop.xlane.xlu1 %2515 }
 0x3de   : > { %v6789_v5 = vpop.xlane.xlu0 %2626  ;;  %v6791_v3 = vpop.xlane.xlu1 %2605 }
 0x3df   : > { %8000 = vst [vmem:[#allocation141_spill] sm:$0xff] %v6789_v5  ;;  %8001 = vst [vmem:[#allocation142_spill] sm:$0xff] %v6791_v3  ;;  %v3125_v5 = vrot.slane %v6686_v63, %v6334_v11  ;;  %v3135_v3 = vrot.slane %v2489_v57, %v6348_v6  ;;  %v3145_v57 = vrot.slane %v6718_v26, %v6373_v46 }
 0x3e0   : > { %v3214_v26 = vrot.slane %v6650_v21, %v6348_v6 }
 0x3e1   : > { %v3126_v14 = vsel %vm2864_vm2, %v3125_v5, %v3121_v19 }
 0x3e2   : > { %v6798_v18 = vpop.xlane.xlu0 %2629  ;;  %v6800_v53 = vpop.xlane.xlu1 %2653  ;;  %v3131_v40 = vsel %vm2871_vm3, %v3130_v20, %v3126_v14  ;;  %v3155_v14 = vrot.slane %v6733_v15, %v6384_v0  ;;  %v3229_v15 = vrot.slane %v6707_v39, %v6368_v30  ;;  %v3215_v21 = vsel %vm2878_vm5, %v3214_v26, %v6606_v24 }
 0x3e3   : > { %8002 = vst [vmem:[#allocation143_spill] sm:$0xff] %v6800_v53  ;;  %v3136_v28 = vsel %vm2878_vm5, %v3135_v3, %v3131_v40  ;;  %v3150_v3 = vrot.slane %v6724_v25, %v6368_v30  ;;  %v3219_v40 = vrot.slane %v6676_v4, %v6354_v32  ;;  %v3224_v25 = vrot.slane %v6694_v48, %v6373_v46 }
 0x3e4   : > { %v3141_v63 = vsel %vm8004_vm6, %v3140_v34, %v3136_v28  ;;  %v3160_v34 = vrot.slane %v6752_v49, %v6388_v2  ;;  %v3234_v4 = vrot.slane %v6714_v35, %v6384_v0  ;;  %v3239_v49 = vrot.slane %v6720_v7, %v6388_v2 }
 0x3e5   : > { %v3146_v5 = vsel %vm2892_vm7, %v3145_v57, %v3141_v63  ;;  %v3220_v48 = vsel %vm8004_vm6, %v3219_v40, %v3215_v21  ;;  %v3269_v24 = vrot.slane %v6696_v38, %v6305_v42  ;;  %v3244_v35 = vrot.slane %v6726_v1, %v6406_v31 }
 0x3e6   : > { %v6807_v33 = vpop.xlane.xlu0 %2632  ;;  %v6809_v47 = vpop.xlane.xlu1 %2656  ;;  %v3151_v19 = vsel %vm2899_vm8, %v3150_v3, %v3146_v5  ;;  %v3165_v3 = vrot.slane %v6766_v62, %v6406_v31  ;;  %v3225_v39 = vsel %vm2892_vm7, %v3224_v25, %v3220_v48  ;;  %v3283_v40 = vrot.slane %v6784_v58, %v6334_v11 }
 0x3e7   : > { %8003 = vst [vmem:[#allocation144_spill] sm:$0xff] %v6809_v47  ;;  %v3156_v28 = vsel %vm2906_vm9, %v3155_v14, %v3151_v19  ;;  %v3273_v19 = vrot.slane %v6768_v16, %v6308_v45  ;;  %v3278_v14 = vrot.slane %v6774_v9, %v6321_v13  ;;  %v3230_v62 = vsel %vm2899_vm8, %v3229_v15, %v3225_v39 }
 0x3e8   : > { %v3161_v5 = vsel %vm2913_vm10, %v3160_v34, %v3156_v28  ;;  %v3249_v16 = vrot.slane %v6742_v54, %v6420_v59  ;;  %v3235_v28 = vsel %vm2906_vm9, %v3234_v4, %v3230_v62  ;;  %v3254_v1 = vrot.slane %v6762_v12, %v6434_v10 }
 0x3e9   : > { %v3166_v38 = vsel %vm2920_vm11, %v3165_v3, %v3161_v5  ;;  %v3170_v9 = vrot.slane %v6772_v27, %v6420_v59  ;;  %v3240_v25 = vsel %vm2913_vm10, %v3239_v49, %v3235_v28  ;;  %v3274_v34 = vsel %vm2850_vm13, %v3273_v19, %v3269_v24 }
 0x3ea   : > { %v6816_v37 = vpop.xlane.xlu0 %2635  ;;  %v6818_v50 = vpop.xlane.xlu1 %2614  ;;  %v3245_v15 = vsel %vm2920_vm11, %v3244_v35, %v3240_v25  ;;  %v3279_v54 = vsel %vm2857_vm1, %v3278_v14, %v3274_v34  ;;  %v3175_v12 = vrot.slane %v6780_v29, %v6434_v10  ;;  %v3288_v48 = vrot.slane %v6716_v41, %v6340_v61 }
 0x3eb   : > { %v3171_v58 = vsel %vm2927_vm12, %v3170_v9, %v3166_v38  ;;  %v3250_v4 = vsel %vm2927_vm12, %v3249_v16, %v3245_v15  ;;  %v3284_v27 = vsel %vm2864_vm2, %v3283_v40, %v3279_v54  ;;  %v3259_v3 = vrot.slane %v6632_v8, %v6448_v56 }
 0x3ec   : > { %v3255_v49 = vsel %vm2934_vm14, %v3254_v1, %v3250_v4  ;;  %v3176_v19 = vsel %vm2934_vm14, %v3175_v12, %v3171_v58  ;;  %v3289_v39 = vsel %vm2871_vm3, %v3288_v48, %v3284_v27  ;;  %v3180_v24 = vrot.slane %v6786_v55, %v6448_v56  ;;  %v8006_v4 = vld [vmem:[#allocation137_spill] sm:$0xff] }
 0x3ed   : > { %v3293_v29 = vrot.slane %v6722_v23, %v6348_v6  ;;  %v3260_v41 = vsel %vm7790_vm15, %v3259_v3, %v3255_v49  ;;  %vm3507_vm6 = vcmask 1043459   ;;  %v3264_v8 = vrot.slane %v6652_v44, %v6462_v43  ;;  %v8007_v48 = vld [vmem:[#allocation141_spill] sm:$0xff]  ;;  %v8008_v49 = vld [vmem:[#allocation136_spill] sm:$0xff] }
 0x3ee   : > { %v6823_v53 = vpop.xlane.xlu0 %2638  ;;  %v6825_v47 = vpop.xlane.xlu1 %2668  ;;  %v3181_v16 = vsel %vm7790_vm15, %v3180_v24, %v3176_v19  ;;  %v3298_v38 = vrot.slane %v6728_v51, %v6354_v32  ;;  %vm8005_vm15 = vcmask 458112   ;;  %v3303_v34 = vrot.slane %v6744_v60, %v6373_v46  ;;  %v8009_v24 = vld [vmem:[#allocation138_spill] sm:$0xff] }
 0x3ef   : > { %v3294_v40 = vsel %vm2878_vm5, %v3293_v29, %v3289_v39  ;;  %v3265_v23 = vsel %vm2948_vm0, %v3264_v8, %v3260_v41  ;;  %v3352_v51 = vrot.slane %v6778_v52, %v6308_v45  ;;  %v3308_v12 = vrot.slane %v8006_v4, %v6368_v30 }
 0x3f0   : > { %v3299_v25 = vsel %vm8005_vm15, %v3298_v38, %v3294_v40  ;;  %v3362_v60 = vrot.slane %v8007_v48, %v6334_v11  ;;  %v3357_v52 = vrot.slane %v8008_v49, %v6321_v13  ;;  %v3367_v19 = vrot.slane %v6798_v18, %v6340_v61  ;;  %v8010_v40 = vld [vmem:[#allocation139_spill] sm:$0xff]  ;;  %v8012_v48 = vld [vmem:[#allocation142_spill] sm:$0xff] }
 0x3f1   : > { %v3304_v58 = vsel %vm2892_vm7, %v3303_v34, %v3299_v25  ;;  %v3372_v29 = vrot.slane %v6807_v33, %v6348_v6  ;;  %v3382_v18 = vrot.slane %v6823_v53, %v6373_v46 }
 0x3f2   : > { %v6831_v36 = vpop.xlane.xlu0 %2641  ;;  %v6833_v20 = vpop.xlane.xlu1 %2671  ;;  %v3309_v3 = vsel %vm2899_vm8, %v3308_v12, %v3304_v58 }
 0x3f3   : > { %v3387_v33 = vrot.slane %v6831_v36, %v6368_v30  ;;  %v3436_v58 = vrot.slane %v6833_v20, %v6321_v13 }
 0x3f6   : > { %v6846_v63 = vpop.xlane.xlu0 %2644  ;;  %v6848_v57 = vpop.xlane.xlu1 %2674 }
 0x3f7   : > { %v3392_v34 = vrot.slane %v6846_v63, %v6384_v0  ;;  %v8011_v63 = vld [vmem:[#allocation140_spill] sm:$0xff] }
 0x3f8   : > { %v3323_v12 = vrot.slane %v8011_v63, %v6406_v31 }
 0x3fa   : > { %v6871_v26 = vpop.xlane.xlu0 %2647  ;;  %v6873_v7 = vpop.xlane.xlu1 %2677 }
 0x3fb   : > { %v3397_v36 = vrot.slane %v6871_v26, %v6388_v2  ;;  %v3446_v13 = vrot.slane %v6873_v7, %v6340_v61 }
 0x3fe   : > { %v6891_v21 = vpop.xlane.xlu0 %2650  ;;  %v6893_v5 = vpop.xlane.xlu1 %2680 }
 0x402   : > { %v2519_v35 = vpop.xlane.xlu0 %2518  ;;  %v6908_v14 = vpop.xlane.xlu1 %2683 }
 0x403   : > { %v3185_v62 = vrot.slane %v2519_v35, %v6462_v43  ;;  %v3313_v35 = vrot.slane %v8009_v24, %v6384_v0  ;;  %v3456_v61 = vrot.slane %v6908_v14, %v6354_v32 }
 0x405   : > { %v3186_v55 = vsel %vm2948_vm0, %v3185_v62, %v3181_v16  ;;  %v3377_v62 = vrot.slane %v6816_v37, %v6354_v32  ;;  %v3314_v16 = vsel %vm2906_vm9, %v3313_v35, %v3309_v3  ;;  %v3431_v37 = vrot.slane %v6825_v47, %v6308_v45  ;;  %v8013_v35 = vld [vmem:[#allocation143_spill] sm:$0xff] }
 0x406   : > { %v3508_v28 = vsel %vm3507_vm6, %v3186_v55, %v6760_v17  ;;  %v6924_v1 = vpop.xlane.xlu0 %2608  ;;  %v6926_v9 = vpop.xlane.xlu1 %2686  ;;  %v3348_v17 = vrot.slane %v6702_v22, %v6305_v42  ;;  %v3318_v55 = vrot.slane %v8010_v40, %v6388_v2  ;;  %v3441_v45 = vrot.slane %v6848_v57, %v6334_v11 }
 0x407   : > { %v6929_v44 = vsel %vm3509_vm4, %v3265_v23, %v3508_v28  ;;  %v3402_v47 = vrot.slane %v6891_v21, %v6406_v31  ;;  %v3451_v57 = vrot.slane %v6893_v5, %v6348_v6  ;;  %v3333_v24 = vrot.slane %v6924_v1, %v6434_v10 }
 0x408   : > { %v3353_v27 = vsel %vm2850_vm13, %v3352_v51, %v3348_v17  ;;  %v3319_v51 = vsel %vm2913_vm10, %v3318_v55, %v3314_v16  ;;  %v3461_v6 = vrot.slane %v6926_v9, %v6373_v46 }
 0x409   : > { %v3358_v41 = vsel %vm2857_vm1, %v3357_v52, %v3353_v27  ;;  %v3324_v49 = vsel %vm2920_vm11, %v3323_v12, %v3319_v51 }
 0x40a   : > { %v6936_v15 = vpop.xlane.xlu0 %2611  ;;  %v6938_v54 = vpop.xlane.xlu1 %2689  ;;  %v3363_v8 = vsel %vm2864_vm2, %v3362_v60, %v3358_v41  ;;  %v3328_v60 = vrot.slane %v8012_v48, %v6420_v59  ;;  %v8020_v48 = vld [vmem:[#allocation6_spill] sm:$0xff] }
 0x40b   : > { %v3368_v38 = vsel %vm2871_vm3, %v3367_v19, %v3363_v8  ;;  %v3338_v41 = vrot.slane %v6936_v15, %v6448_v56  ;;  %v3466_v32 = vrot.slane %v6938_v54, %v6368_v30 }
 0x40c   : > { %v3373_v25 = vsel %vm2878_vm5, %v3372_v29, %v3368_v38  ;;  %v3407_v29 = vrot.slane %v8013_v35, %v6420_v59  ;;  %v3329_v46 = vsel %vm2927_vm12, %v3328_v60, %v3324_v49 }
 0x40d   : > { %v3378_v17 = vsel %vm8005_vm15, %v3377_v62, %v3373_v25  ;;  %v3334_v15 = vsel %vm2934_vm14, %v3333_v24, %v3329_v46 }
 0x40e   : > { %v6953_v39 = vpop.xlane.xlu0 %2659  ;;  %v2693_v22 = vpop.xlane.xlu1 %2692  ;;  %v3383_v4 = vsel %vm2892_vm7, %v3382_v18, %v3378_v17 }
 0x40f   : > { %v3388_v27 = vsel %vm2899_vm8, %v3387_v33, %v3383_v4  ;;  %v3471_v8 = vrot.slane %v2693_v22, %v6384_v0  ;;  %v3417_v30 = vrot.slane %v6953_v39, %v6448_v56  ;;  %v8015_v0 = vld [vmem:[#allocation144_spill] sm:$0xff] }
 0x410   : > { %v3393_v11 = vsel %vm2906_vm9, %v3392_v34, %v3388_v27  ;;  %v3412_v22 = vrot.slane %v8015_v0, %v6434_v10 }
 0x411   : > { %v3398_v52 = vsel %vm2913_vm10, %v3397_v36, %v3393_v11  ;;  %v8021_v11 = vld [vmem:[#allocation5_spill] sm:$0xff] }
 0x412   : > { %v2666_v23 = vpop.xlane.xlu0 %2665  ;;  %v2696_v28 = vpop.xlane.xlu1 %2695  ;;  %v3403_v19 = vsel %vm2920_vm11, %v3402_v47, %v3398_v52  ;;  %v8023_v49 = vsub.s32 2, %v8021_v11  ;;  %v8026_v24 = vsub.s32 5, %v8021_v11 }
 0x413   : > { %v3427_v53 = vrot.slane %v2666_v23, %v6305_v42  ;;  %v3408_v9 = vsel %vm2927_vm12, %v3407_v29, %v3403_v19  ;;  %v3476_v18 = vrot.slane %v2696_v28, %v6388_v2  ;;  %v3343_v28 = vrot.slane %v6818_v50, %v6462_v43 }
 0x414   : > { %v8028_v29 = vsub.s32 7, %v8021_v11 }
 0x415   : > { %v3432_v42 = vsel %vm2850_vm13, %v3431_v37, %v3427_v53  ;;  %vm8014_vm13 = vmmov %vm8005_vm15 }
 0x416   : > { %v3437_v20 = vsel %vm2857_vm1, %v3436_v58, %v3432_v42  ;;  %v2663_v26 = vpop.xlane.xlu0 %2662  ;;  %v2705_v3 = vpop.xlane.xlu1 %2704  ;;  %vm8016_vm1 = vcmask 982912  }
 0x417   : > { %v3442_v21 = vsel %vm2864_vm2, %v3441_v45, %v3437_v20  ;;  %v3339_v55 = vsel %vm8016_vm1, %v3338_v41, %v3334_v15  ;;  %v3422_v33 = vrot.slane %v2663_v26, %v6462_v43  ;;  %v3491_v37 = vrot.slane %v2705_v3, %v6434_v10  ;;  %v8019_v10 = vld [vmem:[#allocation7_spill] sm:$0xff] }
 0x418   : > { %v3447_v7 = vsel %vm2871_vm3, %v3446_v13, %v3442_v21  ;;  %vm3511_vm2 = vcmask 1045509   ;;  %v3344_v34 = vsel %vm2948_vm0, %v3343_v28, %v3339_v55  ;;  %vm8017_vm3 = vmmov %vm8016_vm1  ;;  %v8025_v3 = vsub.s32 4, %v8021_v11 }
 0x419   : > { %v3452_v5 = vsel %vm2878_vm5, %v3451_v57, %v3447_v7  ;;  %vm3513_vm5 = vcmask 1046534   ;;  %v8022_v57 = vsub.s32 1, %v8021_v11 }
 0x41a   : > { %v3457_v14 = vsel %vm8014_vm13, %v3456_v61, %v3452_v5  ;;  %v2699_v62 = vpop.xlane.xlu0 %2698  ;;  %v2708_v23 = vpop.xlane.xlu1 %2707  ;;  %v8024_v61 = vsub.s32 3, %v8021_v11  ;;  %v8027_v5 = vsub.s32 6, %v8021_v11 }
 0x41b   : > { %v3462_v1 = vsel %vm2892_vm7, %v3461_v6, %v3457_v14  ;;  %v3481_v40 = vrot.slane %v2699_v62, %v6406_v31  ;;  %v3413_v31 = vsel %vm2934_vm14, %v3412_v22, %v3408_v9  ;;  %v3496_v51 = vrot.slane %v2708_v23, %v6448_v56  ;;  %vm8018_vm7 = vmmov %vm8016_vm1 }
 0x41c   : > { %v3467_v16 = vsel %vm2899_vm8, %v3466_v32, %v3462_v1  ;;  %v3418_v53 = vsel %vm8017_vm3, %v3417_v30, %v3413_v31  ;;  %vm3515_vm8 = vcmask 1047559   ;;  %v3512_v56 = vsel %vm3511_vm2, %v3344_v34, %v6929_v44 }
 0x41d   : > { %v3472_v54 = vsel %vm2906_vm9, %v3471_v8, %v3467_v16  ;;  %v3423_v58 = vsel %vm2948_vm0, %v3422_v33, %v3418_v53  ;;  %vm2712_vm9 = vcmp.lt.s32.totalorder %v8019_v10, 8  ;;  %v8031_v10 = vld [vmem:[#allocation64_spill] sm:$0xff] }
 0x41e   : > { %v3477_v38 = vsel %vm2913_vm10, %v3476_v18, %v3472_v54  ;;  %v2702_v2 = vpop.xlane.xlu0 %2701  ;;  %v3514_v47 = vsel %vm3513_vm5, %v3423_v58, %v3512_v56  ;;  %vm8032_vm10 = vcmask 31744  }
 0x41f   : > { %v3482_v39 = vsel %vm2920_vm11, %v3481_v40, %v3477_v38  ;;  %v3486_v25 = vrot.slane %v2702_v2, %v6420_v59  ;;  %vm8033_vm11 = vmmov %vm8032_vm10 }
 0x421   : > { %v3487_v17 = vsel %vm2927_vm12, %v3486_v25, %v3482_v39  ;;  %vm8039_vm12 = vmmov %vm8032_vm10 }
 0x422   : > { %v3492_v50 = vsel %vm2934_vm14, %v3491_v37, %v3487_v17  ;;  %v2711_v36 = vpop.xlane.xlu0 %2710  ;;  %v8029_v17 = vld [vmem:[#allocation67_spill] sm:$0xff]  ;;  %vm8042_vm14 = vmmov %vm8032_vm10 }
 0x423   : > { %v3501_v59 = vrot.slane %v2711_v36, %v6462_v43  ;;  %v3497_v4 = vsel %vm8018_vm7, %v3496_v51, %v3492_v50  ;;  %v8030_v50 = vld [vmem:[#allocation65_spill] sm:$0xff] }
 0x425   : > { %v3502_v45 = vsel %vm2948_vm0, %v3501_v59, %v3497_v4  ;;  %vm8043_vm0 = vmmov %vm8032_vm10 }
 0x426   : > { %v3516_v42 = vsel %vm3515_vm8, %v3502_v45, %v3514_v47  ;;  %vm8044_vm15 = vmmov %vm8043_vm0 }
 0x427   : > { %v3518_v63 = vsel %vm2712_vm9, %v3516_v42, -inf  ;;  %v8034_v42 = vld [vmem:[#allocation97_spill] sm:$0xff]  ;;  %vm8046_vm13 = vmmov %vm8043_vm0 }
 0x428   : > { %3519 = vmax.xlane.f32.xlu1 %v3518_v63  ;;  %vm8047_vm1 = vmmov %vm8043_vm0 }
 0x429   : > { %vm8049_vm3 = vmmov %vm8043_vm0 }
 0x42a   : > { %vm8053_vm7 = vmmov %vm8043_vm0 }
 0x42b   : > { %vm8055_vm9 = vmmov %vm8043_vm0 }
 0x4b1   : > { %v3520_v12 = vpop.xlane.xlu1 %3519 }
 0x4b2   : > { %v3521_v43 = vsub.f32 %v3518_v63, %v3520_v12  ;;  %v8035_v12 = vld [vmem:[#allocation83_spill] sm:$0xff] }
 0x4b4   : > { %v3522_v27 = vmul.f32 1.442695, %v3521_v43 }
 0x4b6   : > { %5160 = vpow2.f32 %v3522_v27  ;;  %v8036_v27 = vld [vmem:[#allocation99_spill] sm:$0xff] }
 0x4c3   : > { %v5161_v13 = vpop.eup %5160 }
 0x4c4   : > { %3524 = vadd.xlane.f32.xlu0 %v5161_v13 }
 0x54d   : > { %v3525_v20 = vpop.xlane.xlu0 %3524 }
 0x54e   : > { %5162 = vrcp.f32 %v3525_v20  ;;  %v8037_v20 = vld [vmem:[#allocation81_spill] sm:$0xff] }
 0x55b   : > { %v5163_v44 = vpop.eup %5162 }
 0x55c   : > { %v3527_v26 = vmul.f32 %v5163_v44, %v5161_v13 }
 0x55e   : > { %v7061_v60 = vrot.slane %v3527_v26, %v8020_v48  ;;  %4568 = vst [vmem:[%s262_s29] sm:$0xff] %v3527_v26  ;;  %v7070_v21 = vrot.slane %v3527_v26, %v8022_v57  ;;  %v7074_v52 = vrot.slane %v3527_v26, %v8023_v49  ;;  %v7082_v7 = vrot.slane %v3527_v26, %v8024_v61  ;;  %v8040_v61 = vld [vmem:[#allocation80_spill] sm:$0xff] }
 0x55f   : > { %v7090_v19 = vrot.slane %v3527_v26, %v8025_v3  ;;  %v7098_v6 = vrot.slane %v3527_v26, %v8026_v24  ;;  %v7106_v35 = vrot.slane %v3527_v26, %v8027_v5  ;;  %v7116_v41 = vrot.slane %v3527_v26, %v8028_v29  ;;  %v8038_v26 = vld [vmem:[#allocation96_spill] sm:$0xff]  ;;  %v8041_v5 = vld [vmem:[#allocation113_spill] sm:$0xff] }
 0x560   : > { %3537 = vbcast.lane.b32.xlu0 %v7061_v60, 264  ;;  %3533 = vbcast.lane.b32.xlu1 %v7061_v60, 256 }
 0x564   : > { %3667 = vbcast.lane.b32.xlu0 %v7074_v52, 256  ;;  %3600 = vbcast.lane.b32.xlu1 %v7070_v21, 256 }
 0x568   : > { %3541 = vbcast.lane.b32.xlu0 %v7061_v60, 272  ;;  %3604 = vbcast.lane.b32.xlu1 %v7070_v21, 264 }
 0x56c   : > { %3734 = vbcast.lane.b32.xlu0 %v7082_v7, 256  ;;  %3671 = vbcast.lane.b32.xlu1 %v7074_v52, 264 }
 0x570   : > { %3675 = vbcast.lane.b32.xlu0 %v7074_v52, 272  ;;  %3608 = vbcast.lane.b32.xlu1 %v7070_v21, 272 }
 0x574   : > { %3805 = vbcast.lane.b32.xlu0 %v7090_v19, 264  ;;  %3738 = vbcast.lane.b32.xlu1 %v7082_v7, 264 }
 0x578   : > { %3612 = vbcast.lane.b32.xlu0 %v7070_v21, 280  ;;  %3801 = vbcast.lane.b32.xlu1 %v7090_v19, 256 }
 0x57c   : > { %3868 = vbcast.lane.b32.xlu0 %v7098_v6, 256  ;;  %3545 = vbcast.lane.b32.xlu1 %v7061_v60, 280 }
 0x580   : > { %3679 = vbcast.lane.b32.xlu0 %v7074_v52, 280  ;;  %3742 = vbcast.lane.b32.xlu1 %v7082_v7, 272 }
 0x584   : > { %3935 = vbcast.lane.b32.xlu0 %v7106_v35, 256  ;;  %3872 = vbcast.lane.b32.xlu1 %v7098_v6, 264 }
 0x588   : > { %3549 = vbcast.lane.b32.xlu0 %v7061_v60, 288  ;;  %3809 = vbcast.lane.b32.xlu1 %v7090_v19, 272 }
 0x58c   : > { %3746 = vbcast.lane.b32.xlu0 %v7082_v7, 280  ;;  %3939 = vbcast.lane.b32.xlu1 %v7106_v35, 264 }
 0x590   : > { %4002 = vbcast.lane.b32.xlu0 %v7116_v41, 256  ;;  %3616 = vbcast.lane.b32.xlu1 %v7070_v21, 288 }
 0x594   : > { %3683 = vbcast.lane.b32.xlu0 %v7074_v52, 288  ;;  %3876 = vbcast.lane.b32.xlu1 %v7098_v6, 272 }
 0x598   : > { %3943 = vbcast.lane.b32.xlu0 %v7106_v35, 272  ;;  %4006 = vbcast.lane.b32.xlu1 %v7116_v41, 264 }
 0x59c   : > { %3620 = vbcast.lane.b32.xlu0 %v7070_v21, 296  ;;  %3813 = vbcast.lane.b32.xlu1 %v7090_v19, 280 }
 0x5a0   : > { %3880 = vbcast.lane.b32.xlu0 %v7098_v6, 280  ;;  %3553 = vbcast.lane.b32.xlu1 %v7061_v60, 296 }
 0x5a4   : > { %3687 = vbcast.lane.b32.xlu0 %v7074_v52, 296  ;;  %3750 = vbcast.lane.b32.xlu1 %v7082_v7, 288 }
 0x5a8   : > { %3947 = vbcast.lane.b32.xlu0 %v7106_v35, 280  ;;  %4010 = vbcast.lane.b32.xlu1 %v7116_v41, 272 }
 0x5ac   : > { %3624 = vbcast.lane.b32.xlu0 %v7070_v21, 304  ;;  %3817 = vbcast.lane.b32.xlu1 %v7090_v19, 288 }
 0x5b0   : > { %3884 = vbcast.lane.b32.xlu0 %v7098_v6, 288  ;;  %3557 = vbcast.lane.b32.xlu1 %v7061_v60, 304 }
 0x5b4   : > { %3691 = vbcast.lane.b32.xlu0 %v7074_v52, 304  ;;  %3754 = vbcast.lane.b32.xlu1 %v7082_v7, 296 }
 0x5b8   : > { %3951 = vbcast.lane.b32.xlu0 %v7106_v35, 288  ;;  %4014 = vbcast.lane.b32.xlu1 %v7116_v41, 280 }
 0x5bc   : > { %3628 = vbcast.lane.b32.xlu0 %v7070_v21, 312  ;;  %3821 = vbcast.lane.b32.xlu1 %v7090_v19, 296 }
 0x5c0   : > { %3888 = vbcast.lane.b32.xlu0 %v7098_v6, 296  ;;  %3561 = vbcast.lane.b32.xlu1 %v7061_v60, 312 }
 0x5c4   : > { %3695 = vbcast.lane.b32.xlu0 %v7074_v52, 312  ;;  %3758 = vbcast.lane.b32.xlu1 %v7082_v7, 304 }
 0x5c8   : > { %3955 = vbcast.lane.b32.xlu0 %v7106_v35, 296  ;;  %4018 = vbcast.lane.b32.xlu1 %v7116_v41, 288 }
 0x5cc   : > { %3632 = vbcast.lane.b32.xlu0 %v7070_v21, 320  ;;  %3825 = vbcast.lane.b32.xlu1 %v7090_v19, 304 }
 0x5d0   : > { %3892 = vbcast.lane.b32.xlu0 %v7098_v6, 304  ;;  %3565 = vbcast.lane.b32.xlu1 %v7061_v60, 320 }
 0x5d2   : > { %v3538_v32 = vpop.permute.xlu0 %3537  ;;  %v3534_v14 = vpop.permute.xlu1 %3533 }
 0x5d3   : > { %v4065_v58 = vmul.f32 %v3538_v32, %v8029_v17  ;;  %v4064_v36 = vmul.f32 %v3534_v14, %v8030_v50 }
 0x5d4   : > { %3699 = vbcast.lane.b32.xlu0 %v7074_v52, 320  ;;  %3762 = vbcast.lane.b32.xlu1 %v7082_v7, 312 }
 0x5d5   : > { %v4193_v45 = vsel %vm8032_vm10, %v4065_v58, 0.0  ;;  %v4192_v47 = vsel %vm8033_vm11, %v4064_v36, 0.0  ;;  %v8050_v36 = vld [vmem:[#allocation82_spill] sm:$0xff]  ;;  %vm8059_vm10 = vmmov %vm8043_vm0 }
 0x5d6   : > { %v3668_v62 = vpop.permute.xlu0 %3667  ;;  %v7154_v8 = vpop.permute.xlu1 %3600  ;;  %v4194_v24 = vadd.f32 %v4193_v45, %v4192_v47  ;;  %v8052_v47 = vld [vmem:[#allocation35_spill] sm:$0xff]  ;;  %vm8061_vm11 = vmmov %vm8043_vm0 }
 0x5d7   : > { %v4096_v63 = vmul.f32 %v3668_v62, %v8034_v42  ;;  %v4080_v44 = vmul.f32 %v7154_v8, %v8037_v20  ;;  %v8045_v8 = vld [vmem:[#allocation115_spill] sm:$0xff]  ;;  %v8057_v20 = vld [vmem:[#allocation33_spill] sm:$0xff] }
 0x5d8   : > { %3959 = vbcast.lane.b32.xlu0 %v7106_v35, 304  ;;  %4022 = vbcast.lane.b32.xlu1 %v7116_v41, 296 }
 0x5d9   : > { %v4266_v32 = vsel %vm8042_vm14, %v4096_v63, 0.0  ;;  %vm8063_vm14 = vmmov %vm8043_vm0 }
 0x5da   : > { %v3542_v1 = vpop.permute.xlu0 %3541  ;;  %v3605_v46 = vpop.permute.xlu1 %3604 }
 0x5db   : > { %v4066_v56 = vmul.f32 %v8031_v10, %v3542_v1  ;;  %v4081_v43 = vmul.f32 %v3605_v46, %v8035_v12  ;;  %v4229_v46 = vsel %vm8046_vm13, %v4080_v44, 0.0  ;;  %vm8068_vm13 = vmmov %vm8043_vm0 }
 0x5dc   : > { %3636 = vbcast.lane.b32.xlu0 %v7070_v21, 328  ;;  %3829 = vbcast.lane.b32.xlu1 %v7090_v19, 312 }
 0x5dd   : > { %v4195_v49 = vsel %vm8039_vm12, %v4066_v56, 0.0  ;;  %v4230_v14 = vsel %vm8043_vm0, %v4081_v43, 0.0  ;;  %v8051_v56 = vld [vmem:[#allocation66_spill] sm:$0xff]  ;;  %vm8062_vm12 = vmmov %vm8043_vm0 }
 0x5de   : > { %v7160_v9 = vpop.permute.xlu0 %3734  ;;  %v3672_v16 = vpop.permute.xlu1 %3671  ;;  %v8054_v43 = vld [vmem:[#allocation98_spill] sm:$0xff] }
 0x5df   : > { %v4097_v13 = vmul.f32 %v3672_v16, %v8036_v27  ;;  %v4112_v29 = vmul.f32 %v7160_v9, %v8041_v5  ;;  %v4196_v16 = vadd.f32 %v4195_v49, %v4194_v24 }
 0x5e0   : > { %3896 = vbcast.lane.b32.xlu0 %v7098_v6, 312  ;;  %3569 = vbcast.lane.b32.xlu1 %v7061_v60, 328 }
 0x5e1   : > { %v4267_v62 = vsel %vm8044_vm15, %v4097_v13, 0.0  ;;  %v4303_v63 = vsel %vm8053_vm7, %v4112_v29, 0.0  ;;  %v8056_v13 = vld [vmem:[#allocation112_spill] sm:$0xff]  ;;  %vm8067_vm15 = vmmov %vm8043_vm0 }
 0x5e2   : > { %v3676_v18 = vpop.permute.xlu0 %3675  ;;  %v3609_v15 = vpop.permute.xlu1 %3608  ;;  %v4268_v12 = vadd.f32 %v4267_v62, %v4266_v32  ;;  %v8064_v32 = vld [vmem:[#allocation85_spill] sm:$0xff]  ;;  %vm8073_vm7 = vmmov %vm8043_vm0 }
 0x5e3   : > { %v4098_v48 = vmul.f32 %v8038_v26, %v3676_v18  ;;  %v4082_v3 = vmul.f32 %v8040_v61, %v3609_v15  ;;  %v8048_v15 = vld [vmem:[#allocation131_spill] sm:$0xff] }
 0x5e4   : > { %3703 = vbcast.lane.b32.xlu0 %v7074_v52, 328  ;;  %3766 = vbcast.lane.b32.xlu1 %v7082_v7, 320 }
 0x5e5   : > { %v4269_v18 = vsel %vm8047_vm1, %v4098_v48, 0.0  ;;  %v4232_v50 = vsel %vm8049_vm3, %v4082_v3, 0.0  ;;  %vm8069_vm1 = vmmov %vm8043_vm0 }
 0x5e6   : > { %v7166_v30 = vpop.permute.xlu0 %3805  ;;  %v3739_v54 = vpop.permute.xlu1 %3738  ;;  %v4270_v26 = vadd.f32 %v4269_v18, %v4268_v12  ;;  %vm8071_vm3 = vmmov %vm8043_vm0  ;;  %v8075_v12 = vld [vmem:[#allocation34_spill] sm:$0xff] }
 0x5e7   : > { %v4113_v1 = vmul.f32 %v3739_v54, %v8045_v8  ;;  %v4129_v9 = vmul.f32 %v7166_v30, %v8048_v15  ;;  %v4231_v54 = vadd.f32 %v4230_v14, %v4229_v46  ;;  %v8066_v8 = vld [vmem:[#allocation17_spill] sm:$0xff] }
 0x5e8   : > { %3963 = vbcast.lane.b32.xlu0 %v7106_v35, 312  ;;  %4026 = vbcast.lane.b32.xlu1 %v7116_v41, 304 }
 0x5e9   : > { %v4304_v30 = vsel %vm8055_vm9, %v4113_v1, 0.0  ;;  %v4233_v48 = vadd.f32 %v4232_v50, %v4231_v54  ;;  %v7260_v49 = vsel %vm8059_vm10, %v4129_v9, 0.0  ;;  %v8074_v54 = vld [vmem:[#allocation16_spill] sm:$0xff]  ;;  %vm8076_vm9 = vmmov %vm8043_vm0 }
 0x5ea   : > { %v7170_v40 = vpop.permute.xlu0 %3612  ;;  %v7172_v0 = vpop.permute.xlu1 %3801  ;;  %v4305_v14 = vadd.f32 %v4304_v30, %v4303_v63  ;;  %vm8077_vm10 = vmmov %vm8043_vm0 }
 0x5eb   : > { %v4083_v10 = vmul.f32 %v8050_v36, %v7170_v40 }
 0x5ec   : > { %3640 = vbcast.lane.b32.xlu0 %v7070_v21, 336  ;;  %3833 = vbcast.lane.b32.xlu1 %v7090_v19, 320 }
 0x5ed   : > { %v4234_v5 = vsel %vm8061_vm11, %v4083_v10, 0.0  ;;  %vm8080_vm11 = vmmov %vm8043_vm0 }
 0x5ee   : > { %v7176_v22 = vpop.permute.xlu0 %3868  ;;  %v3546_v55 = vpop.permute.xlu1 %3545  ;;  %v4235_v50 = vadd.f32 %v4234_v5, %v4233_v48 }
 0x5ef   : > { %v4067_v45 = vmul.f32 %v8051_v56, %v3546_v55  ;;  %v4144_v1 = vmul.f32 %v7176_v22, %v8066_v8 }
 0x5f0   : > { %3900 = vbcast.lane.b32.xlu0 %v7098_v6, 320  ;;  %3573 = vbcast.lane.b32.xlu1 %v7061_v60, 336 }
 0x5f1   : > { %v4197_v29 = vsel %vm8062_vm12, %v4067_v45, 0.0  ;;  %v8072_v45 = vld [vmem:[#allocation69_spill] sm:$0xff]  ;;  %vm8082_vm12 = vmmov %vm8043_vm0 }
 0x5f2   : > { %v7180_v38 = vpop.permute.xlu0 %3679  ;;  %v7182_v33 = vpop.permute.xlu1 %3742  ;;  %v4198_v36 = vadd.f32 %v4197_v29, %v4196_v16 }
 0x5f3   : > { %v4099_v27 = vmul.f32 %v8054_v43, %v7180_v38  ;;  %v4114_v40 = vmul.f32 %v8056_v13, %v7182_v33  ;;  %v8060_v38 = vld [vmem:[#allocation19_spill] sm:$0xff] }
 0x5f4   : > { %3707 = vbcast.lane.b32.xlu0 %v7074_v52, 336  ;;  %3770 = vbcast.lane.b32.xlu1 %v7082_v7, 328 }
 0x5f5   : > { %v4271_v46 = vsel %vm8043_vm0, %v4099_v27, 0.0  ;;  %v4377_v27 = vsel %vm8076_vm9, %v4144_v1, 0.0  ;;  %v8087_v1 = vld [vmem:[#allocation103_spill] sm:$0xff]  ;;  %vm8098_vm9 = vmmov %vm8043_vm0 }
 0x5f6   : > { %v7186_v23 = vpop.permute.xlu0 %3935  ;;  %v7188_v2 = vpop.permute.xlu1 %3872 }
 0x5f7   : > { %v4160_v55 = vmul.f32 %v7186_v23, %v8057_v20  ;;  %v4145_v61 = vmul.f32 %v7188_v2, %v8060_v38  ;;  %v4306_v2 = vsel %vm8067_vm15, %v4114_v40, 0.0  ;;  %v8078_v40 = vld [vmem:[#allocation18_spill] sm:$0xff]  ;;  %v8079_v20 = vld [vmem:[#allocation71_spill] sm:$0xff]  ;;  %vm8088_vm15 = vmmov %vm8043_vm0 }
 0x5f8   : > { %3967 = vbcast.lane.b32.xlu0 %v7106_v35, 320  ;;  %4030 = vbcast.lane.b32.xlu1 %v7116_v41, 312  ;;  %v4307_v30 = vadd.f32 %v4306_v2, %v4305_v14 }
 0x5f9   : > { %v4414_v18 = vsel %vm8068_vm13, %v4160_v55, 0.0  ;;  %vm8089_vm13 = vmmov %vm8043_vm0 }
 0x5fa   : > { %v7192_v28 = vpop.permute.xlu0 %3549  ;;  %v7194_v39 = vpop.permute.xlu1 %3809 }
 0x5fc   : > { %3644 = vbcast.lane.b32.xlu0 %v7070_v21, 344  ;;  %3837 = vbcast.lane.b32.xlu1 %v7090_v19, 328 }
 0x5fe   : > { %v7198_v25 = vpop.permute.xlu0 %3746  ;;  %v3940_v31 = vpop.permute.xlu1 %3939 }
 0x5ff   : > { %v4161_v42 = vmul.f32 %v3940_v31, %v8052_v47  ;;  %v8058_v31 = vld [vmem:[#allocation32_spill] sm:$0xff]  ;;  %v4068_v47 = vmul.f32 %v7192_v28, %v8072_v45 }
 0x600   : > { %3904 = vbcast.lane.b32.xlu0 %v7098_v6, 328  ;;  %3577 = vbcast.lane.b32.xlu1 %v7061_v60, 344 }
 0x601   : > { %v4415_v33 = vsel %vm8063_vm14, %v4161_v42, 0.0  ;;  %v4199_v29 = vsel %vm8082_vm12, %v4068_v47, 0.0  ;;  %vm8084_vm14 = vmmov %vm8043_vm0  ;;  %v8095_v47 = vld [vmem:[#allocation21_spill] sm:$0xff] }
 0x602   : > { %v7202_v37 = vpop.permute.xlu0 %4002  ;;  %v3617_v34 = vpop.permute.xlu1 %3616  ;;  %v4416_v10 = vadd.f32 %v4415_v33, %v4414_v18  ;;  %v8083_v33 = vld [vmem:[#allocation101_spill] sm:$0xff]  ;;  %vm8102_vm12 = vmmov %vm8043_vm0 }
 0x603   : > { %v4084_v23 = vmul.f32 %v3617_v34, %v8064_v32  ;;  %v8070_v34 = vld [vmem:[#allocation87_spill] sm:$0xff]  ;;  %v8090_v18 = vld [vmem:[#allocation117_spill] sm:$0xff] }
 0x604   : > { %3711 = vbcast.lane.b32.xlu0 %v7074_v52, 344  ;;  %3774 = vbcast.lane.b32.xlu1 %v7082_v7, 336 }
 0x605   : > { %v4236_v42 = vsel %vm8073_vm7, %v4084_v23, 0.0  ;;  %v8085_v23 = vld [vmem:[#allocation84_spill] sm:$0xff]  ;;  %vm8093_vm7 = vmmov %vm8043_vm0 }
 0x606   : > { %v7206_v53 = vpop.permute.xlu0 %3683  ;;  %v7208_v51 = vpop.permute.xlu1 %3876  ;;  %v4237_v38 = vadd.f32 %v4236_v42, %v4235_v50 }
 0x607   : > { %v4146_v63 = vmul.f32 %v8074_v54, %v7208_v51  ;;  %v4100_v32 = vmul.f32 %v7206_v53, %v8083_v33  ;;  %v8096_v54 = vld [vmem:[#allocation68_spill] sm:$0xff] }
 0x608   : > { %3971 = vbcast.lane.b32.xlu0 %v7106_v35, 328  ;;  %4034 = vbcast.lane.b32.xlu1 %v7116_v41, 320 }
 0x60a   : > { %v3944_v59 = vpop.permute.xlu0 %3943  ;;  %v7214_v4 = vpop.permute.xlu1 %4006 }
 0x60b   : > { %v4162_v44 = vmul.f32 %v8058_v31, %v3944_v59  ;;  %v8065_v59 = vld [vmem:[#allocation129_spill] sm:$0xff] }
 0x60c   : > { %3648 = vbcast.lane.b32.xlu0 %v7070_v21, 352  ;;  %3841 = vbcast.lane.b32.xlu1 %v7090_v19, 336  ;;  %v4128_v62 = vmul.f32 %v7172_v0, %v8065_v59  ;;  %v4378_v0 = vsel %vm8071_vm3, %v4145_v61, 0.0  ;;  %v8086_v59 = vld [vmem:[#allocation128_spill] sm:$0xff]  ;;  %vm8092_vm3 = vmmov %vm8043_vm0 }
 0x60d   : > { %v4417_v15 = vsel %vm8069_vm1, %v4162_v44, 0.0  ;;  %v4379_v51 = vadd.f32 %v4378_v0, %v4377_v27  ;;  %v8081_v44 = vld [vmem:[#allocation114_spill] sm:$0xff]  ;;  %v4130_v8 = vmul.f32 %v8086_v59, %v7194_v39  ;;  %vm8091_vm1 = vmmov %vm8043_vm0  ;;  %v8109_v59 = vld [vmem:[#allocation133_spill] sm:$0xff] }
 0x60e   : > { %v3621_v11 = vpop.permute.xlu0 %3620  ;;  %v7227_v57 = vpop.permute.xlu1 %3813  ;;  %v4418_v16 = vadd.f32 %v4417_v15, %v4416_v10  ;;  %v4115_v48 = vmul.f32 %v8081_v44, %v7198_v25  ;;  %v4340_v14 = vsel %vm8043_vm0, %v4128_v62, 0.0  ;;  %v4273_v10 = vsel %vm8093_vm7, %v4100_v32, 0.0  ;;  %v8106_v32 = vld [vmem:[#allocation119_spill] sm:$0xff]  ;;  %vm8112_vm7 = vmmov %vm8043_vm0 }
 0x60f   : > { %v4085_v9 = vmul.f32 %v3621_v11, %v8070_v34  ;;  %v4272_v11 = vadd.f32 %v4271_v46, %v4270_v26 }
 0x610   : > { %3908 = vbcast.lane.b32.xlu0 %v7098_v6, 336  ;;  %3581 = vbcast.lane.b32.xlu1 %v7061_v60, 352  ;;  %v4308_v62 = vsel %vm8092_vm3, %v4115_v48, 0.0  ;;  %vm8111_vm3 = vmmov %vm8043_vm0 }
 0x611   : > { %v4238_v13 = vsel %vm8077_vm10, %v4085_v9, 0.0  ;;  %v4200_v9 = vadd.f32 %v4199_v29, %v4198_v36  ;;  %vm8099_vm10 = vmmov %vm8043_vm0  ;;  %v8105_v29 = vld [vmem:[#allocation100_spill] sm:$0xff] }
 0x612   : > { %v3881_v17 = vpop.permute.xlu0 %3880  ;;  %v3554_v58 = vpop.permute.xlu1 %3553  ;;  %v4239_v25 = vadd.f32 %v4238_v13, %v4237_v38  ;;  %v8100_v13 = vld [vmem:[#allocation48_spill] sm:$0xff]  ;;  %v8104_v38 = vld [vmem:[#allocation130_spill] sm:$0xff] }
 0x613   : > { %v4147_v28 = vmul.f32 %v8078_v40, %v3881_v17  ;;  %v4069_v55 = vmul.f32 %v3554_v58, %v8079_v20  ;;  %v4380_v17 = vsel %vm8084_vm14, %v4146_v63, 0.0  ;;  %v4309_v20 = vadd.f32 %v4308_v62, %v4307_v30  ;;  %vm8103_vm14 = vmmov %vm8043_vm0 }
 0x614   : > { %3715 = vbcast.lane.b32.xlu0 %v7074_v52, 352  ;;  %3778 = vbcast.lane.b32.xlu1 %v7082_v7, 344  ;;  %v4381_v50 = vadd.f32 %v4380_v17, %v4379_v51 }
 0x615   : > { %v4382_v2 = vsel %vm8088_vm15, %v4147_v28, 0.0  ;;  %v4201_v53 = vsel %vm8089_vm13, %v4069_v55, 0.0  ;;  %v4274_v55 = vadd.f32 %v4273_v10, %v4272_v11  ;;  %vm8107_vm15 = vmmov %vm8043_vm0 }
 0x616   : > { %v3688_v3 = vpop.permute.xlu0 %3687  ;;  %v3751_v24 = vpop.permute.xlu1 %3750  ;;  %v4383_v36 = vadd.f32 %v4382_v2, %v4381_v50  ;;  %vm8108_vm13 = vmmov %vm8043_vm0  ;;  %v8114_v50 = vld [vmem:[#allocation50_spill] sm:$0xff] }
 0x617   : > { %v4101_v46 = vmul.f32 %v3688_v3, %v8087_v1  ;;  %v4116_v15 = vmul.f32 %v3751_v24, %v8090_v18  ;;  %v8097_v24 = vld [vmem:[#allocation49_spill] sm:$0xff] }
 0x618   : > { %3975 = vbcast.lane.b32.xlu0 %v7106_v35, 336  ;;  %4038 = vbcast.lane.b32.xlu1 %v7116_v41, 328 }
 0x619   : > { %v4275_v27 = vsel %vm8098_vm9, %v4101_v46, 0.0  ;;  %v4342_v46 = vadd.f32 %v7260_v49, %v4340_v14  ;;  %vm8115_vm9 = vmmov %vm8043_vm0 }
 0x61a   : > { %v3948_v22 = vpop.permute.xlu0 %3947  ;;  %v4011_v56 = vpop.permute.xlu1 %4010 }
 0x61b   : > { %v4163_v43 = vmul.f32 %v8075_v12, %v3948_v22  ;;  %v8094_v22 = vld [vmem:[#allocation51_spill] sm:$0xff]  ;;  %v4176_v12 = vmul.f32 %v7202_v37, %v8097_v24  ;;  %v4178_v40 = vmul.f32 %v8100_v13, %v4011_v56  ;;  %v4343_v56 = vsel %vm8043_vm0, %v4130_v8, 0.0 }
 0x61c   : > { %3652 = vbcast.lane.b32.xlu0 %v7070_v21, 360  ;;  %3845 = vbcast.lane.b32.xlu1 %v7090_v19, 344  ;;  %v4177_v45 = vmul.f32 %v7214_v4, %v8094_v22 }
 0x61d   : > { %v4419_v31 = vsel %vm8080_vm11, %v4163_v43, 0.0  ;;  %v4202_v43 = vadd.f32 %v4201_v53, %v4200_v9  ;;  %vm8101_vm11 = vmmov %vm8043_vm0  ;;  %v4454_v11 = vsel %vm8108_vm13, %v4178_v40, 0.0  ;;  %v8113_v9 = vld [vmem:[#allocation37_spill] sm:$0xff] }
 0x61e   : > { %v7295_v26 = vadd.f32 %v4419_v31, %v4418_v16  ;;  %v3625_v61 = vpop.permute.xlu0 %3624  ;;  %v3818_v5 = vpop.permute.xlu1 %3817  ;;  %v4310_v16 = vsel %vm8099_vm10, %v4116_v15, 0.0  ;;  %v4452_v48 = vsel %vm8103_vm14, %v4177_v45, 0.0  ;;  %vm8116_vm10 = vmmov %vm8043_vm0 }
 0x61f   : > { %v4086_v58 = vmul.f32 %v8085_v23, %v3625_v61  ;;  %v4131_v61 = vmul.f32 %v8104_v38, %v7227_v57  ;;  %v4451_v23 = vsel %vm8107_vm15, %v4176_v12, 0.0  ;;  %v4311_v30 = vadd.f32 %v4310_v16, %v4309_v20  ;;  %v8119_v12 = vld [vmem:[#allocation135_spill] sm:$0xff]  ;;  %vm8121_vm14 = vmmov %vm8043_vm0 }
 0x620   : > { %3912 = vbcast.lane.b32.xlu0 %v7098_v6, 344  ;;  %3585 = vbcast.lane.b32.xlu1 %v7061_v60, 360  ;;  %v4453_v2 = vadd.f32 %v4452_v48, %v4451_v23  ;;  %vm8124_vm15 = vmmov %vm8043_vm0 }
 0x621   : > { %v4240_v34 = vsel %vm8091_vm1, %v4086_v58, 0.0  ;;  %v4276_v58 = vadd.f32 %v4275_v27, %v4274_v55  ;;  %vm8110_vm1 = vmmov %vm8043_vm0  ;;  %v8123_v55 = vld [vmem:[#allocation70_spill] sm:$0xff] }
 0x622   : > { %v7313_v39 = vadd.f32 %v4240_v34, %v4239_v25  ;;  %v3885_v0 = vpop.permute.xlu0 %3884  ;;  %v3558_v3 = vpop.permute.xlu1 %3557  ;;  %v4132_v25 = vmul.f32 %v3818_v5, %v8109_v59  ;;  %v4345_v34 = vsel %vm8112_vm7, %v4131_v61, 0.0  ;;  %v4455_v10 = vadd.f32 %v4454_v11, %v4453_v2  ;;  %vm8127_vm13 = vmmov %vm8043_vm0 }
 0x623   : > { %v4148_v42 = vmul.f32 %v3885_v0, %v8095_v47  ;;  %v4070_v63 = vmul.f32 %v8096_v54, %v3558_v3  ;;  %v4344_v3 = vadd.f32 %v4343_v56, %v4342_v46  ;;  %vm8132_vm7 = vmmov %vm8043_vm0 }
 0x624   : > { %3719 = vbcast.lane.b32.xlu0 %v7074_v52, 360  ;;  %3782 = vbcast.lane.b32.xlu1 %v7082_v7, 352  ;;  %v4347_v5 = vsel %vm8115_vm9, %v4132_v25, 0.0  ;;  %vm8135_vm9 = vmmov %vm8043_vm0 }
 0x625   : > { %v4384_v4 = vsel %vm8101_vm11, %v4148_v42, 0.0  ;;  %v4203_v28 = vsel %vm8102_vm12, %v4070_v63, 0.0  ;;  %vm8117_vm11 = vmmov %vm8043_vm0  ;;  %v4346_v22 = vadd.f32 %v4345_v34, %v4344_v3  ;;  %v8118_v63 = vld [vmem:[#allocation86_spill] sm:$0xff] }
 0x626   : > { %v4385_v31 = vadd.f32 %v4384_v4, %v4383_v36  ;;  %v4204_v37 = vadd.f32 %v4203_v28, %v4202_v43  ;;  %v3692_v51 = vpop.permute.xlu0 %3691  ;;  %v3755_v44 = vpop.permute.xlu1 %3754  ;;  %vm8120_vm12 = vmmov %vm8043_vm0  ;;  %v8122_v28 = vld [vmem:[#allocation23_spill] sm:$0xff] }
 0x627   : > { %v4102_v33 = vmul.f32 %v8105_v29, %v3692_v51  ;;  %v4117_v17 = vmul.f32 %v3755_v44, %v8106_v32  ;;  %v4348_v43 = vadd.f32 %v4347_v5, %v4346_v22 }
 0x628   : > { %3979 = vbcast.lane.b32.xlu0 %v7106_v35, 344  ;;  %4042 = vbcast.lane.b32.xlu1 %v7116_v41, 336 }
 0x629   : > { %v4277_v57 = vsel %vm8110_vm1, %v4102_v33, 0.0  ;;  %v4312_v1 = vsel %vm8111_vm3, %v4117_v17, 0.0  ;;  %v8126_v17 = vld [vmem:[#allocation116_spill] sm:$0xff]  ;;  %vm8128_vm1 = vmmov %vm8043_vm0 }
 0x62a   : > { %v4278_v8 = vadd.f32 %v4277_v57, %v4276_v58  ;;  %v4313_v53 = vadd.f32 %v4312_v1, %v4311_v30  ;;  %v3952_v18 = vpop.permute.xlu0 %3951  ;;  %v4015_v15 = vpop.permute.xlu1 %4014  ;;  %v8130_v57 = vld [vmem:[#allocation53_spill] sm:$0xff]  ;;  %vm8131_vm3 = vmmov %vm8043_vm0 }
 0x62b   : > { %v4164_v62 = vmul.f32 %v3952_v18, %v8113_v9  ;;  %v4179_v0 = vmul.f32 %v8114_v50, %v4015_v15 }
 0x62c   : > { %3656 = vbcast.lane.b32.xlu0 %v7070_v21, 368  ;;  %3849 = vbcast.lane.b32.xlu1 %v7090_v19, 352 }
 0x62d   : > { %v4421_v49 = vsel %vm8116_vm10, %v4164_v62, 0.0  ;;  %v4456_v14 = vsel %vm8117_vm11, %v4179_v0, 0.0  ;;  %v8134_v62 = vld [vmem:[#allocation132_spill] sm:$0xff]  ;;  %vm8136_vm10 = vmmov %vm8043_vm0 }
 0x62e   : > { %v4422_v45 = vadd.f32 %v4421_v49, %v7295_v26  ;;  %v4457_v47 = vadd.f32 %v4456_v14, %v4455_v10  ;;  %v3629_v42 = vpop.permute.xlu0 %3628  ;;  %v3822_v54 = vpop.permute.xlu1 %3821  ;;  %v8137_v14 = vld [vmem:[#allocation20_spill] sm:$0xff]  ;;  %vm8139_vm11 = vmmov %vm8043_vm0 }
 0x62f   : > { %v4087_v24 = vmul.f32 %v8118_v63, %v3629_v42  ;;  %v4133_v36 = vmul.f32 %v3822_v54, %v8119_v12 }
 0x630   : > { %3916 = vbcast.lane.b32.xlu0 %v7098_v6, 352  ;;  %3589 = vbcast.lane.b32.xlu1 %v7061_v60, 368 }
 0x631   : > { %v4242_v27 = vsel %vm8120_vm12, %v4087_v24, 0.0  ;;  %v4349_v16 = vsel %vm8121_vm14, %v4133_v36, 0.0  ;;  %vm8140_vm12 = vmmov %vm8043_vm0  ;;  %v8141_v36 = vld [vmem:[#allocation105_spill] sm:$0xff] }
 0x632   : > { %v4243_v13 = vadd.f32 %v4242_v27, %v7313_v39  ;;  %v4350_v40 = vadd.f32 %v4349_v16, %v4348_v43  ;;  %v3889_v26 = vpop.permute.xlu0 %3888  ;;  %v3562_v4 = vpop.permute.xlu1 %3561  ;;  %v8125_v39 = vld [vmem:[#allocation102_spill] sm:$0xff]  ;;  %vm8143_vm14 = vmmov %vm8043_vm0 }
 0x633   : > { %v4149_v20 = vmul.f32 %v3889_v26, %v8122_v28  ;;  %v4071_v51 = vmul.f32 %v8123_v55, %v3562_v4  ;;  %v8142_v27 = vld [vmem:[#allocation118_spill] sm:$0xff] }
 0x634   : > { %3723 = vbcast.lane.b32.xlu0 %v7074_v52, 368  ;;  %3786 = vbcast.lane.b32.xlu1 %v7082_v7, 360 }
 0x635   : > { %v4386_v44 = vsel %vm8043_vm0, %v4149_v20, 0.0  ;;  %v4205_v48 = vsel %vm8124_vm15, %v4071_v51, 0.0  ;;  %v8144_v20 = vld [vmem:[#allocation36_spill] sm:$0xff]  ;;  %v8145_v51 = vld [vmem:[#allocation55_spill] sm:$0xff]  ;;  %vm8146_vm15 = vmmov %vm8043_vm0 }
 0x636   : > { %v4387_v38 = vadd.f32 %v4386_v44, %v4385_v31  ;;  %v4206_v61 = vadd.f32 %v4205_v48, %v4204_v37  ;;  %v3696_v29 = vpop.permute.xlu0 %3695  ;;  %v3759_v33 = vpop.permute.xlu1 %3758  ;;  %v8129_v31 = vld [vmem:[#allocation39_spill] sm:$0xff] }
 0x637   : > { %v4103_v32 = vmul.f32 %v8125_v39, %v3696_v29  ;;  %v4118_v56 = vmul.f32 %v8126_v17, %v3759_v33 }
 0x638   : > { %3983 = vbcast.lane.b32.xlu0 %v7106_v35, 352  ;;  %4046 = vbcast.lane.b32.xlu1 %v7116_v41, 344 }
 0x639   : > { %v4279_v23 = vsel %vm8127_vm13, %v4103_v32, 0.0  ;;  %v4314_v58 = vsel %vm8128_vm1, %v4118_v56, 0.0  ;;  %vm8147_vm13 = vmmov %vm8043_vm0  ;;  %v8148_v32 = vld [vmem:[#allocation91_spill] sm:$0xff]  ;;  %v8149_v56 = vld [vmem:[#allocation134_spill] sm:$0xff] }
 0x63a   : > { %v4280_v30 = vadd.f32 %v4279_v23, %v4278_v8  ;;  %v4315_v11 = vadd.f32 %v4314_v58, %v4313_v53  ;;  %v3956_v59 = vpop.permute.xlu0 %3955  ;;  %v4019_v25 = vpop.permute.xlu1 %4018  ;;  %v8133_v8 = vld [vmem:[#allocation89_spill] sm:$0xff]  ;;  %vm8150_vm1 = vmmov %vm8043_vm0 }
 0x63b   : > { %v4165_v37 = vmul.f32 %v3956_v59, %v8129_v31  ;;  %v4180_v1 = vmul.f32 %v4019_v25, %v8130_v57 }
 0x63c   : > { %3660 = vbcast.lane.b32.xlu0 %v7070_v21, 376  ;;  %3853 = vbcast.lane.b32.xlu1 %v7090_v19, 360 }
 0x63d   : > { %v4423_v46 = vsel %vm8131_vm3, %v4165_v37, 0.0  ;;  %v4458_v2 = vsel %vm8132_vm7, %v4180_v1, 0.0  ;;  %vm8151_vm3 = vmmov %vm8043_vm0  ;;  %v8152_v37 = vld [vmem:[#allocation22_spill] sm:$0xff]  ;;  %v8153_v1 = vld [vmem:[#allocation75_spill] sm:$0xff] }
 0x63e   : > { %v4424_v18 = vadd.f32 %v4423_v46, %v4422_v45  ;;  %v4459_v15 = vadd.f32 %v4458_v2, %v4457_v47  ;;  %v3633_v34 = vpop.permute.xlu0 %3632  ;;  %v3826_v9 = vpop.permute.xlu1 %3825  ;;  %v8138_v45 = vld [vmem:[#allocation73_spill] sm:$0xff]  ;;  %vm8154_vm7 = vmmov %vm8043_vm0 }
 0x63f   : > { %v4088_v53 = vmul.f32 %v3633_v34, %v8133_v8  ;;  %v4134_v50 = vmul.f32 %v8134_v62, %v3826_v9  ;;  %v8156_v9 = vld [vmem:[#allocation107_spill] sm:$0xff] }
 0x640   : > { %3920 = vbcast.lane.b32.xlu0 %v7098_v6, 360  ;;  %3593 = vbcast.lane.b32.xlu1 %v7061_v60, 376 }
 0x641   : > { %v4244_v21 = vsel %vm8135_vm9, %v4088_v53, 0.0  ;;  %v4351_v0 = vsel %vm8136_vm10, %v4134_v50, 0.0  ;;  %vm8155_vm9 = vmmov %vm8043_vm0  ;;  %v8157_v53 = vld [vmem:[#allocation121_spill] sm:$0xff] }
 0x642   : > { %v4245_v3 = vadd.f32 %v4244_v21, %v4243_v13  ;;  %v4352_v10 = vadd.f32 %v4351_v0, %v4350_v40  ;;  %v3893_v5 = vpop.permute.xlu0 %3892  ;;  %v3566_v49 = vpop.permute.xlu1 %3565  ;;  %vm8158_vm10 = vmmov %vm8043_vm0 }
 0x643   : > { %v4150_v22 = vmul.f32 %v8137_v14, %v3893_v5  ;;  %v4072_v47 = vmul.f32 %v3566_v49, %v8138_v45  ;;  %v8160_v5 = vld [vmem:[#allocation38_spill] sm:$0xff]  ;;  %v8161_v14 = vld [vmem:[#allocation52_spill] sm:$0xff] }
 0x644   : > { %3727 = vbcast.lane.b32.xlu0 %v7074_v52, 376  ;;  %3790 = vbcast.lane.b32.xlu1 %v7082_v7, 368 }
 0x645   : > { %v4388_v42 = vsel %vm8139_vm11, %v4150_v22, 0.0  ;;  %v4207_v60 = vsel %vm8140_vm12, %v4072_v47, 0.0  ;;  %vm8159_vm11 = vmmov %vm8043_vm0 }
 0x646   : > { %v4389_v54 = vadd.f32 %v4388_v42, %v4387_v38  ;;  %v4208_v63 = vadd.f32 %v4207_v60, %v4206_v61  ;;  %v3700_v24 = vpop.permute.xlu0 %3699  ;;  %v3763_v12 = vpop.permute.xlu1 %3762  ;;  %vm8162_vm12 = vmmov %vm8043_vm0 }
 0x647   : > { %v4104_v43 = vmul.f32 %v3700_v24, %v8141_v36  ;;  %v4119_v16 = vmul.f32 %v8142_v27, %v3763_v12  ;;  %v8165_v12 = vld [vmem:[#allocation9_spill] sm:$0xff] }
 0x648   : > { %3987 = vbcast.lane.b32.xlu0 %v7106_v35, 360  ;;  %4050 = vbcast.lane.b32.xlu1 %v7116_v41, 352 }
 0x649   : > { %v4281_v52 = vsel %vm8143_vm14, %v4104_v43, 0.0  ;;  %v4316_v13 = vsel %vm8043_vm0, %v4119_v16, 0.0  ;;  %vm8163_vm14 = vmmov %vm8043_vm0 }
 0x64a   : > { %v4282_v40 = vadd.f32 %v4281_v52, %v4280_v30  ;;  %v4317_v26 = vadd.f32 %v4316_v13, %v4315_v11  ;;  %v3960_v4 = vpop.permute.xlu0 %3959  ;;  %v4023_v28 = vpop.permute.xlu1 %4022 }
 0x64b   : > { %v4166_v55 = vmul.f32 %v8144_v20, %v3960_v4  ;;  %v4181_v44 = vmul.f32 %v4023_v28, %v8145_v51  ;;  %v8168_v28 = vld [vmem:[#allocation72_spill] sm:$0xff] }
 0x64c   : > { %3924 = vbcast.lane.b32.xlu0 %v7098_v6, 368  ;;  %3857 = vbcast.lane.b32.xlu1 %v7090_v19, 368 }
 0x64d   : > { %v4425_v48 = vsel %vm8146_vm15, %v4166_v55, 0.0  ;;  %v4460_v38 = vsel %vm8147_vm13, %v4181_v44, 0.0  ;;  %vm8166_vm15 = vmmov %vm8043_vm0 }
 0x64e   : > { %v4426_v61 = vadd.f32 %v4425_v48, %v4424_v18  ;;  %v4461_v29 = vadd.f32 %v4460_v38, %v4459_v15  ;;  %v3637_v33 = vpop.permute.xlu0 %3636  ;;  %v3830_v39 = vpop.permute.xlu1 %3829  ;;  %vm8169_vm13 = vmmov %vm8043_vm0 }
 0x64f   : > { %v4089_v17 = vmul.f32 %v3637_v33, %v8148_v32  ;;  %v4135_v23 = vmul.f32 %v8149_v56, %v3830_v39  ;;  %v8172_v33 = vld [vmem:[#allocation123_spill] sm:$0xff] }
 0x650   : > { %3861 = vbcast.lane.b32.xlu0 %v7090_v19, 376  ;;  %3794 = vbcast.lane.b32.xlu1 %v7082_v7, 376  ;;  %v4496_v32 = vld [vmem:[%s7641_s4] sm:$0x3] }
 0x651   : > { %v4246_v58 = vsel %vm8150_vm1, %v4089_v17, 0.0  ;;  %v4353_v30 = vsel %vm8151_vm3, %v4135_v23, 0.0  ;;  %vm8170_vm1 = vmmov %vm8043_vm0 }
 0x652   : > { %v4247_v11 = vadd.f32 %v4246_v58, %v4245_v3  ;;  %v4354_v59 = vadd.f32 %v4353_v30, %v4352_v10  ;;  %v3897_v25 = vpop.permute.xlu0 %3896  ;;  %v3570_v31 = vpop.permute.xlu1 %3569  ;;  %vm8173_vm3 = vmmov %vm8043_vm0 }
 0x653   : > { %v4151_v57 = vmul.f32 %v8152_v37, %v3897_v25  ;;  %v4073_v46 = vmul.f32 %v3570_v31, %v8153_v1  ;;  %v4525_v17 = vsel %vm8173_vm3, %v4496_v32, 0  ;;  %v8176_v25 = vld [vmem:[#allocation41_spill] sm:$0xff]  ;;  %v8177_v37 = vld [vmem:[#allocation54_spill] sm:$0xff]  ;;  %vm8193_vm3 = vmmov %vm8043_vm0 }
 0x654   : > { %3928 = vbcast.lane.b32.xlu0 %v7098_v6, 376  ;;  %4054 = vbcast.lane.b32.xlu1 %v7116_v41, 360 }
 0x655   : > { %v4390_v19 = vsel %vm8154_vm7, %v4151_v57, 0.0  ;;  %v4209_v7 = vsel %vm8155_vm9, %v4073_v46, 0.0  ;;  %vm8174_vm7 = vmmov %vm8043_vm0  ;;  %5108 = vmatpush3.bf16.xpose.msra.mxu1 %v4525_v17 }
 0x656   : > { %v4391_v2 = vadd.f32 %v4390_v19, %v4389_v54  ;;  %v4210_v18 = vadd.f32 %v4209_v7, %v4208_v63  ;;  %v3704_v15 = vpop.permute.xlu0 %3703  ;;  %v3767_v34 = vpop.permute.xlu1 %3766  ;;  %v8164_v63 = vld [vmem:[#allocation88_spill] sm:$0xff]  ;;  %vm8175_vm9 = vmmov %vm8043_vm0 }
 0x657   : > { %v4105_v8 = vmul.f32 %v3704_v15, %v8156_v9  ;;  %v4120_v62 = vmul.f32 %v3767_v34, %v8157_v53  ;;  %v8180_v15 = vld [vmem:[#allocation90_spill] sm:$0xff]  ;;  %v8181_v9 = vld [vmem:[#allocation11_spill] sm:$0xff] }
 0x658   : > { %3995 = vbcast.lane.b32.xlu0 %v7106_v35, 376  ;;  %3991 = vbcast.lane.b32.xlu1 %v7106_v35, 368 }
 0x659   : > { %v4283_v6 = vsel %vm8158_vm10, %v4105_v8, 0.0  ;;  %v4318_v50 = vsel %vm8159_vm11, %v4120_v62, 0.0  ;;  %vm8178_vm10 = vmmov %vm8043_vm0 }
 0x65a   : > { %v4284_v21 = vadd.f32 %v4283_v6, %v4282_v40  ;;  %v4319_v0 = vadd.f32 %v4318_v50, %v4317_v26  ;;  %v3964_v3 = vpop.permute.xlu0 %3963  ;;  %v4027_v10 = vpop.permute.xlu1 %4026  ;;  %v8167_v26 = vld [vmem:[#allocation25_spill] sm:$0xff]  ;;  %vm8179_vm11 = vmmov %vm8043_vm0 }
 0x65b   : > { %v4167_v49 = vmul.f32 %v8160_v5, %v3964_v3  ;;  %v4182_v22 = vmul.f32 %v8161_v14, %v4027_v10  ;;  %v8184_v3 = vld [vmem:[#allocation27_spill] sm:$0xff]  ;;  %v8185_v5 = vld [vmem:[#allocation74_spill] sm:$0xff] }
 0x65c   : > { %4058 = vbcast.lane.b32.xlu1 %v7116_v41, 368 }
 0x65d   : > { %v4427_v45 = vsel %vm8162_vm12, %v4167_v49, 0.0  ;;  %v4462_v47 = vsel %vm8163_vm14, %v4182_v22, 0.0  ;;  %vm8182_vm12 = vmmov %vm8043_vm0 }
 0x65e   : > { %v4428_v42 = vadd.f32 %v4427_v45, %v4426_v61  ;;  %v4463_v35 = vadd.f32 %v4462_v47, %v4461_v29  ;;  %v3641_v60 = vpop.permute.xlu0 %3640  ;;  %v3834_v54 = vpop.permute.xlu1 %3833  ;;  %v8171_v61 = vld [vmem:[#allocation104_spill] sm:$0xff]  ;;  %vm8183_vm14 = vmmov %vm8043_vm0 }
 0x65f   : > { %v4090_v24 = vmul.f32 %v8164_v63, %v3641_v60  ;;  %v4136_v36 = vmul.f32 %v3834_v54, %v8165_v12  ;;  %v8187_v60 = vld [vmem:[#allocation106_spill] sm:$0xff]  ;;  %v8188_v63 = vld [vmem:[#allocation120_spill] sm:$0xff] }
 0x660   : > { %4062 = vbcast.lane.b32.xlu1 %v7116_v41, 376 }
 0x661   : > { %v4248_v43 = vsel %vm8043_vm0, %v4090_v24, 0.0  ;;  %v4355_v27 = vsel %vm8166_vm15, %v4136_v36, 0.0  ;;  %vm8186_vm15 = vmmov %vm8043_vm0 }
 0x662   : > { %v4249_v16 = vadd.f32 %v4248_v43, %v4247_v11  ;;  %v4356_v52 = vadd.f32 %v4355_v27, %v4354_v59  ;;  %v3901_v13 = vpop.permute.xlu0 %3900  ;;  %v3574_v40 = vpop.permute.xlu1 %3573 }
 0x663   : > { %v4152_v4 = vmul.f32 %v3901_v13, %v8167_v26  ;;  %v4074_v20 = vmul.f32 %v8168_v28, %v3574_v40  ;;  %v8191_v13 = vld [vmem:[#allocation43_spill] sm:$0xff]  ;;  %v8192_v26 = vld [vmem:[#allocation57_spill] sm:$0xff] }
 0x665   : > { %v4392_v55 = vsel %vm8169_vm13, %v4152_v4, 0.0  ;;  %v4211_v51 = vsel %vm8170_vm1, %v4074_v20, 0.0  ;;  %vm8189_vm13 = vmmov %vm8043_vm0 }
 0x666   : > { %v4393_v44 = vadd.f32 %v4392_v55, %v4391_v2  ;;  %v4212_v48 = vadd.f32 %v4211_v51, %v4210_v18  ;;  %v3708_v38 = vpop.permute.xlu0 %3707  ;;  %v3771_v41 = vpop.permute.xlu1 %3770  ;;  %vm8190_vm1 = vmmov %vm8043_vm0 }
 0x667   : > { %v4106_v29 = vmul.f32 %v8171_v61, %v3708_v38  ;;  %v4121_v39 = vmul.f32 %v3771_v41, %v8172_v33  ;;  %v8195_v38 = vld [vmem:[#allocation93_spill] sm:$0xff]  ;;  %v8196_v61 = vld [vmem:[#allocation8_spill] sm:$0xff] }
 0x669   : > { %v4285_v56 = vsel %vm8174_vm7, %v4106_v29, 0.0  ;;  %v4320_v23 = vsel %vm8175_vm9, %v4121_v39, 0.0  ;;  %vm8194_vm7 = vmmov %vm8043_vm0 }
 0x66a   : > { %v4286_v58 = vadd.f32 %v4285_v56, %v4284_v21  ;;  %v4321_v30 = vadd.f32 %v4320_v23, %v4319_v0  ;;  %v3968_v11 = vpop.permute.xlu0 %3967  ;;  %v4031_v59 = vpop.permute.xlu1 %4030  ;;  %vm8197_vm9 = vmmov %vm8043_vm0 }
 0x66b   : > { %v4168_v31 = vmul.f32 %v3968_v11, %v8176_v25  ;;  %v4183_v57 = vmul.f32 %v8177_v37, %v4031_v59  ;;  %v8201_v37 = vld [vmem:[#allocation122_spill] sm:$0xff] }
 0x66d   : > { %v4429_v1 = vsel %vm8178_vm10, %v4168_v31, 0.0  ;;  %v4464_v46 = vsel %vm8179_vm11, %v4183_v57, 0.0  ;;  %vm8198_vm10 = vmmov %vm8043_vm0 }
 0x66e   : > { %v4430_v19 = vadd.f32 %v4429_v1, %v4428_v42  ;;  %v4465_v7 = vadd.f32 %v4464_v46, %v4463_v35  ;;  %v3645_v2 = vpop.permute.xlu0 %3644  ;;  %v3838_v18 = vpop.permute.xlu1 %3837  ;;  %vm8200_vm11 = vmmov %vm8043_vm0 }
 0x66f   : > { %v4091_v34 = vmul.f32 %v8180_v15, %v3645_v2  ;;  %v4137_v8 = vmul.f32 %v3838_v18, %v8181_v9 }
 0x671   : > { %v4250_v53 = vsel %vm8182_vm12, %v4091_v34, 0.0  ;;  %v4357_v62 = vsel %vm8183_vm14, %v4137_v8, 0.0  ;;  %vm8202_vm12 = vmmov %vm8043_vm0 }
 0x672   : > { %v4251_v6 = vadd.f32 %v4250_v53, %v4249_v16  ;;  %v4358_v50 = vadd.f32 %v4357_v62, %v4356_v52  ;;  %v3905_v21 = vpop.permute.xlu0 %3904  ;;  %v3578_v0 = vpop.permute.xlu1 %3577  ;;  %vm8206_vm14 = vmmov %vm8043_vm0 }
 0x673   : > { %v4153_v10 = vmul.f32 %v3905_v21, %v8184_v3  ;;  %v4075_v49 = vmul.f32 %v8185_v5, %v3578_v0  ;;  %v8203_v5 = vld [vmem:[#allocation95_spill] sm:$0xff] }
 0x675   : > { %v4394_v14 = vsel %vm8043_vm0, %v4153_v10, 0.0  ;;  %v4213_v22 = vsel %vm8186_vm15, %v4075_v49, 0.0  ;;  %vm8212_vm15 = vmmov %vm8043_vm0 }
 0x676   : > { %v7453_v45 = vadd.f32 %v4394_v14, %v4393_v44  ;;  %v4214_v47 = vadd.f32 %v4213_v22, %v4212_v48  ;;  %v3712_v42 = vpop.permute.xlu0 %3711  ;;  %v3775_v35 = vpop.permute.xlu1 %3774  ;;  %v8204_v14 = vld [vmem:[#allocation92_spill] sm:$0xff] }
 0x677   : > { %v4107_v54 = vmul.f32 %v8187_v60, %v3712_v42  ;;  %v4122_v24 = vmul.f32 %v8188_v63, %v3775_v35  ;;  %v8205_v35 = vld [vmem:[#allocation24_spill] sm:$0xff]  ;;  %v8207_v63 = vld [vmem:[#allocation79_spill] sm:$0xff] }
 0x679   : > { %v4287_v12 = vsel %vm8189_vm13, %v4107_v54, 0.0  ;;  %v4322_v36 = vsel %vm8190_vm1, %v4122_v24, 0.0  ;;  %vm8213_vm13 = vmmov %vm8043_vm0 }
 0x67a   : > { %v7459_v43 = vadd.f32 %v4287_v12, %v4286_v58  ;;  %v4323_v27 = vadd.f32 %v4322_v36, %v4321_v30  ;;  %v3972_v16 = vpop.permute.xlu0 %3971  ;;  %v4035_v52 = vpop.permute.xlu1 %4034  ;;  %v8199_v58 = vld [vmem:[#allocation77_spill] sm:$0xff]  ;;  %vm8216_vm1 = vmmov %vm8043_vm0 }
 0x67b   : > { %v4169_v40 = vmul.f32 %v3972_v16, %v8191_v13  ;;  %v4184_v4 = vmul.f32 %v4035_v52, %v8192_v26  ;;  %v8208_v12 = vld [vmem:[#allocation109_spill] sm:$0xff]  ;;  %v8210_v13 = vld [vmem:[#allocation76_spill] sm:$0xff]  ;;  %v8211_v26 = vld [vmem:[#allocation59_spill] sm:$0xff] }
 0x67d   : > { %v4431_v28 = vsel %vm8193_vm3, %v4169_v40, 0.0  ;;  %v4466_v20 = vsel %vm8194_vm7, %v4184_v4, 0.0  ;;  %vm8217_vm3 = vmmov %vm8043_vm0 }
 0x67e   : > { %v7465_v55 = vadd.f32 %v4431_v28, %v4430_v19  ;;  %v7467_v51 = vadd.f32 %v4466_v20, %v4465_v7  ;;  %v3649_v44 = vpop.permute.xlu0 %3648  ;;  %v3842_v48 = vpop.permute.xlu1 %3841  ;;  %vm8220_vm7 = vmmov %vm8043_vm0 }
 0x67f   : > { %v4092_v41 = vmul.f32 %v3649_v44, %v8195_v38  ;;  %v4138_v29 = vmul.f32 %v8196_v61, %v3842_v48 }
 0x681   : > { %v4252_v33 = vsel %vm8197_vm9, %v4092_v41, 0.0  ;;  %v4359_v39 = vsel %vm8198_vm10, %v4138_v29, 0.0  ;;  %v8214_v41 = vld [vmem:[#allocation111_spill] sm:$0xff]  ;;  %v8215_v29 = vld [vmem:[#allocation94_spill] sm:$0xff]  ;;  %vm8222_vm9 = vmmov %vm8043_vm0 }
 0x682   : > { %v4253_v32 = vadd.f32 %v4252_v33, %v4251_v6  ;;  %v7473_v17 = vadd.f32 %v4359_v39, %v4358_v50  ;;  %v3909_v56 = vpop.permute.xlu0 %3908  ;;  %v3582_v23 = vpop.permute.xlu1 %3581  ;;  %vm8223_vm10 = vmmov %vm8043_vm0 }
 0x683   : > { %v4076_v30 = vmul.f32 %v3582_v23, %v8199_v58  ;;  %v4154_v60 = vmul.f32 %v8205_v35, %v3909_v56  ;;  %v8218_v23 = vld [vmem:[#allocation10_spill] sm:$0xff] }
 0x685   : > { %v4215_v11 = vsel %vm8200_vm11, %v4076_v30, 0.0  ;;  %v4396_v48 = vsel %vm8212_vm15, %v4154_v60, 0.0  ;;  %vm8224_vm11 = vmmov %vm8043_vm0 }
 0x686   : > { %v4216_v59 = vadd.f32 %v4215_v11, %v4214_v47  ;;  %v3716_v25 = vpop.permute.xlu0 %3715  ;;  %v3779_v31 = vpop.permute.xlu1 %3778  ;;  %v8219_v11 = vld [vmem:[#allocation26_spill] sm:$0xff]  ;;  %vm8229_vm15 = vmmov %vm8043_vm0 }
 0x687   : > { %v4123_v57 = vmul.f32 %v8201_v37, %v3779_v31  ;;  %v4108_v36 = vmul.f32 %v3716_v25, %v8208_v12  ;;  %v8221_v31 = vld [vmem:[#allocation108_spill] sm:$0xff] }
 0x689   : > { %v4324_v1 = vsel %vm8202_vm12, %v4123_v57, 0.0  ;;  %v4289_v39 = vsel %vm8216_vm1, %v4108_v36, 0.0  ;;  %vm8226_vm12 = vmmov %vm8043_vm0 }
 0x68a   : > { %v7479_v46 = vadd.f32 %v4324_v1, %v4323_v27  ;;  %v3976_v19 = vpop.permute.xlu0 %3975  ;;  %v4039_v7 = vpop.permute.xlu1 %4038  ;;  %v8209_v27 = vld [vmem:[#allocation40_spill] sm:$0xff]  ;;  %v4397_v1 = vadd.f32 %v4396_v48, %v7453_v45  ;;  %vm8237_vm1 = vmmov %vm8043_vm0 }
 0x68b   : > { %v4170_v16 = vmul.f32 %v8209_v27, %v3976_v19  ;;  %v4185_v4 = vmul.f32 %v4039_v7, %v8211_v26 }
 0x68d   : > { %v4433_v56 = vsel %vm8217_vm3, %v4170_v16, 0.0  ;;  %v4468_v19 = vsel %vm8223_vm10, %v4185_v4, 0.0  ;;  %v8231_v16 = vld [vmem:[#allocation29_spill] sm:$0xff]  ;;  %vm8238_vm3 = vmmov %vm8043_vm0 }
 0x68e   : > { %v3653_v2 = vpop.permute.xlu0 %3652  ;;  %v3846_v18 = vpop.permute.xlu1 %3845  ;;  %vm8243_vm10 = vmmov %vm8043_vm0 }
 0x68f   : > { %v4093_v49 = vmul.f32 %v3653_v2, %v8203_v5  ;;  %v4139_v58 = vmul.f32 %v8218_v23, %v3846_v18  ;;  %v7514_v18 = vadd.f32 %v4433_v56, %v7465_v55 }
 0x691   : > { %v4254_v54 = vsel %vm8206_vm14, %v4093_v49, 0.0  ;;  %v8227_v49 = vld [vmem:[#allocation125_spill] sm:$0xff]  ;;  %vm8228_vm14 = vmmov %vm8043_vm0 }
 0x692   : > { %v3913_v15 = vpop.permute.xlu0 %3912  ;;  %v3586_v34 = vpop.permute.xlu1 %3585  ;;  %v4255_v28 = vadd.f32 %v4254_v54, %v4253_v32  ;;  %v8230_v54 = vld [vmem:[#allocation13_spill] sm:$0xff] }
 0x693   : > { %v4077_v24 = vmul.f32 %v3586_v34, %v8207_v63  ;;  %v4155_v25 = vmul.f32 %v8219_v11, %v3913_v15 }
 0x695   : > { %v4217_v38 = vsel %vm8213_vm13, %v4077_v24, 0.0  ;;  %v4398_v35 = vsel %vm8228_vm14, %v4155_v25, 0.0  ;;  %vm8234_vm13 = vmmov %vm8043_vm0 }
 0x696   : > { %v3720_v9 = vpop.permute.xlu0 %3719  ;;  %v3783_v8 = vpop.permute.xlu1 %3782  ;;  %v4218_v7 = vadd.f32 %v4217_v38, %v4216_v59  ;;  %v7521_v59 = vadd.f32 %v4468_v19, %v7467_v51  ;;  %v4399_v38 = vadd.f32 %v4398_v35, %v4397_v1  ;;  %vm8249_vm14 = vmmov %vm8043_vm0 }
 0x697   : > { %v4109_v61 = vmul.f32 %v3720_v9, %v8214_v41 }
 0x699   : > { %v4291_v15 = vsel %vm8224_vm11, %v4109_v61, 0.0  ;;  %v8236_v61 = vld [vmem:[#allocation56_spill] sm:$0xff]  ;;  %vm8244_vm11 = vmmov %vm8043_vm0 }
 0x69a   : > { %v7481_v53 = vpop.permute.xlu0 %3979  ;;  %v7483_v62 = vpop.permute.xlu1 %4042 }
 0x69e   : > { %v3657_v6 = vpop.permute.xlu0 %3656  ;;  %v3850_v50 = vpop.permute.xlu1 %3849 }
 0x69f   : > { %v4094_v22 = vmul.f32 %v8204_v14, %v3657_v6  ;;  %v4290_v6 = vadd.f32 %v4289_v39, %v7459_v43  ;;  %v4124_v14 = vmul.f32 %v3783_v8, %v8227_v49  ;;  %v4140_v63 = vmul.f32 %v3850_v50, %v8230_v54  ;;  %v8235_v50 = vld [vmem:[#allocation42_spill] sm:$0xff]  ;;  %v8250_v54 = vld [vmem:[#allocation28_spill] sm:$0xff] }
 0x6a0   : > { %v4171_v41 = vmul.f32 %v8235_v50, %v7481_v53  ;;  %v8241_v53 = vld [vmem:[#allocation15_spill] sm:$0xff] }
 0x6a1   : > { %v4256_v52 = vsel %vm8043_vm0, %v4094_v22, 0.0  ;;  %v4292_v60 = vadd.f32 %v4291_v15, %v4290_v6  ;;  %v4326_v4 = vsel %vm8234_vm13, %v4124_v14, 0.0  ;;  %v8246_v6 = vld [vmem:[#allocation31_spill] sm:$0xff]  ;;  %vm8253_vm13 = vmmov %vm8043_vm0 }
 0x6a2   : > { %v3917_v21 = vpop.permute.xlu0 %3916  ;;  %v3590_v0 = vpop.permute.xlu1 %3589  ;;  %v4257_v30 = vadd.f32 %v4256_v52, %v4255_v28  ;;  %v4435_v1 = vsel %vm8243_vm10, %v4171_v41, 0.0  ;;  %vm8262_vm10 = vcmask 1041409  }
 0x6a3   : > { %v4078_v40 = vmul.f32 %v8210_v13, %v3590_v0  ;;  %v8225_v0 = vld [vmem:[#allocation78_spill] sm:$0xff]  ;;  %v4156_v52 = vmul.f32 %v3917_v21, %v8231_v16  ;;  %v8232_v13 = vld [vmem:[#allocation127_spill] sm:$0xff]  ;;  %v4363_v21 = vsel %vm8238_vm3, %v4140_v63, 0.0  ;;  %vm8258_vm3 = vmmov %vm8043_vm0 }
 0x6a5   : > { %v4219_v32 = vsel %vm8220_vm7, %v4078_v40, 0.0  ;;  %v8233_v40 = vld [vmem:[#allocation110_spill] sm:$0xff]  ;;  %vm8239_vm7 = vmmov %vm8043_vm0 }
 0x6a6   : > { %v3724_v3 = vpop.permute.xlu0 %3723  ;;  %v3787_v10 = vpop.permute.xlu1 %3786  ;;  %v4220_v45 = vadd.f32 %v4219_v32, %v4218_v7 }
 0x6a7   : > { %v4110_v37 = vmul.f32 %v8221_v31, %v3724_v3  ;;  %v4361_v3 = vsel %vm8226_vm12, %v4139_v58, 0.0  ;;  %v4125_v51 = vmul.f32 %v3787_v10, %v8232_v13  ;;  %v4327_v58 = vadd.f32 %v4326_v4, %v7479_v46  ;;  %vm8247_vm12 = vmmov %vm8043_vm0 }
 0x6a8   : > { %v4362_v8 = vadd.f32 %v4361_v3, %v7473_v17 }
 0x6a9   : > { %v4293_v43 = vsel %vm8043_vm0, %v4110_v37, 0.0  ;;  %v8242_v37 = vld [vmem:[#allocation124_spill] sm:$0xff] }
 0x6aa   : > { %v7487_v47 = vpop.permute.xlu0 %3983  ;;  %v7489_v42 = vpop.permute.xlu1 %4046  ;;  %v4294_v28 = vadd.f32 %v4293_v43, %v4292_v60  ;;  %v4364_v7 = vadd.f32 %v4363_v21, %v4362_v8 }
 0x6ae   : > { %v3661_v20 = vpop.permute.xlu0 %3660  ;;  %v3854_v44 = vpop.permute.xlu1 %3853 }
 0x6af   : > { %v4095_v33 = vmul.f32 %v8215_v29, %v3661_v20  ;;  %v4186_v29 = vmul.f32 %v8236_v61, %v7483_v62  ;;  %v4141_v25 = vmul.f32 %v3854_v44, %v8241_v53  ;;  %v4436_v53 = vadd.f32 %v4435_v1, %v7514_v18 }
 0x6b1   : > { %v4258_v57 = vsel %vm8222_vm9, %v4095_v33, 0.0  ;;  %vm8240_vm9 = vmmov %vm8043_vm0  ;;  %v7547_v19 = vsel %vm8244_vm11, %v4186_v29, 0.0 }
 0x6b2   : > { %v4259_v2 = vadd.f32 %v4258_v57, %v4257_v30  ;;  %v3921_v34 = vpop.permute.xlu0 %3920  ;;  %v3594_v9 = vpop.permute.xlu1 %3593  ;;  %v4400_v30 = vsel %vm8239_vm7, %v4156_v52, 0.0  ;;  %v4328_v11 = vsel %vm8240_vm9, %v4125_v51, 0.0  ;;  %vm8259_vm7 = vmmov %vm8043_vm0 }
 0x6b3   : > { %v4079_v5 = vmul.f32 %v8225_v0, %v3594_v9  ;;  %v4157_v15 = vmul.f32 %v3921_v34, %v8246_v6  ;;  %v4401_v49 = vadd.f32 %v4400_v30, %v4399_v38  ;;  %v4329_v14 = vadd.f32 %v4328_v11, %v4327_v58  ;;  %v8251_v34 = vld [vmem:[#allocation58_spill] sm:$0xff]  ;;  %vm8260_vm9 = vmmov %vm8043_vm0  ;;  %v8264_v6 = vld [vmem:[#allocation61_spill] sm:$0xff] }
 0x6b4   : > { %v4260_v22 = vrot.slane %v4259_v2, 4  ;;  %vm8263_vm11 = vmmov %vm8043_vm0 }
 0x6b5   : > { %v4221_v55 = vsel %vm8229_vm15, %v4079_v5, 0.0  ;;  %vm8252_vm15 = vmmov %vm8043_vm0  ;;  %v4402_v8 = vsel %vm8253_vm13, %v4157_v15, 0.0 }
 0x6b6   : > { %v4261_v24 = vadd.f32 %v4260_v22, %v4259_v2  ;;  %v4222_v12 = vadd.f32 %v4221_v55, %v4220_v45  ;;  %v3728_v36 = vpop.permute.xlu0 %3727  ;;  %v3791_v27 = vpop.permute.xlu1 %3790  ;;  %v8245_v2 = vld [vmem:[#allocation45_spill] sm:$0xff]  ;;  %v4365_v45 = vsel %vm8247_vm12, %v4141_v25, 0.0  ;;  %v8248_v22 = vld [vmem:[#allocation12_spill] sm:$0xff]  ;;  %vm8265_vm12 = vmmov %vm8043_vm0 }
 0x6b7   : > { %v4111_v26 = vmul.f32 %v8233_v40, %v3728_v36  ;;  %v4126_v57 = vmul.f32 %v8242_v37, %v3791_v27  ;;  %v4172_v46 = vmul.f32 %v7487_v47, %v8245_v2  ;;  %v4366_v27 = vadd.f32 %v4365_v45, %v4364_v7  ;;  %v8266_v45 = vld [vmem:[#allocation63_spill] sm:$0xff]  ;;  %vm8271_vm13 = vmmov %vm8043_vm0 }
 0x6b8   : > { %v4262_v20 = vrot.slane %v4261_v24, 2  ;;  %v4223_v48 = vrot.slane %v4222_v12, 4 }
 0x6b9   : > { %v4295_v17 = vsel %vm8237_vm1, %v4111_v26, 0.0  ;;  %v4330_v60 = vsel %vm8249_vm14, %v4126_v57, 0.0  ;;  %v4437_v47 = vsel %vm8043_vm0, %v4172_v46, 0.0  ;;  %v8254_v26 = vld [vmem:[#allocation47_spill] sm:$0xff]  ;;  %vm8257_vm1 = vmmov %vm8043_vm0  ;;  %vm8269_vm14 = vcmask 1042434  }
 0x6ba   : > { %v4263_v33 = vadd.f32 %v4262_v20, %v4261_v24  ;;  %v4224_v10 = vadd.f32 %v4223_v48, %v4222_v12  ;;  %v4296_v39 = vadd.f32 %v4295_v17, %v4294_v28  ;;  %v3988_v56 = vpop.permute.xlu0 %3987  ;;  %v7538_v23 = vpop.permute.xlu1 %4050  ;;  %v4187_v24 = vmul.f32 %v8251_v34, %v7489_v42  ;;  %v8255_v28 = vld [vmem:[#allocation14_spill] sm:$0xff] }
 0x6bb   : > { %v4331_v40 = vadd.f32 %v4330_v60, %v4329_v14  ;;  %v4173_v4 = vmul.f32 %v3988_v56, %v8254_v26  ;;  %v8256_v48 = vld [vmem:[#allocation126_spill] sm:$0xff]  ;;  %v4403_v17 = vadd.f32 %v4402_v8, %v4401_v49  ;;  %v4438_v46 = vadd.f32 %v4437_v47, %v4436_v53  ;;  %v8273_v26 = vld [vmem:[#allocation60_spill] sm:$0xff] }
 0x6bc   : > { %v4264_v32 = vrot.slane %v4263_v33, 1  ;;  %v4225_v62 = vrot.slane %v4224_v10, 2  ;;  %v4297_v31 = vrot.slane %v4296_v39, 4  ;;  %v4188_v15 = vmul.f32 %v7538_v23, %v8264_v6 }
 0x6bd   : > { %v4439_v25 = vsel %vm8260_vm9, %v4173_v4, 0.0  ;;  %v4471_v34 = vadd.f32 %v7547_v19, %v7521_v59 }
 0x6be   : > { %v4265_v9 = vadd.f32 %v4264_v32, %v4263_v33  ;;  %v4226_v0 = vadd.f32 %v4225_v62, %v4224_v10  ;;  %v4298_v5 = vadd.f32 %v4297_v31, %v4296_v39  ;;  %v3925_v44 = vpop.permute.xlu0 %3924  ;;  %v3858_v3 = vpop.permute.xlu1 %3857  ;;  %v8261_v62 = vld [vmem:[#allocation30_spill] sm:$0xff]  ;;  %v4440_v14 = vadd.f32 %v4439_v25, %v4438_v46 }
 0x6bf   : > { %v4142_v35 = vmul.f32 %v8248_v22, %v3858_v3  ;;  %v4158_v63 = vmul.f32 %v8250_v54, %v3925_v44 }
 0x6c0   : > { %v4227_v43 = vrot.slane %v4226_v0, 1  ;;  %v4299_v55 = vrot.slane %v4298_v5, 2  ;;  %v4489_v12 = vpack.c.bf16 %v4265_v9, %v4265_v9  ;;  %v4472_v9 = vsel %vm8263_vm11, %v4187_v24, 0.0 }
 0x6c1   : > { %v4367_v36 = vsel %vm8252_vm15, %v4142_v35, 0.0  ;;  %v4404_v42 = vsel %vm8257_vm1, %v4158_v63, 0.0  ;;  %v8267_v35 = vld [vmem:[#allocation46_spill] sm:$0xff]  ;;  %v4474_v24 = vsel %vm8043_vm0, %v4188_v15, 0.0  ;;  %vm8270_vm15 = vmmov %vm8043_vm0 }
 0x6c2   : > { %v4228_v16 = vadd.f32 %v4227_v43, %v4226_v0  ;;  %v4300_v52 = vadd.f32 %v4299_v55, %v4298_v5  ;;  %v3862_v13 = vpop.permute.xlu0 %3861  ;;  %v3795_v51 = vpop.permute.xlu1 %3794  ;;  %v4368_v61 = vadd.f32 %v4367_v36, %v4366_v27  ;;  %v4506_v29 = vunpack.c.l.b16 %v4489_v12  ;;  %v8268_v55 = vld [vmem:[#allocation44_spill] sm:$0xff]  ;;  %vm8272_vm1 = vmmov %vm8043_vm0 }
 0x6c3   : > { %v4143_v20 = vmul.f32 %v8255_v28, %v3862_v13  ;;  %v4127_v38 = vmul.f32 %v8256_v48, %v3795_v51  ;;  %v4405_v32 = vadd.f32 %v4404_v42, %v4403_v17  ;;  %v4473_v13 = vadd.f32 %v4472_v9, %v4471_v34 }
 0x6c4   : > { %v4488_v50 = vpack.c.bf16 %v4228_v16, %v4228_v16  ;;  %v4301_v41 = vrot.slane %v4300_v52, 1 }
 0x6c5   : > { %v4369_v21 = vsel %vm8258_vm3, %v4143_v20, 0.0  ;;  %v4332_v33 = vsel %vm8259_vm7, %v4127_v38, 0.0  ;;  %v4475_v19 = vadd.f32 %v4474_v24, %v4473_v13  ;;  %vm8274_vm3 = vmmov %vm8043_vm0 }
 0x6c6   : > { %v4505_v10 = vunpack.c.l.b16 %v4488_v50  ;;  %v4302_v39 = vadd.f32 %v4301_v41, %v4300_v52  ;;  %v4370_v58 = vadd.f32 %v4369_v21, %v4368_v61  ;;  %v4333_v30 = vadd.f32 %v4332_v33, %v4331_v40  ;;  %v3929_v56 = vpop.permute.xlu0 %3928  ;;  %v4055_v11 = vpop.permute.xlu1 %4054  ;;  %v8275_v21 = vld [vmem:[#allocation62_spill] sm:$0xff]  ;;  %vm8276_vm7 = vmmov %vm8043_vm0 }
 0x6c7   : > { %v4159_v31 = vmul.f32 %v8261_v62, %v3929_v56  ;;  %v4189_v22 = vmul.f32 %v4055_v11, %v8266_v45 }
 0x6c8   : > { %v4513_v37 = vsel %vm8262_vm10, %v4506_v29, %v4505_v10  ;;  %v4490_v57 = vpack.c.bf16 %v4302_v39, %v4302_v39  ;;  %v4371_v7 = vrot.slane %v4370_v58, 4  ;;  %v4334_v2 = vrot.slane %v4333_v30, 4 }
 0x6c9   : > { %v4406_v0 = vsel %vm8265_vm12, %v4159_v31, 0.0  ;;  %v4476_v51 = vsel %vm8271_vm13, %v4189_v22, 0.0 }
 0x6ca   : > { %v4507_v5 = vunpack.c.l.b16 %v4490_v57  ;;  %v4372_v18 = vadd.f32 %v4371_v7, %v4370_v58  ;;  %v4335_v1 = vadd.f32 %v4334_v2, %v4333_v30  ;;  %v4407_v44 = vadd.f32 %v4406_v0, %v4405_v32  ;;  %v3996_v3 = vpop.permute.xlu0 %3995  ;;  %v3992_v49 = vpop.permute.xlu1 %3991 }
 0x6cb   : > { %v4175_v43 = vmul.f32 %v8267_v35, %v3996_v3  ;;  %v4174_v60 = vmul.f32 %v8268_v55, %v3992_v49  ;;  %v4477_v17 = vadd.f32 %v4476_v51, %v4475_v19 }
 0x6cc   : > { %v4514_v54 = vsel %vm8269_vm14, %v4507_v5, %v4513_v37  ;;  %v4373_v63 = vrot.slane %v4372_v18, 2  ;;  %v4336_v47 = vrot.slane %v4335_v1, 2  ;;  %v4408_v23 = vrot.slane %v4407_v44, 4 }
 0x6cd   : > { %v4441_v12 = vsel %vm8270_vm15, %v4174_v60, 0.0  ;;  %v4443_v40 = vsel %vm8272_vm1, %v4175_v43, 0.0 }
 0x6ce   : > { %v4374_v36 = vadd.f32 %v4373_v63, %v4372_v18  ;;  %v4337_v27 = vadd.f32 %v4336_v47, %v4335_v1  ;;  %v4409_v8 = vadd.f32 %v4408_v23, %v4407_v44  ;;  %v4442_v16 = vadd.f32 %v4441_v12, %v4440_v14  ;;  %v4059_v52 = vpop.permute.xlu1 %4058 }
 0x6cf   : > { %v4190_v4 = vmul.f32 %v8273_v26, %v4059_v52 }
 0x6d0   : > { %v4375_v28 = vrot.slane %v4374_v36, 1  ;;  %v4338_v20 = vrot.slane %v4337_v27, 1  ;;  %v4410_v48 = vrot.slane %v4409_v8, 2  ;;  %v4444_v59 = vadd.f32 %v4443_v40, %v4442_v16 }
 0x6d1   : > { %v4478_v38 = vsel %vm8274_vm3, %v4190_v4, 0.0 }
 0x6d2   : > { %v4376_v50 = vadd.f32 %v4375_v28, %v4374_v36  ;;  %v4339_v41 = vadd.f32 %v4338_v20, %v4337_v27  ;;  %v4411_v42 = vadd.f32 %v4410_v48, %v4409_v8  ;;  %v4445_v61 = vrot.slane %v4444_v59, 4  ;;  %v4063_v29 = vpop.permute.xlu1 %4062 }
 0x6d3   : > { %v4191_v33 = vmul.f32 %v8275_v21, %v4063_v29  ;;  %v4479_v56 = vadd.f32 %v4478_v38, %v4477_v17 }
 0x6d4   : > { %v4492_v10 = vpack.c.bf16 %v4376_v50, %v4376_v50  ;;  %v4491_v39 = vpack.c.bf16 %v4339_v41, %v4339_v41  ;;  %v4412_v58 = vrot.slane %v4411_v42, 1  ;;  %v4446_v30 = vadd.f32 %v4445_v61, %v4444_v59 }
 0x6d5   : > { %v4480_v11 = vsel %vm8276_vm7, %v4191_v33, 0.0 }
 0x6d6   : > { %v4509_v53 = vunpack.c.l.b16 %v4492_v10  ;;  %v4508_v25 = vunpack.c.l.b16 %v4491_v39  ;;  %v4413_v32 = vadd.f32 %v4412_v58, %v4411_v42  ;;  %v4447_v62 = vrot.slane %v4446_v30, 2 }
 0x6d7   : > { %v4481_v31 = vadd.f32 %v4480_v11, %v4479_v56 }
 0x6d8   : > { %v4515_v37 = vsel %vm3507_vm6, %v4508_v25, %v4514_v54  ;;  %v4493_v57 = vpack.c.bf16 %v4413_v32, %v4413_v32  ;;  %v4448_v7 = vadd.f32 %v4447_v62, %v4446_v30 }
 0x6d9   : > { %v4516_v2 = vsel %vm3509_vm4, %v4509_v53, %v4515_v37  ;;  %v4482_v46 = vrot.slane %v4481_v31, 4  ;;  %vm8277_vm4 = vmmov %vm8043_vm0 }
 0x6da   : > { %v4510_v9 = vunpack.c.l.b16 %v4493_v57  ;;  %v4449_v6 = vrot.slane %v4448_v7, 1 }
 0x6db   : > { %v4483_v15 = vadd.f32 %v4482_v46, %v4481_v31 }
 0x6dc   : > { %v4517_v0 = vsel %vm3511_vm2, %v4510_v9, %v4516_v2  ;;  %v4450_v5 = vadd.f32 %v4449_v6, %v4448_v7 }
 0x6dd   : > { %v4484_v18 = vrot.slane %v4483_v15, 2 }
 0x6de   : > { %v4494_v1 = vpack.c.bf16 %v4450_v5, %v4450_v5 }
 0x6df   : > { %v4485_v44 = vadd.f32 %v4484_v18, %v4483_v15 }
 0x6e0   : > { %v4511_v3 = vunpack.c.l.b16 %v4494_v1 }
 0x6e1   : > { %v4486_v49 = vrot.slane %v4485_v44, 1 }
 0x6e2   : > { %v4518_v14 = vsel %vm3513_vm5, %v4511_v3, %v4517_v0 }
 0x6e3   : > { %v4487_v45 = vadd.f32 %v4486_v49, %v4485_v44 }
 0x6e5   : > { %v4495_v22 = vpack.c.bf16 %v4487_v45, %v4487_v45 }
 0x6e7   : > { %v4512_v35 = vunpack.c.l.b16 %v4495_v22 }
 0x6e9   : > { %v4519_v43 = vsel %vm3515_vm8, %v4512_v35, %v4518_v14 }
 0x6ea   : > { %v4520_v55 = vpack.c.b16 %v4519_v43, %v4519_v43 }
 0x6ec   : > { %5110 = vmatmul.mubr.msk.bf16.vlgmr.msra.gmra.mxu1 %vm8277_vm4, %v4520_v55 }
 0x6ed   : > { %5177 = shalt.err (!%p5174_p3)
}
 0x6ee   : > { %s5178_s25 = scalar_lea.hbm %s4588_s15, 128  ;;  %s5182_s29 = scalar_lea.hbm %s7643_s6, 256 }
 0x6ef   : > { %p5179_p4 = scmp.ne.s32.totalorder %s4588_s15, %s5178_s25  ;;  %p5183_p9 = scmp.lt.s32.totalorder %s4588_s15, %s7643_s6 }
 0x6f0   : > { %p5184_p10 = scmp.lt.s32.totalorder %s5182_s29, %s5178_s25 }
 0x6f1   : > { %p5180_p7 = pnand %p5179_p4, %p5304_p5 }
 0x6f2   : > { %p5185_p11 = por %p5184_p10, %p5183_p9 }
 0x6f3   : > { %p5181_p8 = pneg %p5180_p7 }
 0x6f5   : > { %p5186_p12 = pnand %p5185_p11, %p5181_p8 }
 0x6f7   : > { %5189 = shalt.err (!%p5186_p12)
}
 0x6f8   : > { %5115 = dma.vmem_to_hbm [thread:$0]  (%p5304_p5), %s4591_s16, 128, %s4588_s15, %s4574_s17   ;;  %vm8278_vm6 = vmmov %vm8043_vm0 }
 0x6f9   : > { %s274_s18 = scalar_lea.vmem %s7642_s5, %s5328_s12 }
 0x7ac   : > { %v4561_v60 = vpop.f32.mrf.mxu1 }
 0x7ad   : > { %4567 = vst.msk [vmem:[%s274_s18] sm:$0xff] %vm8278_vm6, %v4561_v60 }
 0x7ae   : > { %v5111_v54 = vpop.f32.mrf.mxu1 }
 0x7b0   : > { %v4564_v63 = vpop.f32.mrf.mxu1 }
 0x7b2   : > { %v5112_v47 = vpop.f32.mrf.mxu1 }
 0x7b3 PF: > { %p5121_p13 = scmp.ge.s32.totalorder %s5224_s24, 2  ;;  %s4609_s19 = sand.u32 1, %s5212_s21  }
 0x7b4   : > { %s4610_s7 = scalar_lea.sflag [#allocation3], %s4609_s19 }
 0x7b5   : > { %p5118_p0 = pnand %p5121_p13, %p5308_p6 }
 0x7b7   : > { %p5119_p1 = pneg %p5118_p0 }
 0x7b9   : > { %5207 = dma.done.wait (%p5119_p1), %s4610_s7, 128  }
 0x7ba   : > { %5209 = vsyncadd (%p5119_p1), %s4610_s7, 4294967168  ;;  %p17_p5 = scmp.ge.s32.totalorder %s5291_s27, 4   ;;  %s8279_s21 = smov %s5216_s22 }
 0x7bb   : > { %s8280_s22 = smov %s5220_s23  ;;  %s8281_s23 = smov %s5302_s30 }
 0x7bc   : > { %s8282_s24 = smov %s5291_s27  ;;  %19 = sbr.rel (!%p17_p5) target bundleno = 3 (0x3), region = 90 }
 0x7c1   :  { %4615 = vsyncpa [#allocation3], 1 }
 0x7c2   :  { %4617 = vsyncpa [#allocation3 + $0x1], 1 }

</bundles_post_ra>
